<compile_context>
chip_gen: v5e
topology: v5e:2x2
jax: 0.10.0
libtpu: 0.0.40
codegen_flags: <defaults>
</compile_context>

<pallas_src>
import jax
import jax.numpy as jnp
from jax import lax
from jax.experimental import pallas as pl
from jax.experimental.pallas import tpu as pltpu

EPS = 1e-5
W_IMG = 17                      # input spatial size (17x17 -> 320 flat features)
R0 = 320                        # padded flattened input rows (17*17 = 289 -> 320)
N1, N2, N3, NM = 296, 272, 248, 224   # rows computed per stage (cover valid regions)
SHIFTS = (0, 1, 17, 18)         # row shift for tap (kh, kw): 17*kh + kw
C3_PAD = 128                    # conv3 output channels zero-padded 20 -> 128 lanes


# ---------------------------------------------------------------------------
# Fused forward kernel (one grid step per image)
# ---------------------------------------------------------------------------
def _snet_kernel(x_ref, w1_ref, s1_ref, w2_ref, s2_ref, w3_ref, s3_ref,
                 wf1_ref, bf1_ref, wf2_ref, bf2_ref, wf3_ref, bf3_ref,
                 out_ref, f_ref,
                 a1_ref, a2_ref, a3_ref, gt_ref):
    f32 = jnp.float32

    # ---- conv1 + bn1 + relu (Cin=1 -> pure VPU broadcast multiply-accumulate) ----
    acc1 = jnp.zeros((N1, 32), f32)
    for t, s in enumerate(SHIFTS):
        xt = x_ref[0, pl.ds(s, N1), :]                 # [N1, 1]
        acc1 = acc1 + xt * w1_ref[t]                   # [N1,1] * [1,32] -> [N1,32]
    a1_ref[...] = jnp.maximum(acc1 + s1_ref[...], 0.0)

    # ---- conv2 + bn2 + relu (4 shifted-slice matmuls, BN scale pre-folded) ----
    acc2 = jnp.zeros((N2, 48), f32)
    for t, s in enumerate(SHIFTS):
        acc2 = acc2 + jnp.dot(a1_ref[pl.ds(s, N2), :], w2_ref[t],
                              preferred_element_type=f32)
    a2_ref[...] = jnp.maximum(acc2 + s2_ref[...], 0.0)

    # ---- conv3 + bn3 + relu (out channels zero-padded 20 -> 128 lanes) ----
    acc3 = jnp.zeros((N3, C3_PAD), f32)
    for t, s in enumerate(SHIFTS):
        acc3 = acc3 + jnp.dot(a2_ref[pl.ds(s, N3), :], w3_ref[t],
                              preferred_element_type=f32)
    a3_ref[...] = jnp.maximum(acc3 + s3_ref[...], 0.0)

    # ---- maxpool 2x2 (via shifted reads), then pick the stride-4 grid ----
    m = a3_ref[pl.ds(0, NM), :]
    for s in SHIFTS[1:]:
        m = jnp.maximum(m, a3_ref[pl.ds(s, NM), :])    # [NM, 128] 2x2 window max

    # one-hot selection of the 16 pooled positions: row(p) = 68*(p>>2) + 4*(p&3)
    p_idx = lax.broadcasted_iota(jnp.int32, (16, NM), 0)
    r_idx = lax.broadcasted_iota(jnp.int32, (16, NM), 1)
    target = (p_idx >> 2) * (4 * W_IMG) + (p_idx & 3) * 4
    sel = (r_idx == target).astype(f32)                # [16, NM]
    g = jnp.dot(sel, m, preferred_element_type=f32)    # [16, 128]  (p, c)

    # transpose to channel-major (c, p) with an identity matmul (A @ B^T on MXU;
    # avoids relying on XLU transpose lowering for odd shapes)
    i_idx = lax.broadcasted_iota(jnp.int32, (C3_PAD, C3_PAD), 0)
    j_idx = lax.broadcasted_iota(jnp.int32, (C3_PAD, C3_PAD), 1)
    eye = (i_idx == j_idx).astype(f32)
    gt_ref[...] = lax.dot_general(eye, g, (((1,), (1,)), ((), ())),
                                  preferred_element_type=f32)      # [128, 16]

    # ---- NCHW flatten: f[c*16 + p]   (dropout1 = identity in eval mode) ----
    for c in range(20):
        f_ref[0, :, pl.ds(16 * c, 16)] = gt_ref[pl.ds(c, 1), :]

    # ---- MLP: fc1 -> relu -> fc2 -> relu -> fc3 (dropouts = identity) ----
    feat = f_ref[0]                                                # [1, 320]
    h = jnp.maximum(jnp.dot(feat, wf1_ref[...], preferred_element_type=f32)
                    + bf1_ref[...], 0.0)
    h = jnp.maximum(jnp.dot(h, wf2_ref[...], preferred_element_type=f32)
                    + bf2_ref[...], 0.0)
    out_ref[0] = jnp.dot(h, wf3_ref[...], preferred_element_type=f32) + bf3_ref[...]


# ---------------------------------------------------------------------------
# Wrapper
# ---------------------------------------------------------------------------
def snet_pluse_forward(x_nchw, params):
    B = x_nchw.shape[0]
    xr = x_nchw.reshape(B, W_IMG * W_IMG).astype(jnp.float32)
    xp = jnp.pad(xr, ((0, 0), (0, R0 - W_IMG * W_IMG))).reshape(B, R0, 1)

    w1, s1 = params["conv1"]
    w2, s2 = params["conv2"]
    w3, s3 = params["conv3"]
    wf1, bf1, wf2, bf2, wf3, bf3 = params["fc"]

    def full(a):
        return pl.BlockSpec(a.shape, lambda b, _nd=a.ndim: (0,) * _nd)

    logits, f = pl.pallas_call(
        _snet_kernel,
        out_shape=(jax.ShapeDtypeStruct((B, 1, 10), jnp.float32),
                   jax.ShapeDtypeStruct((B, 1, 320), jnp.float32)),
        grid=(B,),
        in_specs=[pl.BlockSpec((1, R0, 1), lambda b: (b, 0, 0)),
                  full(w1), full(s1), full(w2), full(s2), full(w3), full(s3),
                  full(wf1), full(bf1), full(wf2), full(bf2), full(wf3), full(bf3)],
        out_specs=(pl.BlockSpec((1, 1, 10), lambda b: (b, 0, 0)),
                   pl.BlockSpec((1, 1, 320), lambda b: (b, 0, 0))),
        scratch_shapes=[pltpu.VMEM((N1, 32), jnp.float32),
                        pltpu.VMEM((N2, 48), jnp.float32),
                        pltpu.VMEM((N3, C3_PAD), jnp.float32),
                        pltpu.VMEM((C3_PAD, 16), jnp.float32)],
        compiler_params=pltpu.CompilerParams(
            dimension_semantics=("parallel",)),
    )(xp, w1, s1, w2, s2, w3, s3, wf1, bf1, wf2, bf2, wf3, bf3)

    return logits[:, 0, :], f[:, 0, :]


# ---------------------------------------------------------------------------
# Parameter setup (host-side): BN folded into conv weights, tap-major layout
# ---------------------------------------------------------------------------
def _fold_conv_bn(w, b, gamma, beta, mean, var, pad_to=None):
    # w: [Cout, Cin, 2, 2] (PyTorch) -> [4, Cin, Cout], tap order t = 2*kh + kw.
    cout, cin = w.shape[0], w.shape[1]
    wm = jnp.transpose(w, (2, 3, 1, 0)).reshape(4, cin, cout)
    scale = gamma / jnp.sqrt(var + EPS)
    wm = wm * scale                                   # BN scale folded into weights
    shift = ((b - mean) * scale + beta).reshape(1, cout)
    if pad_to is not None and pad_to > cout:
        wm = jnp.pad(wm, ((0, 0), (0, 0), (0, pad_to - cout)))
        shift = jnp.pad(shift, ((0, 0), (0, pad_to - cout)))
    return wm, shift


def init_raw_params(key):
    raw = {}
    for name, cin, cout in (("conv1", 1, 32), ("conv2", 32, 48), ("conv3", 48, 20)):
        key, kw, kb, kg, kbe, km, kv = jax.random.split(key, 7)
        raw[name] = (
            0.1 * jax.random.normal(kw, (cout, cin, 2, 2), jnp.float32),
            0.1 * jax.random.normal(kb, (cout,), jnp.float32),
            1.0 + 0.1 * jax.random.normal(kg, (cout,), jnp.float32),
            0.1 * jax.random.normal(kbe, (cout,), jnp.float32),
            0.1 * jax.random.normal(km, (cout,), jnp.float32),
            1.0 + jnp.abs(0.1 * jax.random.normal(kv, (cout,), jnp.float32)),
        )
    fc = []
    for din, dout in ((320, 160), (160, 32), (32, 10)):
        key, kw, kb = jax.random.split(key, 3)
        fc.append(0.05 * jax.random.normal(kw, (dout, din), jnp.float32))
        fc.append(0.05 * jax.random.normal(kb, (dout,), jnp.float32))
    raw["fc"] = tuple(fc)
    return raw


def prepare_params(raw):
    p = {
        "conv1": _fold_conv_bn(*raw["conv1"]),
        "conv2": _fold_conv_bn(*raw["conv2"]),
        "conv3": _fold_conv_bn(*raw["conv3"], pad_to=C3_PAD),
    }
    w1, b1, w2, b2, w3, b3 = raw["fc"]
    p["fc"] = (w1.T, b1.reshape(1, -1), w2.T, b2.reshape(1, -1),
               w3.T, b3.reshape(1, -1))
    return p


# ---------------------------------------------------------------------------
# Pure-JAX reference (eval-mode PyTorch semantics) for a correctness check
# ---------------------------------------------------------------------------
def _reference_forward(x, raw):
    a = x.astype(jnp.float32)
    for name in ("conv1", "conv2", "conv3"):
        w, b, gamma, beta, mean, var = raw[name]
        a = lax.conv_general_dilated(a, w, (1, 1), "VALID",
                                     dimension_numbers=("NCHW", "OIHW", "NCHW"),
                                     precision=lax.Precision.HIGHEST)
        a = a + b.reshape(1, -1, 1, 1)
        a = ((a - mean.reshape(1, -1, 1, 1)) / jnp.sqrt(var.reshape(1, -1, 1, 1) + EPS)
             * gamma.reshape(1, -1, 1, 1) + beta.reshape(1, -1, 1, 1))
        a = jnp.maximum(a, 0.0)
    a = lax.reduce_window(a, -jnp.inf, lax.max, (1, 1, 2, 2), (1, 1, 4, 4), "VALID")
    f = a.reshape(a.shape[0], -1)
    w1, b1, w2, b2, w3, b3 = raw["fc"]
    h = jnp.maximum(f @ w1.T + b1, 0.0)
    h = jnp.maximum(h @ w2.T + b2, 0.0)
    logits = h @ w3.T + b3
    return logits, f


if __name__ == "__main__":
    key = jax.random.PRNGKey(0)
    k_param, k_x = jax.random.split(key)
    raw = init_raw_params(k_param)
    params = prepare_params(raw)
    x = jax.random.normal(k_x, (2, 1, 17, 17), jnp.float32)  # NCHW, like PyTorch

    logits, f = snet_pluse_forward(x, params)
    jax.block_until_ready((logits, f))
    assert logits.shape == (2, 10) and f.shape == (2, 320)

    ref_logits, ref_f = _reference_forward(x, raw)
    assert jnp.allclose(f, ref_f, atol=2e-2, rtol=2e-2)
    assert jnp.allclose(logits, ref_logits, atol=2e-2, rtol=2e-2)
    print("KERNEL_OK")
</pallas_src>

<mosaic_0001>
module attributes {stable_mosaic.version = 11 : i64} {
  func.func @_snet_kernel(%arg0: i32, %arg1: memref<1x320x1xf32, #tpu.memory_space<vmem>>, %arg2: memref<4x1x32xf32, #tpu.memory_space<vmem>>, %arg3: memref<1x32xf32, #tpu.memory_space<vmem>>, %arg4: memref<4x32x48xf32, #tpu.memory_space<vmem>>, %arg5: memref<1x48xf32, #tpu.memory_space<vmem>>, %arg6: memref<4x48x128xf32, #tpu.memory_space<vmem>>, %arg7: memref<1x128xf32, #tpu.memory_space<vmem>>, %arg8: memref<320x160xf32, #tpu.memory_space<vmem>>, %arg9: memref<1x160xf32, #tpu.memory_space<vmem>>, %arg10: memref<160x32xf32, #tpu.memory_space<vmem>>, %arg11: memref<1x32xf32, #tpu.memory_space<vmem>>, %arg12: memref<32x10xf32, #tpu.memory_space<vmem>>, %arg13: memref<1x10xf32, #tpu.memory_space<vmem>>, %arg14: memref<1x1x10xf32, #tpu.memory_space<vmem>>, %arg15: memref<1x1x320xf32, #tpu.memory_space<vmem>>, %arg16: memref<296x32xf32, #tpu.memory_space<vmem>>, %arg17: memref<272x48xf32, #tpu.memory_space<vmem>>, %arg18: memref<248x128xf32, #tpu.memory_space<vmem>>, %arg19: memref<128x16xf32, #tpu.memory_space<vmem>>) attributes {dimension_semantics = [#tpu.dimension_semantics<parallel>], iteration_bounds = array<i64: 2>, scalar_prefetch = 0 : i64, scratch_operands = 4 : i64, tpu.core_type = #tpu.core_type<tc>, window_params = [{transform_indices = @transform_0, window_bounds = array<i64: 1, 320, 1>}, {pipeline_mode = #tpu.pipeline_mode<synchronous>, transform_indices = @transform_1, window_bounds = array<i64: 4, 1, 32>}, {pipeline_mode = #tpu.pipeline_mode<synchronous>, transform_indices = @transform_2, window_bounds = array<i64: 1, 32>}, {pipeline_mode = #tpu.pipeline_mode<synchronous>, transform_indices = @transform_3, window_bounds = array<i64: 4, 32, 48>}, {pipeline_mode = #tpu.pipeline_mode<synchronous>, transform_indices = @transform_4, window_bounds = array<i64: 1, 48>}, {pipeline_mode = #tpu.pipeline_mode<synchronous>, transform_indices = @transform_5, window_bounds = array<i64: 4, 48, 128>}, {pipeline_mode = #tpu.pipeline_mode<synchronous>, transform_indices = @transform_6, window_bounds = array<i64: 1, 128>}, {pipeline_mode = #tpu.pipeline_mode<synchronous>, transform_indices = @transform_7, window_bounds = array<i64: 320, 160>}, {pipeline_mode = #tpu.pipeline_mode<synchronous>, transform_indices = @transform_8, window_bounds = array<i64: 1, 160>}, {pipeline_mode = #tpu.pipeline_mode<synchronous>, transform_indices = @transform_9, window_bounds = array<i64: 160, 32>}, {pipeline_mode = #tpu.pipeline_mode<synchronous>, transform_indices = @transform_10, window_bounds = array<i64: 1, 32>}, {pipeline_mode = #tpu.pipeline_mode<synchronous>, transform_indices = @transform_11, window_bounds = array<i64: 32, 10>}, {pipeline_mode = #tpu.pipeline_mode<synchronous>, transform_indices = @transform_12, window_bounds = array<i64: 1, 10>}, {transform_indices = @transform_13, window_bounds = array<i64: 1, 1, 10>}, {transform_indices = @transform_14, window_bounds = array<i64: 1, 1, 320>}]} {
    %cst = arith.constant 0.000000e+00 : f32
    %0 = vector.broadcast %cst : f32 to vector<296x32xf32>
    %c0 = arith.constant 0 : index
    %c0_0 = arith.constant 0 : index
    %c0_1 = arith.constant 0 : index
    %1 = vector.load %arg1[%c0, %c0_0, %c0_1] : memref<1x320x1xf32, #tpu.memory_space<vmem>>, vector<1x296x1xf32>
    %2 = vector.shape_cast %1 : vector<1x296x1xf32> to vector<296x1xf32>
    %c0_2 = arith.constant 0 : index
    %c0_3 = arith.constant 0 : index
    %c0_4 = arith.constant 0 : index
    %3 = vector.load %arg2[%c0_2, %c0_3, %c0_4] : memref<4x1x32xf32, #tpu.memory_space<vmem>>, vector<1x1x32xf32>
    %4 = vector.shape_cast %3 : vector<1x1x32xf32> to vector<1x32xf32>
    %5 = vector.broadcast %2 : vector<296x1xf32> to vector<296x32xf32>
    %6 = vector.broadcast %4 : vector<1x32xf32> to vector<296x32xf32>
    %7 = arith.mulf %5, %6 : vector<296x32xf32>
    %8 = arith.addf %0, %7 : vector<296x32xf32>
    %c0_5 = arith.constant 0 : index
    %c1 = arith.constant 1 : index
    %c0_6 = arith.constant 0 : index
    %9 = vector.load %arg1[%c0_5, %c1, %c0_6] : memref<1x320x1xf32, #tpu.memory_space<vmem>>, vector<1x296x1xf32>
    %10 = vector.shape_cast %9 : vector<1x296x1xf32> to vector<296x1xf32>
    %c1_7 = arith.constant 1 : index
    %c0_8 = arith.constant 0 : index
    %c0_9 = arith.constant 0 : index
    %11 = vector.load %arg2[%c1_7, %c0_8, %c0_9] : memref<4x1x32xf32, #tpu.memory_space<vmem>>, vector<1x1x32xf32>
    %12 = vector.shape_cast %11 : vector<1x1x32xf32> to vector<1x32xf32>
    %13 = vector.broadcast %10 : vector<296x1xf32> to vector<296x32xf32>
    %14 = vector.broadcast %12 : vector<1x32xf32> to vector<296x32xf32>
    %15 = arith.mulf %13, %14 : vector<296x32xf32>
    %16 = arith.addf %8, %15 : vector<296x32xf32>
    %c0_10 = arith.constant 0 : index
    %c17 = arith.constant 17 : index
    %c0_11 = arith.constant 0 : index
    %17 = vector.load %arg1[%c0_10, %c17, %c0_11] : memref<1x320x1xf32, #tpu.memory_space<vmem>>, vector<1x296x1xf32>
    %18 = vector.shape_cast %17 : vector<1x296x1xf32> to vector<296x1xf32>
    %c2 = arith.constant 2 : index
    %c0_12 = arith.constant 0 : index
    %c0_13 = arith.constant 0 : index
    %19 = vector.load %arg2[%c2, %c0_12, %c0_13] : memref<4x1x32xf32, #tpu.memory_space<vmem>>, vector<1x1x32xf32>
    %20 = vector.shape_cast %19 : vector<1x1x32xf32> to vector<1x32xf32>
    %21 = vector.broadcast %18 : vector<296x1xf32> to vector<296x32xf32>
    %22 = vector.broadcast %20 : vector<1x32xf32> to vector<296x32xf32>
    %23 = arith.mulf %21, %22 : vector<296x32xf32>
    %24 = arith.addf %16, %23 : vector<296x32xf32>
    %c0_14 = arith.constant 0 : index
    %c18 = arith.constant 18 : index
    %c0_15 = arith.constant 0 : index
    %25 = vector.load %arg1[%c0_14, %c18, %c0_15] : memref<1x320x1xf32, #tpu.memory_space<vmem>>, vector<1x296x1xf32>
    %26 = vector.shape_cast %25 : vector<1x296x1xf32> to vector<296x1xf32>
    %c3 = arith.constant 3 : index
    %c0_16 = arith.constant 0 : index
    %c0_17 = arith.constant 0 : index
    %27 = vector.load %arg2[%c3, %c0_16, %c0_17] : memref<4x1x32xf32, #tpu.memory_space<vmem>>, vector<1x1x32xf32>
    %28 = vector.shape_cast %27 : vector<1x1x32xf32> to vector<1x32xf32>
    %29 = vector.broadcast %26 : vector<296x1xf32> to vector<296x32xf32>
    %30 = vector.broadcast %28 : vector<1x32xf32> to vector<296x32xf32>
    %31 = arith.mulf %29, %30 : vector<296x32xf32>
    %32 = arith.addf %24, %31 : vector<296x32xf32>
    %c0_18 = arith.constant 0 : index
    %c0_19 = arith.constant 0 : index
    %33 = vector.load %arg3[%c0_18, %c0_19] : memref<1x32xf32, #tpu.memory_space<vmem>>, vector<1x32xf32>
    %34 = vector.broadcast %33 : vector<1x32xf32> to vector<296x32xf32>
    %35 = arith.addf %32, %34 : vector<296x32xf32>
    %cst_20 = arith.constant 0.000000e+00 : f32
    %36 = vector.broadcast %cst_20 : f32 to vector<296x32xf32>
    %37 = arith.maximumf %35, %36 : vector<296x32xf32>
    %c0_21 = arith.constant 0 : index
    %c0_22 = arith.constant 0 : index
    %38 = vector.load %arg16[%c0_21, %c0_22] : memref<296x32xf32, #tpu.memory_space<vmem>>, vector<296x32xf32>
    tpu.vector_store %arg16[%c0_21, %c0_22], %37 {strides = array<i32>} : memref<296x32xf32, #tpu.memory_space<vmem>>, vector<296x32xf32>,
    %cst_23 = arith.constant 0.000000e+00 : f32
    %39 = vector.broadcast %cst_23 : f32 to vector<272x48xf32>
    %c0_24 = arith.constant 0 : index
    %c0_25 = arith.constant 0 : index
    %40 = vector.load %arg16[%c0_24, %c0_25] : memref<296x32xf32, #tpu.memory_space<vmem>>, vector<272x32xf32>
    %c0_26 = arith.constant 0 : index
    %c0_27 = arith.constant 0 : index
    %c0_28 = arith.constant 0 : index
    %41 = vector.load %arg4[%c0_26, %c0_27, %c0_28] : memref<4x32x48xf32, #tpu.memory_space<vmem>>, vector<1x32x48xf32>
    %42 = vector.shape_cast %41 : vector<1x32x48xf32> to vector<32x48xf32>
    %cst_29 = arith.constant dense<0.000000e+00> : vector<272x48xf32>
    %43 = tpu.matmul %40, %42, %cst_29 {dimension_numbers = #tpu.dot_dimension_numbers<[1], [0], [0], [1], [0, 0, 1, 1], [], []>} : vector<272x32xf32>, vector<32x48xf32>, vector<272x48xf32> -> vector<272x48xf32>
    %44 = arith.addf %39, %43 : vector<272x48xf32>
    %c1_30 = arith.constant 1 : index
    %c0_31 = arith.constant 0 : index
    %45 = vector.load %arg16[%c1_30, %c0_31] : memref<296x32xf32, #tpu.memory_space<vmem>>, vector<272x32xf32>
    %c1_32 = arith.constant 1 : index
    %c0_33 = arith.constant 0 : index
    %c0_34 = arith.constant 0 : index
    %46 = vector.load %arg4[%c1_32, %c0_33, %c0_34] : memref<4x32x48xf32, #tpu.memory_space<vmem>>, vector<1x32x48xf32>
    %47 = vector.shape_cast %46 : vector<1x32x48xf32> to vector<32x48xf32>
    %cst_35 = arith.constant dense<0.000000e+00> : vector<272x48xf32>
    %48 = tpu.matmul %45, %47, %cst_35 {dimension_numbers = #tpu.dot_dimension_numbers<[1], [0], [0], [1], [0, 0, 1, 1], [], []>} : vector<272x32xf32>, vector<32x48xf32>, vector<272x48xf32> -> vector<272x48xf32>
    %49 = arith.addf %44, %48 : vector<272x48xf32>
    %c17_36 = arith.constant 17 : index
    %c0_37 = arith.constant 0 : index
    %50 = vector.load %arg16[%c17_36, %c0_37] : memref<296x32xf32, #tpu.memory_space<vmem>>, vector<272x32xf32>
    %c2_38 = arith.constant 2 : index
    %c0_39 = arith.constant 0 : index
    %c0_40 = arith.constant 0 : index
    %51 = vector.load %arg4[%c2_38, %c0_39, %c0_40] : memref<4x32x48xf32, #tpu.memory_space<vmem>>, vector<1x32x48xf32>
    %52 = vector.shape_cast %51 : vector<1x32x48xf32> to vector<32x48xf32>
    %cst_41 = arith.constant dense<0.000000e+00> : vector<272x48xf32>
    %53 = tpu.matmul %50, %52, %cst_41 {dimension_numbers = #tpu.dot_dimension_numbers<[1], [0], [0], [1], [0, 0, 1, 1], [], []>} : vector<272x32xf32>, vector<32x48xf32>, vector<272x48xf32> -> vector<272x48xf32>
    %54 = arith.addf %49, %53 : vector<272x48xf32>
    %c18_42 = arith.constant 18 : index
    %c0_43 = arith.constant 0 : index
    %55 = vector.load %arg16[%c18_42, %c0_43] : memref<296x32xf32, #tpu.memory_space<vmem>>, vector<272x32xf32>
    %c3_44 = arith.constant 3 : index
    %c0_45 = arith.constant 0 : index
    %c0_46 = arith.constant 0 : index
    %56 = vector.load %arg4[%c3_44, %c0_45, %c0_46] : memref<4x32x48xf32, #tpu.memory_space<vmem>>, vector<1x32x48xf32>
    %57 = vector.shape_cast %56 : vector<1x32x48xf32> to vector<32x48xf32>
    %cst_47 = arith.constant dense<0.000000e+00> : vector<272x48xf32>
    %58 = tpu.matmul %55, %57, %cst_47 {dimension_numbers = #tpu.dot_dimension_numbers<[1], [0], [0], [1], [0, 0, 1, 1], [], []>} : vector<272x32xf32>, vector<32x48xf32>, vector<272x48xf32> -> vector<272x48xf32>
    %59 = arith.addf %54, %58 : vector<272x48xf32>
    %c0_48 = arith.constant 0 : index
    %c0_49 = arith.constant 0 : index
    %60 = vector.load %arg5[%c0_48, %c0_49] : memref<1x48xf32, #tpu.memory_space<vmem>>, vector<1x48xf32>
    %61 = vector.broadcast %60 : vector<1x48xf32> to vector<272x48xf32>
    %62 = arith.addf %59, %61 : vector<272x48xf32>
    %cst_50 = arith.constant 0.000000e+00 : f32
    %63 = vector.broadcast %cst_50 : f32 to vector<272x48xf32>
    %64 = arith.maximumf %62, %63 : vector<272x48xf32>
    %c0_51 = arith.constant 0 : index
    %c0_52 = arith.constant 0 : index
    %65 = vector.load %arg17[%c0_51, %c0_52] : memref<272x48xf32, #tpu.memory_space<vmem>>, vector<272x48xf32>
    tpu.vector_store %arg17[%c0_51, %c0_52], %64 {strides = array<i32>} : memref<272x48xf32, #tpu.memory_space<vmem>>, vector<272x48xf32>,
    %cst_53 = arith.constant 0.000000e+00 : f32
    %66 = vector.broadcast %cst_53 : f32 to vector<248x128xf32>
    %c0_54 = arith.constant 0 : index
    %c0_55 = arith.constant 0 : index
    %67 = vector.load %arg17[%c0_54, %c0_55] : memref<272x48xf32, #tpu.memory_space<vmem>>, vector<248x48xf32>
    %c0_56 = arith.constant 0 : index
    %c0_57 = arith.constant 0 : index
    %c0_58 = arith.constant 0 : index
    %68 = vector.load %arg6[%c0_56, %c0_57, %c0_58] : memref<4x48x128xf32, #tpu.memory_space<vmem>>, vector<1x48x128xf32>
    %69 = vector.shape_cast %68 : vector<1x48x128xf32> to vector<48x128xf32>
    %cst_59 = arith.constant dense<0.000000e+00> : vector<248x128xf32>
    %70 = tpu.matmul %67, %69, %cst_59 {dimension_numbers = #tpu.dot_dimension_numbers<[1], [0], [0], [1], [0, 0, 1, 1], [], []>} : vector<248x48xf32>, vector<48x128xf32>, vector<248x128xf32> -> vector<248x128xf32>
    %71 = arith.addf %66, %70 : vector<248x128xf32>
    %c1_60 = arith.constant 1 : index
    %c0_61 = arith.constant 0 : index
    %72 = vector.load %arg17[%c1_60, %c0_61] : memref<272x48xf32, #tpu.memory_space<vmem>>, vector<248x48xf32>
    %c1_62 = arith.constant 1 : index
    %c0_63 = arith.constant 0 : index
    %c0_64 = arith.constant 0 : index
    %73 = vector.load %arg6[%c1_62, %c0_63, %c0_64] : memref<4x48x128xf32, #tpu.memory_space<vmem>>, vector<1x48x128xf32>
    %74 = vector.shape_cast %73 : vector<1x48x128xf32> to vector<48x128xf32>
    %cst_65 = arith.constant dense<0.000000e+00> : vector<248x128xf32>
    %75 = tpu.matmul %72, %74, %cst_65 {dimension_numbers = #tpu.dot_dimension_numbers<[1], [0], [0], [1], [0, 0, 1, 1], [], []>} : vector<248x48xf32>, vector<48x128xf32>, vector<248x128xf32> -> vector<248x128xf32>
    %76 = arith.addf %71, %75 : vector<248x128xf32>
    %c17_66 = arith.constant 17 : index
    %c0_67 = arith.constant 0 : index
    %77 = vector.load %arg17[%c17_66, %c0_67] : memref<272x48xf32, #tpu.memory_space<vmem>>, vector<248x48xf32>
    %c2_68 = arith.constant 2 : index
    %c0_69 = arith.constant 0 : index
    %c0_70 = arith.constant 0 : index
    %78 = vector.load %arg6[%c2_68, %c0_69, %c0_70] : memref<4x48x128xf32, #tpu.memory_space<vmem>>, vector<1x48x128xf32>
    %79 = vector.shape_cast %78 : vector<1x48x128xf32> to vector<48x128xf32>
    %cst_71 = arith.constant dense<0.000000e+00> : vector<248x128xf32>
    %80 = tpu.matmul %77, %79, %cst_71 {dimension_numbers = #tpu.dot_dimension_numbers<[1], [0], [0], [1], [0, 0, 1, 1], [], []>} : vector<248x48xf32>, vector<48x128xf32>, vector<248x128xf32> -> vector<248x128xf32>
    %81 = arith.addf %76, %80 : vector<248x128xf32>
    %c18_72 = arith.constant 18 : index
    %c0_73 = arith.constant 0 : index
    %82 = vector.load %arg17[%c18_72, %c0_73] : memref<272x48xf32, #tpu.memory_space<vmem>>, vector<248x48xf32>
    %c3_74 = arith.constant 3 : index
    %c0_75 = arith.constant 0 : index
    %c0_76 = arith.constant 0 : index
    %83 = vector.load %arg6[%c3_74, %c0_75, %c0_76] : memref<4x48x128xf32, #tpu.memory_space<vmem>>, vector<1x48x128xf32>
    %84 = vector.shape_cast %83 : vector<1x48x128xf32> to vector<48x128xf32>
    %cst_77 = arith.constant dense<0.000000e+00> : vector<248x128xf32>
    %85 = tpu.matmul %82, %84, %cst_77 {dimension_numbers = #tpu.dot_dimension_numbers<[1], [0], [0], [1], [0, 0, 1, 1], [], []>} : vector<248x48xf32>, vector<48x128xf32>, vector<248x128xf32> -> vector<248x128xf32>
    %86 = arith.addf %81, %85 : vector<248x128xf32>
    %c0_78 = arith.constant 0 : index
    %c0_79 = arith.constant 0 : index
    %87 = vector.load %arg7[%c0_78, %c0_79] : memref<1x128xf32, #tpu.memory_space<vmem>>, vector<1x128xf32>
    %88 = vector.broadcast %87 : vector<1x128xf32> to vector<248x128xf32>
    %89 = arith.addf %86, %88 : vector<248x128xf32>
    %cst_80 = arith.constant 0.000000e+00 : f32
    %90 = vector.broadcast %cst_80 : f32 to vector<248x128xf32>
    %91 = arith.maximumf %89, %90 : vector<248x128xf32>
    %c0_81 = arith.constant 0 : index
    %c0_82 = arith.constant 0 : index
    %92 = vector.load %arg18[%c0_81, %c0_82] : memref<248x128xf32, #tpu.memory_space<vmem>>, vector<248x128xf32>
    tpu.vector_store %arg18[%c0_81, %c0_82], %91 {strides = array<i32>} : memref<248x128xf32, #tpu.memory_space<vmem>>, vector<248x128xf32>,
    %c0_83 = arith.constant 0 : index
    %c0_84 = arith.constant 0 : index
    %93 = vector.load %arg18[%c0_83, %c0_84] : memref<248x128xf32, #tpu.memory_space<vmem>>, vector<224x128xf32>
    %c1_85 = arith.constant 1 : index
    %c0_86 = arith.constant 0 : index
    %94 = vector.load %arg18[%c1_85, %c0_86] : memref<248x128xf32, #tpu.memory_space<vmem>>, vector<224x128xf32>
    %95 = arith.maximumf %93, %94 : vector<224x128xf32>
    %c17_87 = arith.constant 17 : index
    %c0_88 = arith.constant 0 : index
    %96 = vector.load %arg18[%c17_87, %c0_88] : memref<248x128xf32, #tpu.memory_space<vmem>>, vector<224x128xf32>
    %97 = arith.maximumf %95, %96 : vector<224x128xf32>
    %c18_89 = arith.constant 18 : index
    %c0_90 = arith.constant 0 : index
    %98 = vector.load %arg18[%c18_89, %c0_90] : memref<248x128xf32, #tpu.memory_space<vmem>>, vector<224x128xf32>
    %99 = arith.maximumf %97, %98 : vector<224x128xf32>
    %100 = tpu.iota {dimensions = array<i32: 0>} : vector<16x224xi32>
    %101 = tpu.iota {dimensions = array<i32: 1>} : vector<16x224xi32>
    %c2_i32 = arith.constant 2 : i32
    %102 = vector.broadcast %c2_i32 : i32 to vector<16x224xi32>
    %103 = arith.shrsi %100, %102 : vector<16x224xi32>
    %c68_i32 = arith.constant 68 : i32
    %104 = vector.broadcast %c68_i32 : i32 to vector<16x224xi32>
    %105 = arith.muli %103, %104 : vector<16x224xi32>
    %c3_i32 = arith.constant 3 : i32
    %106 = vector.broadcast %c3_i32 : i32 to vector<16x224xi32>
    %107 = arith.andi %100, %106 : vector<16x224xi32>
    %c4_i32 = arith.constant 4 : i32
    %108 = vector.broadcast %c4_i32 : i32 to vector<16x224xi32>
    %109 = arith.muli %107, %108 : vector<16x224xi32>
    %110 = arith.addi %105, %109 : vector<16x224xi32>
    %111 = arith.cmpi eq, %101, %110 : vector<16x224xi32>
    %112 = arith.extui %111 : vector<16x224xi1> to vector<16x224xi32>
    %113 = arith.sitofp %112 : vector<16x224xi32> to vector<16x224xf32>
    %cst_91 = arith.constant dense<0.000000e+00> : vector<16x128xf32>
    %114 = tpu.matmul %113, %99, %cst_91 {dimension_numbers = #tpu.dot_dimension_numbers<[1], [0], [0], [1], [0, 0, 1, 1], [], []>} : vector<16x224xf32>, vector<224x128xf32>, vector<16x128xf32> -> vector<16x128xf32>
    %115 = tpu.iota {dimensions = array<i32: 0>} : vector<128x128xi32>
    %116 = tpu.iota {dimensions = array<i32: 1>} : vector<128x128xi32>
    %117 = arith.cmpi eq, %115, %116 : vector<128x128xi32>
    %118 = arith.extui %117 : vector<128x128xi1> to vector<128x128xi32>
    %119 = arith.sitofp %118 : vector<128x128xi32> to vector<128x128xf32>
    %cst_92 = arith.constant dense<0.000000e+00> : vector<128x16xf32>
    %120 = tpu.matmul %119, %114, %cst_92 {dimension_numbers = #tpu.dot_dimension_numbers<[1], [1], [0], [0], [0, 0, 1, 0], [], []>} : vector<128x128xf32>, vector<16x128xf32>, vector<128x16xf32> -> vector<128x16xf32>
    %c0_93 = arith.constant 0 : index
    %c0_94 = arith.constant 0 : index
    %121 = vector.load %arg19[%c0_93, %c0_94] : memref<128x16xf32, #tpu.memory_space<vmem>>, vector<128x16xf32>
    tpu.vector_store %arg19[%c0_93, %c0_94], %120 {strides = array<i32>} : memref<128x16xf32, #tpu.memory_space<vmem>>, vector<128x16xf32>,
    %c0_95 = arith.constant 0 : index
    %c0_96 = arith.constant 0 : index
    %122 = vector.load %arg19[%c0_95, %c0_96] : memref<128x16xf32, #tpu.memory_space<vmem>>, vector<1x16xf32>
    %c0_97 = arith.constant 0 : index
    %c0_98 = arith.constant 0 : index
    %c0_99 = arith.constant 0 : index
    %123 = vector.load %arg15[%c0_97, %c0_98, %c0_99] : memref<1x1x320xf32, #tpu.memory_space<vmem>>, vector<1x1x16xf32>
    %124 = vector.shape_cast %123 : vector<1x1x16xf32> to vector<1x16xf32>
    %125 = vector.shape_cast %122 : vector<1x16xf32> to vector<1x1x16xf32>
    tpu.vector_store %arg15[%c0_97, %c0_98, %c0_99], %125 {strides = array<i32>} : memref<1x1x320xf32, #tpu.memory_space<vmem>>, vector<1x1x16xf32>,
    %c1_100 = arith.constant 1 : index
    %c0_101 = arith.constant 0 : index
    %126 = vector.load %arg19[%c1_100, %c0_101] : memref<128x16xf32, #tpu.memory_space<vmem>>, vector<1x16xf32>
    %c0_102 = arith.constant 0 : index
    %c0_103 = arith.constant 0 : index
    %c16 = arith.constant 16 : index
    %127 = vector.load %arg15[%c0_102, %c0_103, %c16] : memref<1x1x320xf32, #tpu.memory_space<vmem>>, vector<1x1x16xf32>
    %128 = vector.shape_cast %127 : vector<1x1x16xf32> to vector<1x16xf32>
    %129 = vector.shape_cast %126 : vector<1x16xf32> to vector<1x1x16xf32>
    tpu.vector_store %arg15[%c0_102, %c0_103, %c16], %129 {strides = array<i32>} : memref<1x1x320xf32, #tpu.memory_space<vmem>>, vector<1x1x16xf32>,
    %c2_104 = arith.constant 2 : index
    %c0_105 = arith.constant 0 : index
    %130 = vector.load %arg19[%c2_104, %c0_105] : memref<128x16xf32, #tpu.memory_space<vmem>>, vector<1x16xf32>
    %c0_106 = arith.constant 0 : index
    %c0_107 = arith.constant 0 : index
    %c32 = arith.constant 32 : index
    %131 = vector.load %arg15[%c0_106, %c0_107, %c32] : memref<1x1x320xf32, #tpu.memory_space<vmem>>, vector<1x1x16xf32>
    %132 = vector.shape_cast %131 : vector<1x1x16xf32> to vector<1x16xf32>
    %133 = vector.shape_cast %130 : vector<1x16xf32> to vector<1x1x16xf32>
    tpu.vector_store %arg15[%c0_106, %c0_107, %c32], %133 {strides = array<i32>} : memref<1x1x320xf32, #tpu.memory_space<vmem>>, vector<1x1x16xf32>,
    %c3_108 = arith.constant 3 : index
    %c0_109 = arith.constant 0 : index
    %134 = vector.load %arg19[%c3_108, %c0_109] : memref<128x16xf32, #tpu.memory_space<vmem>>, vector<1x16xf32>
    %c0_110 = arith.constant 0 : index
    %c0_111 = arith.constant 0 : index
    %c48 = arith.constant 48 : index
    %135 = vector.load %arg15[%c0_110, %c0_111, %c48] : memref<1x1x320xf32, #tpu.memory_space<vmem>>, vector<1x1x16xf32>
    %136 = vector.shape_cast %135 : vector<1x1x16xf32> to vector<1x16xf32>
    %137 = vector.shape_cast %134 : vector<1x16xf32> to vector<1x1x16xf32>
    tpu.vector_store %arg15[%c0_110, %c0_111, %c48], %137 {strides = array<i32>} : memref<1x1x320xf32, #tpu.memory_space<vmem>>, vector<1x1x16xf32>,
    %c4 = arith.constant 4 : index
    %c0_112 = arith.constant 0 : index
    %138 = vector.load %arg19[%c4, %c0_112] : memref<128x16xf32, #tpu.memory_space<vmem>>, vector<1x16xf32>
    %c0_113 = arith.constant 0 : index
    %c0_114 = arith.constant 0 : index
    %c64 = arith.constant 64 : index
    %139 = vector.load %arg15[%c0_113, %c0_114, %c64] : memref<1x1x320xf32, #tpu.memory_space<vmem>>, vector<1x1x16xf32>
    %140 = vector.shape_cast %139 : vector<1x1x16xf32> to vector<1x16xf32>
    %141 = vector.shape_cast %138 : vector<1x16xf32> to vector<1x1x16xf32>
    tpu.vector_store %arg15[%c0_113, %c0_114, %c64], %141 {strides = array<i32>} : memref<1x1x320xf32, #tpu.memory_space<vmem>>, vector<1x1x16xf32>,
    %c5 = arith.constant 5 : index
    %c0_115 = arith.constant 0 : index
    %142 = vector.load %arg19[%c5, %c0_115] : memref<128x16xf32, #tpu.memory_space<vmem>>, vector<1x16xf32>
    %c0_116 = arith.constant 0 : index
    %c0_117 = arith.constant 0 : index
    %c80 = arith.constant 80 : index
    %143 = vector.load %arg15[%c0_116, %c0_117, %c80] : memref<1x1x320xf32, #tpu.memory_space<vmem>>, vector<1x1x16xf32>
    %144 = vector.shape_cast %143 : vector<1x1x16xf32> to vector<1x16xf32>
    %145 = vector.shape_cast %142 : vector<1x16xf32> to vector<1x1x16xf32>
    tpu.vector_store %arg15[%c0_116, %c0_117, %c80], %145 {strides = array<i32>} : memref<1x1x320xf32, #tpu.memory_space<vmem>>, vector<1x1x16xf32>,
    %c6 = arith.constant 6 : index
    %c0_118 = arith.constant 0 : index
    %146 = vector.load %arg19[%c6, %c0_118] : memref<128x16xf32, #tpu.memory_space<vmem>>, vector<1x16xf32>
    %c0_119 = arith.constant 0 : index
    %c0_120 = arith.constant 0 : index
    %c96 = arith.constant 96 : index
    %147 = vector.load %arg15[%c0_119, %c0_120, %c96] : memref<1x1x320xf32, #tpu.memory_space<vmem>>, vector<1x1x16xf32>
    %148 = vector.shape_cast %147 : vector<1x1x16xf32> to vector<1x16xf32>
    %149 = vector.shape_cast %146 : vector<1x16xf32> to vector<1x1x16xf32>
    tpu.vector_store %arg15[%c0_119, %c0_120, %c96], %149 {strides = array<i32>} : memref<1x1x320xf32, #tpu.memory_space<vmem>>, vector<1x1x16xf32>,
    %c7 = arith.constant 7 : index
    %c0_121 = arith.constant 0 : index
    %150 = vector.load %arg19[%c7, %c0_121] : memref<128x16xf32, #tpu.memory_space<vmem>>, vector<1x16xf32>
    %c0_122 = arith.constant 0 : index
    %c0_123 = arith.constant 0 : index
    %c112 = arith.constant 112 : index
    %151 = vector.load %arg15[%c0_122, %c0_123, %c112] : memref<1x1x320xf32, #tpu.memory_space<vmem>>, vector<1x1x16xf32>
    %152 = vector.shape_cast %151 : vector<1x1x16xf32> to vector<1x16xf32>
    %153 = vector.shape_cast %150 : vector<1x16xf32> to vector<1x1x16xf32>
    tpu.vector_store %arg15[%c0_122, %c0_123, %c112], %153 {strides = array<i32>} : memref<1x1x320xf32, #tpu.memory_space<vmem>>, vector<1x1x16xf32>,
    %c8 = arith.constant 8 : index
    %c0_124 = arith.constant 0 : index
    %154 = vector.load %arg19[%c8, %c0_124] : memref<128x16xf32, #tpu.memory_space<vmem>>, vector<1x16xf32>
    %c0_125 = arith.constant 0 : index
    %c0_126 = arith.constant 0 : index
    %c128 = arith.constant 128 : index
    %155 = vector.load %arg15[%c0_125, %c0_126, %c128] : memref<1x1x320xf32, #tpu.memory_space<vmem>>, vector<1x1x16xf32>
    %156 = vector.shape_cast %155 : vector<1x1x16xf32> to vector<1x16xf32>
    %157 = vector.shape_cast %154 : vector<1x16xf32> to vector<1x1x16xf32>
    tpu.vector_store %arg15[%c0_125, %c0_126, %c128], %157 {strides = array<i32>} : memref<1x1x320xf32, #tpu.memory_space<vmem>>, vector<1x1x16xf32>,
    %c9 = arith.constant 9 : index
    %c0_127 = arith.constant 0 : index
    %158 = vector.load %arg19[%c9, %c0_127] : memref<128x16xf32, #tpu.memory_space<vmem>>, vector<1x16xf32>
    %c0_128 = arith.constant 0 : index
    %c0_129 = arith.constant 0 : index
    %c144 = arith.constant 144 : index
    %159 = vector.load %arg15[%c0_128, %c0_129, %c144] : memref<1x1x320xf32, #tpu.memory_space<vmem>>, vector<1x1x16xf32>
    %160 = vector.shape_cast %159 : vector<1x1x16xf32> to vector<1x16xf32>
    %161 = vector.shape_cast %158 : vector<1x16xf32> to vector<1x1x16xf32>
    tpu.vector_store %arg15[%c0_128, %c0_129, %c144], %161 {strides = array<i32>} : memref<1x1x320xf32, #tpu.memory_space<vmem>>, vector<1x1x16xf32>,
    %c10 = arith.constant 10 : index
    %c0_130 = arith.constant 0 : index
    %162 = vector.load %arg19[%c10, %c0_130] : memref<128x16xf32, #tpu.memory_space<vmem>>, vector<1x16xf32>
    %c0_131 = arith.constant 0 : index
    %c0_132 = arith.constant 0 : index
    %c160 = arith.constant 160 : index
    %163 = vector.load %arg15[%c0_131, %c0_132, %c160] : memref<1x1x320xf32, #tpu.memory_space<vmem>>, vector<1x1x16xf32>
    %164 = vector.shape_cast %163 : vector<1x1x16xf32> to vector<1x16xf32>
    %165 = vector.shape_cast %162 : vector<1x16xf32> to vector<1x1x16xf32>
    tpu.vector_store %arg15[%c0_131, %c0_132, %c160], %165 {strides = array<i32>} : memref<1x1x320xf32, #tpu.memory_space<vmem>>, vector<1x1x16xf32>,
    %c11 = arith.constant 11 : index
    %c0_133 = arith.constant 0 : index
    %166 = vector.load %arg19[%c11, %c0_133] : memref<128x16xf32, #tpu.memory_space<vmem>>, vector<1x16xf32>
    %c0_134 = arith.constant 0 : index
    %c0_135 = arith.constant 0 : index
    %c176 = arith.constant 176 : index
    %167 = vector.load %arg15[%c0_134, %c0_135, %c176] : memref<1x1x320xf32, #tpu.memory_space<vmem>>, vector<1x1x16xf32>
    %168 = vector.shape_cast %167 : vector<1x1x16xf32> to vector<1x16xf32>
    %169 = vector.shape_cast %166 : vector<1x16xf32> to vector<1x1x16xf32>
    tpu.vector_store %arg15[%c0_134, %c0_135, %c176], %169 {strides = array<i32>} : memref<1x1x320xf32, #tpu.memory_space<vmem>>, vector<1x1x16xf32>,
    %c12 = arith.constant 12 : index
    %c0_136 = arith.constant 0 : index
    %170 = vector.load %arg19[%c12, %c0_136] : memref<128x16xf32, #tpu.memory_space<vmem>>, vector<1x16xf32>
    %c0_137 = arith.constant 0 : index
    %c0_138 = arith.constant 0 : index
    %c192 = arith.constant 192 : index
    %171 = vector.load %arg15[%c0_137, %c0_138, %c192] : memref<1x1x320xf32, #tpu.memory_space<vmem>>, vector<1x1x16xf32>
    %172 = vector.shape_cast %171 : vector<1x1x16xf32> to vector<1x16xf32>
    %173 = vector.shape_cast %170 : vector<1x16xf32> to vector<1x1x16xf32>
    tpu.vector_store %arg15[%c0_137, %c0_138, %c192], %173 {strides = array<i32>} : memref<1x1x320xf32, #tpu.memory_space<vmem>>, vector<1x1x16xf32>,
    %c13 = arith.constant 13 : index
    %c0_139 = arith.constant 0 : index
    %174 = vector.load %arg19[%c13, %c0_139] : memref<128x16xf32, #tpu.memory_space<vmem>>, vector<1x16xf32>
    %c0_140 = arith.constant 0 : index
    %c0_141 = arith.constant 0 : index
    %c208 = arith.constant 208 : index
    %175 = vector.load %arg15[%c0_140, %c0_141, %c208] : memref<1x1x320xf32, #tpu.memory_space<vmem>>, vector<1x1x16xf32>
    %176 = vector.shape_cast %175 : vector<1x1x16xf32> to vector<1x16xf32>
    %177 = vector.shape_cast %174 : vector<1x16xf32> to vector<1x1x16xf32>
    tpu.vector_store %arg15[%c0_140, %c0_141, %c208], %177 {strides = array<i32>} : memref<1x1x320xf32, #tpu.memory_space<vmem>>, vector<1x1x16xf32>,
    %c14 = arith.constant 14 : index
    %c0_142 = arith.constant 0 : index
    %178 = vector.load %arg19[%c14, %c0_142] : memref<128x16xf32, #tpu.memory_space<vmem>>, vector<1x16xf32>
    %c0_143 = arith.constant 0 : index
    %c0_144 = arith.constant 0 : index
    %c224 = arith.constant 224 : index
    %179 = vector.load %arg15[%c0_143, %c0_144, %c224] : memref<1x1x320xf32, #tpu.memory_space<vmem>>, vector<1x1x16xf32>
    %180 = vector.shape_cast %179 : vector<1x1x16xf32> to vector<1x16xf32>
    %181 = vector.shape_cast %178 : vector<1x16xf32> to vector<1x1x16xf32>
    tpu.vector_store %arg15[%c0_143, %c0_144, %c224], %181 {strides = array<i32>} : memref<1x1x320xf32, #tpu.memory_space<vmem>>, vector<1x1x16xf32>,
    %c15 = arith.constant 15 : index
    %c0_145 = arith.constant 0 : index
    %182 = vector.load %arg19[%c15, %c0_145] : memref<128x16xf32, #tpu.memory_space<vmem>>, vector<1x16xf32>
    %c0_146 = arith.constant 0 : index
    %c0_147 = arith.constant 0 : index
    %c240 = arith.constant 240 : index
    %183 = vector.load %arg15[%c0_146, %c0_147, %c240] : memref<1x1x320xf32, #tpu.memory_space<vmem>>, vector<1x1x16xf32>
    %184 = vector.shape_cast %183 : vector<1x1x16xf32> to vector<1x16xf32>
    %185 = vector.shape_cast %182 : vector<1x16xf32> to vector<1x1x16xf32>
    tpu.vector_store %arg15[%c0_146, %c0_147, %c240], %185 {strides = array<i32>} : memref<1x1x320xf32, #tpu.memory_space<vmem>>, vector<1x1x16xf32>,
    %c16_148 = arith.constant 16 : index
    %c0_149 = arith.constant 0 : index
    %186 = vector.load %arg19[%c16_148, %c0_149] : memref<128x16xf32, #tpu.memory_space<vmem>>, vector<1x16xf32>
    %c0_150 = arith.constant 0 : index
    %c0_151 = arith.constant 0 : index
    %c256 = arith.constant 256 : index
    %187 = vector.load %arg15[%c0_150, %c0_151, %c256] : memref<1x1x320xf32, #tpu.memory_space<vmem>>, vector<1x1x16xf32>
    %188 = vector.shape_cast %187 : vector<1x1x16xf32> to vector<1x16xf32>
    %189 = vector.shape_cast %186 : vector<1x16xf32> to vector<1x1x16xf32>
    tpu.vector_store %arg15[%c0_150, %c0_151, %c256], %189 {strides = array<i32>} : memref<1x1x320xf32, #tpu.memory_space<vmem>>, vector<1x1x16xf32>,
    %c17_152 = arith.constant 17 : index
    %c0_153 = arith.constant 0 : index
    %190 = vector.load %arg19[%c17_152, %c0_153] : memref<128x16xf32, #tpu.memory_space<vmem>>, vector<1x16xf32>
    %c0_154 = arith.constant 0 : index
    %c0_155 = arith.constant 0 : index
    %c272 = arith.constant 272 : index
    %191 = vector.load %arg15[%c0_154, %c0_155, %c272] : memref<1x1x320xf32, #tpu.memory_space<vmem>>, vector<1x1x16xf32>
    %192 = vector.shape_cast %191 : vector<1x1x16xf32> to vector<1x16xf32>
    %193 = vector.shape_cast %190 : vector<1x16xf32> to vector<1x1x16xf32>
    tpu.vector_store %arg15[%c0_154, %c0_155, %c272], %193 {strides = array<i32>} : memref<1x1x320xf32, #tpu.memory_space<vmem>>, vector<1x1x16xf32>,
    %c18_156 = arith.constant 18 : index
    %c0_157 = arith.constant 0 : index
    %194 = vector.load %arg19[%c18_156, %c0_157] : memref<128x16xf32, #tpu.memory_space<vmem>>, vector<1x16xf32>
    %c0_158 = arith.constant 0 : index
    %c0_159 = arith.constant 0 : index
    %c288 = arith.constant 288 : index
    %195 = vector.load %arg15[%c0_158, %c0_159, %c288] : memref<1x1x320xf32, #tpu.memory_space<vmem>>, vector<1x1x16xf32>
    %196 = vector.shape_cast %195 : vector<1x1x16xf32> to vector<1x16xf32>
    %197 = vector.shape_cast %194 : vector<1x16xf32> to vector<1x1x16xf32>
    tpu.vector_store %arg15[%c0_158, %c0_159, %c288], %197 {strides = array<i32>} : memref<1x1x320xf32, #tpu.memory_space<vmem>>, vector<1x1x16xf32>,
    %c19 = arith.constant 19 : index
    %c0_160 = arith.constant 0 : index
    %198 = vector.load %arg19[%c19, %c0_160] : memref<128x16xf32, #tpu.memory_space<vmem>>, vector<1x16xf32>
    %c0_161 = arith.constant 0 : index
    %c0_162 = arith.constant 0 : index
    %c304 = arith.constant 304 : index
    %199 = vector.load %arg15[%c0_161, %c0_162, %c304] : memref<1x1x320xf32, #tpu.memory_space<vmem>>, vector<1x1x16xf32>
    %200 = vector.shape_cast %199 : vector<1x1x16xf32> to vector<1x16xf32>
    %201 = vector.shape_cast %198 : vector<1x16xf32> to vector<1x1x16xf32>
    tpu.vector_store %arg15[%c0_161, %c0_162, %c304], %201 {strides = array<i32>} : memref<1x1x320xf32, #tpu.memory_space<vmem>>, vector<1x1x16xf32>,
    %c0_163 = arith.constant 0 : index
    %c0_164 = arith.constant 0 : index
    %c0_165 = arith.constant 0 : index
    %202 = vector.load %arg15[%c0_163, %c0_164, %c0_165] : memref<1x1x320xf32, #tpu.memory_space<vmem>>, vector<1x1x320xf32>
    %203 = vector.shape_cast %202 : vector<1x1x320xf32> to vector<1x320xf32>
    %c0_166 = arith.constant 0 : index
    %c0_167 = arith.constant 0 : index
    %204 = vector.load %arg8[%c0_166, %c0_167] : memref<320x160xf32, #tpu.memory_space<vmem>>, vector<320x160xf32>
    %cst_168 = arith.constant dense<0.000000e+00> : vector<1x160xf32>
    %205 = tpu.matmul %203, %204, %cst_168 {dimension_numbers = #tpu.dot_dimension_numbers<[1], [0], [0], [1], [0, 0, 1, 1], [], []>} : vector<1x320xf32>, vector<320x160xf32>, vector<1x160xf32> -> vector<1x160xf32>
    %c0_169 = arith.constant 0 : index
    %c0_170 = arith.constant 0 : index
    %206 = vector.load %arg9[%c0_169, %c0_170] : memref<1x160xf32, #tpu.memory_space<vmem>>, vector<1x160xf32>
    %207 = arith.addf %205, %206 : vector<1x160xf32>
    %cst_171 = arith.constant 0.000000e+00 : f32
    %208 = vector.broadcast %cst_171 : f32 to vector<1x160xf32>
    %209 = arith.maximumf %207, %208 : vector<1x160xf32>
    %c0_172 = arith.constant 0 : index
    %c0_173 = arith.constant 0 : index
    %210 = vector.load %arg10[%c0_172, %c0_173] : memref<160x32xf32, #tpu.memory_space<vmem>>, vector<160x32xf32>
    %cst_174 = arith.constant dense<0.000000e+00> : vector<1x32xf32>
    %211 = tpu.matmul %209, %210, %cst_174 {dimension_numbers = #tpu.dot_dimension_numbers<[1], [0], [0], [1], [0, 0, 1, 1], [], []>} : vector<1x160xf32>, vector<160x32xf32>, vector<1x32xf32> -> vector<1x32xf32>
    %c0_175 = arith.constant 0 : index
    %c0_176 = arith.constant 0 : index
    %212 = vector.load %arg11[%c0_175, %c0_176] : memref<1x32xf32, #tpu.memory_space<vmem>>, vector<1x32xf32>
    %213 = arith.addf %211, %212 : vector<1x32xf32>
    %cst_177 = arith.constant 0.000000e+00 : f32
    %214 = vector.broadcast %cst_177 : f32 to vector<1x32xf32>
    %215 = arith.maximumf %213, %214 : vector<1x32xf32>
    %c0_178 = arith.constant 0 : index
    %c0_179 = arith.constant 0 : index
    %216 = vector.load %arg12[%c0_178, %c0_179] : memref<32x10xf32, #tpu.memory_space<vmem>>, vector<32x10xf32>
    %cst_180 = arith.constant dense<0.000000e+00> : vector<1x10xf32>
    %217 = tpu.matmul %215, %216, %cst_180 {dimension_numbers = #tpu.dot_dimension_numbers<[1], [0], [0], [1], [0, 0, 1, 1], [], []>} : vector<1x32xf32>, vector<32x10xf32>, vector<1x10xf32> -> vector<1x10xf32>
    %c0_181 = arith.constant 0 : index
    %c0_182 = arith.constant 0 : index
    %218 = vector.load %arg13[%c0_181, %c0_182] : memref<1x10xf32, #tpu.memory_space<vmem>>, vector<1x10xf32>
    %219 = arith.addf %217, %218 : vector<1x10xf32>
    %c0_183 = arith.constant 0 : index
    %c0_184 = arith.constant 0 : index
    %c0_185 = arith.constant 0 : index
    %220 = vector.load %arg14[%c0_183, %c0_184, %c0_185] : memref<1x1x10xf32, #tpu.memory_space<vmem>>, vector<1x1x10xf32>
    %221 = vector.shape_cast %220 : vector<1x1x10xf32> to vector<1x10xf32>
    %222 = vector.shape_cast %219 : vector<1x10xf32> to vector<1x1x10xf32>
    tpu.vector_store %arg14[%c0_183, %c0_184, %c0_185], %222 {strides = array<i32>} : memref<1x1x10xf32, #tpu.memory_space<vmem>>, vector<1x1x10xf32>,
    return
  }
  func.func @transform_0(%arg0: i32) -> (i32, i32, i32) {
    %c0_i32 = arith.constant 0 : i32
    %c0_i32_0 = arith.constant 0 : i32
    %c0_i32_1 = arith.constant 0 : i32
    return %arg0, %c0_i32, %c0_i32_0 : i32, i32, i32
  }
  func.func @transform_1(%arg0: i32) -> (i32, i32, i32) {
    %c0_i32 = arith.constant 0 : i32
    %c0_i32_0 = arith.constant 0 : i32
    %c0_i32_1 = arith.constant 0 : i32
    %c0_i32_2 = arith.constant 0 : i32
    return %c0_i32, %c0_i32_0, %c0_i32_1 : i32, i32, i32
  }
  func.func @transform_2(%arg0: i32) -> (i32, i32) {
    %c0_i32 = arith.constant 0 : i32
    %c0_i32_0 = arith.constant 0 : i32
    %c0_i32_1 = arith.constant 0 : i32
    return %c0_i32, %c0_i32_0 : i32, i32
  }
  func.func @transform_3(%arg0: i32) -> (i32, i32, i32) {
    %c0_i32 = arith.constant 0 : i32
    %c0_i32_0 = arith.constant 0 : i32
    %c0_i32_1 = arith.constant 0 : i32
    %c0_i32_2 = arith.constant 0 : i32
    return %c0_i32, %c0_i32_0, %c0_i32_1 : i32, i32, i32
  }
  func.func @transform_4(%arg0: i32) -> (i32, i32) {
    %c0_i32 = arith.constant 0 : i32
    %c0_i32_0 = arith.constant 0 : i32
    %c0_i32_1 = arith.constant 0 : i32
    return %c0_i32, %c0_i32_0 : i32, i32
  }
  func.func @transform_5(%arg0: i32) -> (i32, i32, i32) {
    %c0_i32 = arith.constant 0 : i32
    %c0_i32_0 = arith.constant 0 : i32
    %c0_i32_1 = arith.constant 0 : i32
    %c0_i32_2 = arith.constant 0 : i32
    return %c0_i32, %c0_i32_0, %c0_i32_1 : i32, i32, i32
  }
  func.func @transform_6(%arg0: i32) -> (i32, i32) {
    %c0_i32 = arith.constant 0 : i32
    %c0_i32_0 = arith.constant 0 : i32
    %c0_i32_1 = arith.constant 0 : i32
    return %c0_i32, %c0_i32_0 : i32, i32
  }
  func.func @transform_7(%arg0: i32) -> (i32, i32) {
    %c0_i32 = arith.constant 0 : i32
    %c0_i32_0 = arith.constant 0 : i32
    %c0_i32_1 = arith.constant 0 : i32
    return %c0_i32, %c0_i32_0 : i32, i32
  }
  func.func @transform_8(%arg0: i32) -> (i32, i32) {
    %c0_i32 = arith.constant 0 : i32
    %c0_i32_0 = arith.constant 0 : i32
    %c0_i32_1 = arith.constant 0 : i32
    return %c0_i32, %c0_i32_0 : i32, i32
  }
  func.func @transform_9(%arg0: i32) -> (i32, i32) {
    %c0_i32 = arith.constant 0 : i32
    %c0_i32_0 = arith.constant 0 : i32
    %c0_i32_1 = arith.constant 0 : i32
    return %c0_i32, %c0_i32_0 : i32, i32
  }
  func.func @transform_10(%arg0: i32) -> (i32, i32) {
    %c0_i32 = arith.constant 0 : i32
    %c0_i32_0 = arith.constant 0 : i32
    %c0_i32_1 = arith.constant 0 : i32
    return %c0_i32, %c0_i32_0 : i32, i32
  }
  func.func @transform_11(%arg0: i32) -> (i32, i32) {
    %c0_i32 = arith.constant 0 : i32
    %c0_i32_0 = arith.constant 0 : i32
    %c0_i32_1 = arith.constant 0 : i32
    return %c0_i32, %c0_i32_0 : i32, i32
  }
  func.func @transform_12(%arg0: i32) -> (i32, i32) {
    %c0_i32 = arith.constant 0 : i32
    %c0_i32_0 = arith.constant 0 : i32
    %c0_i32_1 = arith.constant 0 : i32
    return %c0_i32, %c0_i32_0 : i32, i32
  }
  func.func @transform_13(%arg0: i32) -> (i32, i32, i32) {
    %c0_i32 = arith.constant 0 : i32
    %c0_i32_0 = arith.constant 0 : i32
    %c0_i32_1 = arith.constant 0 : i32
    return %arg0, %c0_i32, %c0_i32_0 : i32, i32, i32
  }
  func.func @transform_14(%arg0: i32) -> (i32, i32, i32) {
    %c0_i32 = arith.constant 0 : i32
    %c0_i32_0 = arith.constant 0 : i32
    %c0_i32_1 = arith.constant 0 : i32
    return %arg0, %c0_i32, %c0_i32_0 : i32, i32, i32
  }
}

</mosaic_0001>

<bundles_post_ra>
// kernel: tpu_custom_call.1
= control target key start
LH: loop header
LB: loop body
LE: loop exit
PB: predicated region body
PF: predicated region fallthrough
CT: control target
= control target key end

     0   :  { %s7660_s0 = inlined_call_operand.vmem [shape: f32[2,320,1], index: 0, kind: input, shape index: {}]   ;;  %s7661_s1 = inlined_call_operand.vmem [shape: f32[4,1,32], index: 1, kind: input, shape index: {}]   ;;  %s7662_s2 = inlined_call_operand.vmem [shape: f32[1,32], index: 2, kind: input, shape index: {}]   ;;  %s7663_s3 = inlined_call_operand.vmem [shape: f32[4,32,48], index: 3, kind: input, shape index: {}]   ;;  %s7664_s4 = inlined_call_operand.vmem [shape: f32[1,48], index: 4, kind: input, shape index: {}]   ;;  %s7665_s5 = inlined_call_operand.vmem [shape: f32[4,48,128], index: 5, kind: input, shape index: {}]   ;;  %s7666_s6 = inlined_call_operand.vmem [shape: f32[1,128], index: 6, kind: input, shape index: {}]   ;;  %s7667_s7 = inlined_call_operand.vmem [shape: f32[320,160], index: 7, kind: input, shape index: {}]   ;;  %s7668_s8 = inlined_call_operand.vmem [shape: f32[1,160], index: 8, kind: input, shape index: {}]   ;;  %s7669_s9 = inlined_call_operand.vmem [shape: f32[160,32], index: 9, kind: input, shape index: {}]   ;;  %s7670_s10 = inlined_call_operand.vmem [shape: f32[1,32], index: 10, kind: input, shape index: {}]   ;;  %s7671_s11 = inlined_call_operand.vmem [shape: f32[32,10], index: 11, kind: input, shape index: {}]   ;;  %s7672_s12 = inlined_call_operand.vmem [shape: f32[1,10], index: 12, kind: input, shape index: {}]   ;;  %s7673_s13 = inlined_call_operand.hbm [shape: f32[2,1,10], index: 13, kind: output, shape index: {0}]   ;;  %s7674_s14 = inlined_call_operand.hbm [shape: f32[2,1,320], index: 14, kind: output, shape index: {1}]  }
   0x1   :  { %7679 = sst [smem:[#allocation13_spill]] %s7660_s0 }
   0x2   :  { %7680 = sst [smem:[#allocation14_spill]] %s7661_s1 }
   0x3   :  { %7681 = sst [smem:[#allocation15_spill]] %s7662_s2 }
   0x4   :  { %7682 = sst [smem:[#allocation16_spill]] %s7663_s3 }
   0x5   :  { %7683 = sst [smem:[#allocation17_spill]] %s7664_s4 }
   0x6   :  { %7684 = sst [smem:[#allocation18_spill]] %s7665_s5 }
   0x7   :  { %7685 = sst [smem:[#allocation19_spill]] %s7666_s6 }
   0x8   :  { %7686 = sst [smem:[#allocation20_spill]] %s7667_s7 }
   0x9   :  { %20 = vsyncpa [#allocation7], 0 }
   0xa   :  { %22 = vsyncpa [#allocation7 + $0x1], 0 }
   0xb   :  { %23 = vsyncpa [#allocation9], 0 }
   0xc   :  { %25 = vsyncpa [#allocation9 + $0x1], 0  ;;  %s5701_s29 = smov 0   ;;  %s5703_s30 = smov 0  }
   0xd   :  { %s5705_s15 = smov 0   ;;  %s5707_s16 = smov 0  }
   0xe LB: > { %s5722_s17 = sadd.s32 4294967295, %s5614_s16   ;;  %s5092_s18 = sadd.s32 4294967294, %s5614_s16   ;;  %s5614_s16 = sphi %s5707_s16, %s7728_s16   ;;  %s5610_s15 = sphi %s5705_s15, %s7727_s15   ;;  %s5606_s30 = sphi %s5703_s30, %s7726_s30   ;;  %s5602_s29 = sphi %s5701_s29, %s7725_s29  }
   0xf   : > { %s5726_s19 = sadd.s32 1, %s5614_s16   ;;  %s316_s20 = sadd.s32 1, %s5610_s15 }
  0x10   : > { %s313_s21 = ssub.s32 %s5614_s16, %s5726_s19  ;;  %p326_p0 = scmp.ne.s32.totalorder %s5610_s15, %s5606_s30 }
  0x11   : > { %p314_p1 = scmp.eq.s32.totalorder %s313_s21, 0  ;;  %p327_p2 = scmp.eq.s32.totalorder %s5722_s17, 1 }
  0x12   : > { %p332_p3 = scmp.ne.s32.totalorder %s5606_s30, %s5602_s29  ;;  %p333_p4 = scmp.eq.s32.totalorder %s5092_s18, 1 }
  0x13   : > { %s5737_s22 = scalar_select %p314_p1, %s5610_s15, %s316_s20  }
  0x14   : > { %p5739_p5 = por %p327_p2, %p326_p0  ;;  %p5743_p6 = por %p333_p4, %p332_p3 }
  0x15   : > { %7687 = sst [smem:[#allocation12_spill]] %s5737_s22  ;;  %p5095_p7 = scmp.ge.s32.totalorder %s5614_s16, 1 }
  0x16   : > { %p421_p8 = scmp.lt.s32.totalorder %s5614_s16, 3 }
  0x18   : > { %p422_p9 = pnand %p5095_p7, %p421_p8 }
  0x19   : > { %p471_p10 = scmp.lt.s32.totalorder (!%p422_p9), %s5722_s17, 1  ;;  %s7690_s0 = sld [smem:[#allocation13_spill]] (!%p422_p9) }
  0x1a   : > { %425 = sbr.rel (%p422_p9) target bundleno = 1855 (0x73f), region = 72  ;;  %s7691_s3 = sld [smem:[#allocation16_spill]] (!%p422_p9) }
  0x1b   : > { %s7692_s1 = sld [smem:[#allocation14_spill]] (!%p422_p9)  ;;  %s7677_s28 = smov (!%p422_p9), 48  }
  0x1c   : > { %s7693_s2 = sld [smem:[#allocation15_spill]] (!%p422_p9)  ;;  %s5622_s21 = smov (!%p422_p9), 64  }
  0x1d   : > { %s7694_s4 = sld [smem:[#allocation17_spill]] (!%p422_p9)  ;;  %s5624_s27 = smov (!%p422_p9), 96  }
  0x1e   : > { %s7695_s5 = sld [smem:[#allocation18_spill]] (!%p422_p9) }
  0x1f   : > { %v5616_v0 = vmov 0   ;;  %s472_s25 = scalar_select %p471_p10, %s5722_s17, 1  ;;  %vm1757_vm0 = vcmask 261120   ;;  %vm2974_vm1 = vcmask 392192   ;;  %vm4329_vm5 = vcmask 785408  }
  0x20   : > { %5501 = vset.pattern.permute.xlu2 %v5616_v0  ;;  %5500 = vset.pattern.permute.xlu1 %v5616_v0  ;;  %v5103_v39 = vld [vmem:[%s7691_s3 + $0x38] sm:$0xff]  ;;  %v5102_v43 = vld [vmem:[%s7691_s3 + $0x30] sm:$0xff]  ;;  %v5101_v44 = vld [vmem:[%s7691_s3 + $0x28] sm:$0xff]  ;;  %s7696_s6 = sld [smem:[#allocation19_spill]]  ;;  %vm4509_vm10 = vcmask 130048  }
  0x21   : > { %5499 = vset.pattern.permute.xlu0 %v5616_v0  ;;  %s5443_s26 = smul.u32 320, %s472_s25  ;;  %5436 = vmatpush.msra.mxu1 %v5103_v39  ;;  %v5100_v45 = vld [vmem:[%s7691_s3 + $0x20] sm:$0xff]  ;;  %s7697_s7 = sld [smem:[#allocation20_spill]] }
  0x22   : > { %1986 = vmatpush.msra.mxu0 %v5103_v39  ;;  %v5815_v51 = vld [vmem:[%s7692_s1] ss:$0 sm:$0xff]  ;;  %v5820_v52 = vld [vmem:[%s7692_s1 + $0x1] ss:$0 sm:$0xff]  ;;  %v5828_v57 = vld [vmem:[%s7692_s1 + $0x2] ss:$0 sm:$0xff] }
  0x23   : > { %s5754_s18 = scalar_lea.vmem %s7690_s0, %s5443_s26  ;;  %5437 = vmatpush.msra.mxu1 %v5102_v43  ;;  %v5840_v0 = vld [vmem:[%s7692_s1 + $0x3] ss:$0 sm:$0xff]  ;;  %s7085_s25 = sand.u32 1, %s5606_s30  }
  0x24   : > { %v1109_v1 = vld [vmem:[%s5754_s18 + $0x111] sm:$0xff]  ;;  %v808_v2 = vld [vmem:[%s5754_s18 + $0x101] sm:$0xff]  ;;  %v1110_v4 = vld [vmem:[%s5754_s18 + $0x119] sm:$0xff]  ;;  %1987 = vmatpush.msra.mxu0 %v5102_v43  ;;  %s5442_s26 = smul.u32 3, %s7085_s25  ;;  %s7675_s0 = smov 32  }
  0x25   : > { %v508_v3 = vld [vmem:[%s5754_s18 + $0x100] sm:$0xff]  ;;  %1278 = vperm.xlu2 %5501, %v1109_v1   ;;  %977 = vperm.xlu1 %5500, %v808_v2   ;;  %v809_v5 = vld [vmem:[%s5754_s18 + $0x109] sm:$0xff]  ;;  %v1410_v9 = vld [vmem:[%s5754_s18 + $0x112] sm:$0xff] }
  0x26   : > { %676 = vperm.xlu0 %5499, %v508_v3   ;;  %v509_v6 = vld [vmem:[%s5754_s18 + $0x108] sm:$0xff]  ;;  %v1411_v7 = vld [vmem:[%s5754_s18 + $0x11a] sm:$0xff]  ;;  %v510_v8 = vld [vmem:[%s5754_s18 + $0x110] sm:$0xff]  ;;  %5438 = vmatpush.msra.mxu1 %v5101_v44  ;;  %s7100_s20 = scalar_lea.vmem [#allocation8], %s5442_s26  ;;  %s5444_s26 = smul.u32 3, %s5722_s17 }
  0x27   : > { %v1111_v10 = vld [vmem:[%s5754_s18 + $0x121] sm:$0xff]  ;;  %v478_v11 = vld [vmem:[%s5754_s18 + $0x10] sm:$0xff]  ;;  %v779_v13 = vld [vmem:[%s5754_s18 + $0x19] sm:$0xff]  ;;  %1988 = vmatpush.msra.mxu0 %v5101_v44 }
  0x28   : > { %v778_v12 = vld [vmem:[%s5754_s18 + $0x11] sm:$0xff]  ;;  %v1079_v15 = vld [vmem:[%s5754_s18 + $0x21] sm:$0xff]  ;;  %v1080_v16 = vld [vmem:[%s5754_s18 + $0x29] sm:$0xff]  ;;  %5439 = vmatpush.msra.mxu1 %v5100_v45 }
  0x29   : > { %v479_v14 = vld [vmem:[%s5754_s18 + $0x18] sm:$0xff]  ;;  %v1412_v17 = vld [vmem:[%s5754_s18 + $0x122] sm:$0xff]  ;;  %v1381_v22 = vld [vmem:[%s5754_s18 + $0x2a] sm:$0xff]  ;;  %1989 = vmatpush.msra.mxu0 %v5100_v45 }
  0x2a   : > { %v776_v18 = vld [vmem:[%s5754_s18 + $0x1] sm:$0xff]  ;;  %v1378_v23 = vld [vmem:[%s5754_s18 + $0x12] sm:$0xff]  ;;  %v777_v25 = vld [vmem:[%s5754_s18 + $0x9] sm:$0xff] }
  0x2b   : > { %v1380_v19 = vld [vmem:[%s5754_s18 + $0x22] sm:$0xff]  ;;  %v1081_v24 = vld [vmem:[%s5754_s18 + $0x31] sm:$0xff]  ;;  %v1082_v29 = vld [vmem:[%s5754_s18 + $0x39] sm:$0xff] }
  0x2c   : > { %v476_v20 = vld [vmem:[%s5754_s18] sm:$0xff]  ;;  %v1382_v26 = vld [vmem:[%s5754_s18 + $0x32] sm:$0xff]  ;;  %v477_v27 = vld [vmem:[%s5754_s18 + $0x8] sm:$0xff] }
  0x2d   : > { %1283 = vperm.xlu2 %5501, %v1110_v4   ;;  %982 = vperm.xlu1 %5500, %v809_v5   ;;  %v480_v21 = vld [vmem:[%s5754_s18 + $0x20] sm:$0xff]  ;;  %v481_v28 = vld [vmem:[%s5754_s18 + $0x28] sm:$0xff]  ;;  %v482_v34 = vld [vmem:[%s5754_s18 + $0x30] sm:$0xff] }
  0x2e   : > { %681 = vperm.xlu0 %5499, %v509_v6   ;;  %v1383_v30 = vld [vmem:[%s5754_s18 + $0x3a] sm:$0xff]  ;;  %v1384_v37 = vld [vmem:[%s5754_s18 + $0x42] sm:$0xff]  ;;  %v1385_v40 = vld [vmem:[%s5754_s18 + $0x4a] sm:$0xff] }
  0x2f   : > { %v1379_v31 = vld [vmem:[%s5754_s18 + $0x1a] sm:$0xff]  ;;  %v1084_v42 = vld [vmem:[%s5754_s18 + $0x49] sm:$0xff]  ;;  %v1085_v49 = vld [vmem:[%s5754_s18 + $0x51] sm:$0xff] }
  0x30   : > { %v1083_v33 = vld [vmem:[%s5754_s18 + $0x41] sm:$0xff]  ;;  %v483_v36 = vld [vmem:[%s5754_s18 + $0x38] sm:$0xff]  ;;  %v5850_v6 = vld [vmem:[%s7693_s2] ss:$0 sm:$0xff] }
  0x31   : > { %v484_v41 = vld [vmem:[%s5754_s18 + $0x40] sm:$0xff]  ;;  %v1386_v50 = vld [vmem:[%s5754_s18 + $0x52] sm:$0xff]  ;;  %v485_v62 = vld [vmem:[%s5754_s18 + $0x48] sm:$0xff] }
  0x32   : > { %v5834_v61 = vld [vmem:[%s5754_s18 + $0x59] sm:$0xff] }
  0x35   : > { %1584 = vperm.xlu1 %5500, %v1411_v7   ;;  %686 = vperm.xlu2 %5501, %v510_v8  }
  0x36   : > { %1579 = vperm.xlu0 %5499, %v1410_v9  }
  0x3d   : > { %1288 = vperm.xlu1 %5500, %v1111_v10   ;;  %526 = vperm.xlu2 %5501, %v478_v11  }
  0x3e   : > { %987 = vperm.xlu0 %5499, %v1109_v1  }
  0x45   : > { %827 = vperm.xlu1 %5500, %v778_v12   ;;  %832 = vperm.xlu2 %5501, %v779_v13  }
  0x46   : > { %531 = vperm.xlu0 %5499, %v479_v14  }
  0x4d   : > { %1128 = vperm.xlu1 %5500, %v1079_v15   ;;  %1133 = vperm.xlu2 %5501, %v1080_v16  }
  0x4e   : > { %1589 = vperm.xlu0 %5499, %v1412_v17  }
  0x55   : > { %817 = vperm.xlu1 %5500, %v776_v18   ;;  %1429 = vperm.xlu2 %5501, %v1380_v19  }
  0x56   : > { %516 = vperm.xlu0 %5499, %v476_v20  }
  0x5d   : > { %1118 = vperm.xlu1 %5500, %v778_v12   ;;  %536 = vperm.xlu2 %5501, %v480_v21  }
  0x5e   : > { %1434 = vperm.xlu0 %5499, %v1381_v22  }
  0x65   : > { %1419 = vperm.xlu1 %5500, %v1378_v23   ;;  %1138 = vperm.xlu2 %5501, %v1081_v24   ;;  %v1388_v23 = vld [vmem:[%s5754_s18 + $0x62] sm:$0xff] }
  0x66   : > { %837 = vperm.xlu0 %5499, %v1079_v15   ;;  %v1387_v15 = vld [vmem:[%s5754_s18 + $0x5a] sm:$0xff] }
  0x6d   : > { %822 = vperm.xlu1 %5500, %v777_v25   ;;  %1439 = vperm.xlu2 %5501, %v1382_v26   ;;  %v1087_v25 = vld [vmem:[%s5754_s18 + $0x61] sm:$0xff] }
  0x6e   : > { %521 = vperm.xlu0 %5499, %v477_v27  }
  0x75   : > { %541 = vperm.xlu1 %5500, %v481_v28   ;;  %842 = vperm.xlu2 %5501, %v1080_v16  }
  0x76   : > { %1123 = vperm.xlu0 %5499, %v779_v13   ;;  %v486_v13 = vld [vmem:[%s5754_s18 + $0x50] sm:$0xff] }
  0x7d   : > { %1143 = vperm.xlu1 %5500, %v1082_v29   ;;  %1444 = vperm.xlu2 %5501, %v1383_v30  }
  0x7e   : > { %1424 = vperm.xlu0 %5499, %v1379_v31   ;;  %v5175_v31 = vld [vmem:[%s7691_s3 + $0x58] sm:$0xff] }
  0x7f   : > { %v1279_v32 = vpop.permute.xlu2 %1278  ;;  %2467 = vmatpush.msra.mxu2 %v5175_v31 }
  0x80   : > { %v1336_v1 = vmul.f32 %v5828_v57, %v1279_v32  ;;  %v5213_v32 = vld [vmem:[%s7691_s3 + $0x78] sm:$0xff] }
  0x81   : > { %2761 = vmatpush.msra.mxu3 %v5213_v32 }
  0x85   : > { %847 = vperm.xlu1 %5500, %v1081_v24   ;;  %1148 = vperm.xlu2 %5501, %v1083_v33   ;;  %v487_v24 = vld [vmem:[%s5754_s18 + $0x58] sm:$0xff] }
  0x86   : > { %546 = vperm.xlu0 %5499, %v482_v34   ;;  %v1389_v34 = vld [vmem:[%s5754_s18 + $0x6a] sm:$0xff] }
  0x87   : > { %v1284_v35 = vpop.permute.xlu2 %1283 }
  0x88   : > { %v1337_v3 = vmul.f32 %v5828_v57, %v1284_v35 }
  0x8d   : > { %551 = vperm.xlu1 %5500, %v483_v36   ;;  %852 = vperm.xlu2 %5501, %v1082_v29   ;;  %v5174_v36 = vld [vmem:[%s7691_s3 + $0x50] sm:$0xff] }
  0x8e   : > { %1449 = vperm.xlu0 %5499, %v1384_v37   ;;  %v5212_v37 = vld [vmem:[%s7691_s3 + $0x70] sm:$0xff]  ;;  %2468 = vmatpush.msra.mxu2 %v5174_v36 }
  0x8f   : > { %v5791_v38 = vpop.permute.xlu2 %686  ;;  %2762 = vmatpush.msra.mxu3 %v5212_v37 }
  0x90   : > { %v736_v35 = vmul.f32 %v5815_v51, %v5791_v38  ;;  %v5211_v38 = vld [vmem:[%s7691_s3 + $0x68] sm:$0xff] }
  0x91   : > { %2763 = vmatpush.msra.mxu3 %v5211_v38 }
  0x95   : > { %1454 = vperm.xlu1 %5500, %v1385_v40   ;;  %556 = vperm.xlu2 %5501, %v484_v41   ;;  %v5173_v41 = vld [vmem:[%s7691_s3 + $0x48] sm:$0xff] }
  0x96   : > { %1153 = vperm.xlu0 %5499, %v1084_v42   ;;  %2469 = vmatpush.msra.mxu2 %v5173_v41 }
  0x97   : > { %v978_v46 = vpop.permute.xlu1 %977  ;;  %v5808_v47 = vpop.permute.xlu2 %526 }
  0x98   : > { %v677_v48 = vpop.permute.xlu0 %676  ;;  %v1035_v58 = vmul.f32 %v5820_v52, %v978_v46  ;;  %v5172_v46 = vld [vmem:[%s7691_s3 + $0x40] sm:$0xff] }
  0x99   : > { %v734_v59 = vmul.f32 %v5815_v51, %v677_v48  ;;  %v5210_v48 = vld [vmem:[%s7691_s3 + $0x60] sm:$0xff]  ;;  %2470 = vmatpush.msra.mxu2 %v5172_v46 }
  0x9a   : > { %2764 = vmatpush.msra.mxu3 %v5210_v48 }
  0x9b   : > { %v1072_v2 = vadd.f32 %v1035_v58, %v734_v59 }
  0x9d   : > { %1158 = vperm.xlu1 %5500, %v1085_v49   ;;  %1459 = vperm.xlu2 %5501, %v1386_v50   ;;  %v1373_v10 = vadd.f32 %v1336_v1, %v1072_v2 }
  0x9e   : > { %857 = vperm.xlu0 %5499, %v1083_v33   ;;  %v1088_v33 = vld [vmem:[%s5754_s18 + $0x69] sm:$0xff] }
  0x9f   : > { %v983_v53 = vpop.permute.xlu1 %982  ;;  %v5822_v54 = vpop.permute.xlu2 %832 }
  0xa0   : > { %v1036_v55 = vmul.f32 %v5820_v52, %v983_v53  ;;  %v682_v56 = vpop.permute.xlu0 %681 }
  0xa1   : > { %v735_v60 = vmul.f32 %v5815_v51, %v682_v56  ;;  %v1832_v56 = vld [vmem:[%s7691_s3 + $0x18] sm:$0xff] }
  0xa2   : > { %2207 = vmatpush.msrb.mxu1 %v1832_v56 }
  0xa3   : > { %v1073_v63 = vadd.f32 %v1036_v55, %v735_v60  ;;  %v5909_v60 = vld [vmem:[%s5754_s18 + $0x71] sm:$0xff] }
  0xa5   : > { %862 = vperm.xlu1 %5500, %v1084_v42   ;;  %1163 = vperm.xlu2 %5501, %v5834_v61   ;;  %v1374_v7 = vadd.f32 %v1337_v3, %v1073_v63  ;;  %v704_v42 = vmul.f32 %v5815_v51, %v5808_v47  ;;  %v1831_v63 = vld [vmem:[%s7691_s3 + $0x10] sm:$0xff]  ;;  %v1830_v3 = vld [vmem:[%s7691_s3 + $0x8] sm:$0xff] }
  0xa6   : > { %561 = vperm.xlu0 %5499, %v485_v62   ;;  %v488_v62 = vld [vmem:[%s5754_s18 + $0x60] sm:$0xff]  ;;  %2208 = vmatpush.msrb.mxu1 %v1831_v63 }
  0xa7   : > { %v1585_v4 = vpop.permute.xlu1 %1584  ;;  %v5845_v5 = vpop.permute.xlu2 %1133 }
  0xa8   : > { %v1638_v8 = vmul.f32 %v5840_v0, %v1585_v4  ;;  %v1580_v9 = vpop.permute.xlu0 %1579  ;;  %2209 = vmatpush.msrb.mxu1 %v1830_v3 }
  0xa9   : > { %v1637_v11 = vmul.f32 %v5840_v0, %v1580_v9 }
  0xaa   : > { %v1675_v12 = vadd.f32 %v1638_v8, %v1374_v7  ;;  %v1829_v7 = vld [vmem:[%s7691_s3] sm:$0xff]  ;;  %s4977_s3 = scalar_lea.sflag [#allocation9], %s7085_s25 }
  0xab   : > { %v1674_v14 = vadd.f32 %v1637_v11, %v1373_v10  ;;  %2210 = vmatpush.msrb.mxu1 %v1829_v7 }
  0xac   : > { %v1716_v16 = vadd.f32 %v5850_v6, %v1675_v12 }
  0xad   : > { %v1715_v17 = vadd.f32 %v5850_v6, %v1674_v14  ;;  %566 = vperm.xlu1 %5500, %v486_v13   ;;  %867 = vperm.xlu2 %5501, %v1085_v49   ;;  %v489_v14 = vld [vmem:[%s5754_s18 + $0x68] sm:$0xff] }
  0xae   : > { %v1753_v18 = vmax.f32 %v1716_v16, 0.0  ;;  %1464 = vperm.xlu0 %5499, %v1387_v15   ;;  %v1006_v15 = vmul.f32 %v5820_v52, %v5822_v54  ;;  %v1390_v16 = vld [vmem:[%s5754_s18 + $0x72] sm:$0xff] }
  0xaf   : > { %v1752_v19 = vmax.f32 %v1715_v17, 0.0  ;;  %v1289_v20 = vpop.permute.xlu1 %1288  ;;  %v1430_v21 = vpop.permute.xlu2 %1429 }
  0xb0   : > { %1791 = vst.msk [vmem:[#allocation2 + $0x108] sm:$0xff] %vm1757_vm0, %v1753_v18  ;;  %v988_v22 = vpop.permute.xlu0 %987  ;;  %v1338_v43 = vmul.f32 %v5828_v57, %v1289_v20  ;;  %v1607_v58 = vmul.f32 %v5840_v0, %v1430_v21  ;;  %v1307_v18 = vmul.f32 %v5828_v57, %v5845_v5 }
  0xb1   : > { %1790 = vst.msk [vmem:[#allocation2 + $0x100] sm:$0xff] %vm1757_vm0, %v1752_v19  ;;  %v1037_v30 = vmul.f32 %v5820_v52, %v988_v22 }
  0xb3   : > { %v1074_v40 = vadd.f32 %v1037_v30, %v736_v35  ;;  %v1090_v30 = vld [vmem:[%s5754_s18 + $0x79] sm:$0xff] }
  0xb5   : > { %1469 = vperm.xlu1 %5500, %v1388_v23   ;;  %571 = vperm.xlu2 %5501, %v487_v24   ;;  %v1375_v53 = vadd.f32 %v1338_v43, %v1074_v40  ;;  %v1392_v43 = vld [vmem:[%s5754_s18 + $0x82] sm:$0xff] }
  0xb6   : > { %1168 = vperm.xlu0 %5499, %v1087_v25  }
  0xb7   : > { %v828_v26 = vpop.permute.xlu1 %827  ;;  %v5863_v27 = vpop.permute.xlu2 %536 }
  0xb8   : > { %v532_v28 = vpop.permute.xlu0 %531  ;;  %v1865_v29 = vld [vmem:[#allocation2 + $0x101] sm:$0xff]  ;;  %v1005_v39 = vmul.f32 %v5820_v52, %v828_v26  ;;  %v706_v40 = vmul.f32 %v5815_v51, %v5863_v27 }
  0xb9   : > { %5136 = vmatmul.msk.f32.vlgmr.msra.gmra.mxu1 %vm1757_vm0, %v1865_v29  ;;  %v705_v13 = vmul.f32 %v5815_v51, %v532_v28  ;;  %v1391_v26 = vld [vmem:[%s5754_s18 + $0x7a] sm:$0xff]  ;;  %v490_v28 = vld [vmem:[%s5754_s18 + $0x70] sm:$0xff] }
  0xba   : > { %v1042_v47 = vadd.f32 %v1005_v39, %v704_v42  ;;  %v1091_v42 = vld [vmem:[%s5754_s18 + $0x81] sm:$0xff] }
  0xbb   : > { %v1043_v17 = vadd.f32 %v1006_v15, %v705_v13 }
  0xbd   : > { %1173 = vperm.xlu1 %5500, %v1088_v33   ;;  %1474 = vperm.xlu2 %5501, %v1389_v34   ;;  %v1344_v23 = vadd.f32 %v1307_v18, %v1043_v17 }
  0xbe   : > { %872 = vperm.xlu0 %5499, %v5834_v61  }
  0xbf   : > { %v1129_v44 = vpop.permute.xlu1 %1128  ;;  %v5894_v45 = vpop.permute.xlu2 %1138 }
  0xc0   : > { %v1306_v49 = vmul.f32 %v5828_v57, %v1129_v44  ;;  %v1590_v50 = vpop.permute.xlu0 %1589  ;;  %v1308_v44 = vmul.f32 %v5828_v57, %v5894_v45 }
  0xc1   : > { %v1639_v55 = vmul.f32 %v5840_v0, %v1590_v50 }
  0xc2   : > { %v1343_v59 = vadd.f32 %v1306_v49, %v1042_v47 }
  0xc3   : > { %v1676_v61 = vadd.f32 %v1639_v55, %v1375_v53 }
  0xc4   : > { %v1644_v1 = vadd.f32 %v1607_v58, %v1343_v59 }
  0xc5   : > { %v1717_v2 = vadd.f32 %v5850_v6, %v1676_v61  ;;  %877 = vperm.xlu1 %5500, %v1087_v25   ;;  %1178 = vperm.xlu2 %5501, %v5909_v60   ;;  %v1092_v61 = vld [vmem:[%s5754_s18 + $0x89] sm:$0xff] }
  0xc6   : > { %v1685_v4 = vadd.f32 %v5850_v6, %v1644_v1  ;;  %576 = vperm.xlu0 %5499, %v488_v62   ;;  %v491_v62 = vld [vmem:[%s5754_s18 + $0x78] sm:$0xff] }
  0xc7   : > { %v1754_v8 = vmax.f32 %v1717_v2, 0.0  ;;  %v818_v9 = vpop.permute.xlu1 %817  ;;  %v1440_v10 = vpop.permute.xlu2 %1439 }
  0xc8   : > { %v1722_v11 = vmax.f32 %v1685_v4, 0.0  ;;  %v517_v12 = vpop.permute.xlu0 %516  ;;  %v1003_v54 = vmul.f32 %v5820_v52, %v818_v9  ;;  %v1609_v47 = vmul.f32 %v5840_v0, %v1440_v10 }
  0xc9   : > { %1792 = vst.msk [vmem:[#allocation2 + $0x110] sm:$0xff] %vm1757_vm0, %v1754_v8  ;;  %v702_v25 = vmul.f32 %v5815_v51, %v517_v12  ;;  %v492_v8 = vld [vmem:[%s5754_s18 + $0x80] sm:$0xff]  ;;  %v1393_v12 = vld [vmem:[%s5754_s18 + $0x8a] sm:$0xff] }
  0xca   : > { %1760 = vst.msk [vmem:[#allocation2 + $0x10] sm:$0xff] %vm1757_vm0, %v1722_v11 }
  0xcb   : > { %v1040_v32 = vadd.f32 %v1003_v54, %v702_v25  ;;  %v1394_v25 = vld [vmem:[%s5754_s18 + $0x92] sm:$0xff] }
  0xcd   : > { %581 = vperm.xlu1 %5500, %v489_v14   ;;  %882 = vperm.xlu2 %5501, %v1088_v33  }
  0xce   : > { %1479 = vperm.xlu0 %5499, %v1390_v16  }
  0xcf   : > { %v1119_v19 = vpop.permute.xlu1 %1118  ;;  %v5933_v20 = vpop.permute.xlu2 %842 }
  0xd0   : > { %v1435_v21 = vpop.permute.xlu0 %1434  ;;  %v1866_v22 = vld [vmem:[#allocation2 + $0x109] sm:$0xff]  ;;  %v1304_v5 = vmul.f32 %v5828_v57, %v1119_v19  ;;  %v1008_v14 = vmul.f32 %v5820_v52, %v5933_v20 }
  0xd1   : > { %v1608_v24 = vmul.f32 %v5840_v0, %v1435_v21  ;;  %5137 = vmatmul.msk.f32.gmra.mxu1 %vm1757_vm0, %v1866_v22 }
  0xd2   : > { %v1341_v36 = vadd.f32 %v1304_v5, %v1040_v32 }
  0xd3   : > { %v1645_v29 = vadd.f32 %v1608_v24, %v1344_v23 }
  0xd5   : > { %v1686_v31 = vadd.f32 %v5850_v6, %v1645_v29  ;;  %1484 = vperm.xlu1 %5500, %v1391_v26   ;;  %586 = vperm.xlu2 %5501, %v490_v28   ;;  %v493_v26 = vld [vmem:[%s5754_s18 + $0x88] sm:$0xff]  ;;  %v1093_v29 = vld [vmem:[%s5754_s18 + $0x91] sm:$0xff] }
  0xd6   : > { %1183 = vperm.xlu0 %5499, %v1090_v30  }
  0xd7   : > { %v1723_v33 = vmax.f32 %v1686_v31, 0.0  ;;  %v1420_v34 = vpop.permute.xlu1 %1419  ;;  %v5944_v35 = vpop.permute.xlu2 %1444 }
  0xd8   : > { %v1605_v37 = vmul.f32 %v5840_v0, %v1420_v34  ;;  %v838_v39 = vpop.permute.xlu0 %837  ;;  %v1610_v24 = vmul.f32 %v5840_v0, %v5944_v35 }
  0xd9   : > { %1761 = vst.msk [vmem:[#allocation2 + $0x18] sm:$0xff] %vm1757_vm0, %v1723_v33  ;;  %v1007_v41 = vmul.f32 %v5820_v52, %v838_v39  ;;  %v1094_v39 = vld [vmem:[%s5754_s18 + $0x99] sm:$0xff] }
  0xda   : > { %v1642_v38 = vadd.f32 %v1605_v37, %v1341_v36 }
  0xdb   : > { %v1044_v46 = vadd.f32 %v1007_v41, %v706_v40  ;;  %v1395_v40 = vld [vmem:[%s5754_s18 + $0x9a] sm:$0xff] }
  0xdc   : > { %v1683_v48 = vadd.f32 %v5850_v6, %v1642_v38 }
  0xdd   : > { %v1345_v49 = vadd.f32 %v1308_v44, %v1044_v46  ;;  %1188 = vperm.xlu1 %5500, %v1091_v42   ;;  %1489 = vperm.xlu2 %5501, %v1392_v43  }
  0xde   : > { %v1720_v27 = vmax.f32 %v1683_v48, 0.0  ;;  %887 = vperm.xlu0 %5499, %v5909_v60  }
  0xdf   : > { %v1646_v50 = vadd.f32 %v1609_v47, %v1345_v49  ;;  %v823_v53 = vpop.permute.xlu1 %822  ;;  %v5958_v55 = vpop.permute.xlu2 %1148 }
  0xe0   : > { %1758 = vst.msk [vmem:[#allocation2] sm:$0xff] %vm1757_vm0, %v1720_v27  ;;  %v522_v45 = vpop.permute.xlu0 %521  ;;  %v5961_v56 = vld [vmem:[#allocation2 + $0x11] sm:$0xff]  ;;  %v1004_v4 = vmul.f32 %v5820_v52, %v823_v53  ;;  %v1310_v38 = vmul.f32 %v5828_v57, %v5958_v55  ;;  %v6018_v55 = vld [vmem:[%s5754_s18 + $0xa1] sm:$0xff] }
  0xe1   : > { %v2608_v58 = vld [vmem:[#allocation2 + $0x12] sm:$0xff]  ;;  %v1687_v59 = vadd.f32 %v5850_v6, %v1646_v50  ;;  %5176 = vmatmul.msk.f32.vlgmr.msra.gmra.mxu2 %vm1757_vm0, %v5961_v56  ;;  %v703_v7 = vmul.f32 %v5815_v51, %v522_v45 }
  0xe2   : > { %5214 = vmatmul.msk.f32.vlgmr.msra.gmra.mxu3 %vm1757_vm0, %v2608_v58  ;;  %v494_v45 = vld [vmem:[%s5754_s18 + $0x90] sm:$0xff] }
  0xe3   : > { %v1724_v60 = vmax.f32 %v1687_v59, 0.0  ;;  %v1041_v15 = vadd.f32 %v1004_v4, %v703_v7  ;;  %v1797_v4 = vld [vmem:[#allocation2 + $0x10] sm:$0xff] }
  0xe5   : > { %1762 = vst.msk [vmem:[#allocation2 + $0x20] sm:$0xff] %vm1757_vm0, %v1724_v60  ;;  %892 = vperm.xlu1 %5500, %v1090_v30   ;;  %1193 = vperm.xlu2 %5501, %v1092_v61  }
  0xe6   : > { %591 = vperm.xlu0 %5499, %v491_v62  }
  0xe7   : > { %v542_v63 = vpop.permute.xlu1 %541  ;;  %v5970_v1 = vpop.permute.xlu2 %852  ;;  %v1795_v2 = vld [vmem:[#allocation2] sm:$0xff] }
  0xe8   : > { %v1124_v3 = vpop.permute.xlu0 %1123  ;;  %5138 = vmatmul.msk.f32.vlgmr.msrb.gmra.mxu1 %vm1757_vm0, %v1795_v2  ;;  %v707_v9 = vmul.f32 %v5815_v51, %v542_v63 }
  0xe9   : > { %v1305_v13 = vmul.f32 %v5828_v57, %v1124_v3 }
  0xea   : > { %v1045_v18 = vadd.f32 %v1008_v14, %v707_v9 }
  0xeb   : > { %v1342_v22 = vadd.f32 %v1305_v13, %v1041_v15 }
  0xec   : > { %v5977_v10 = vld [vmem:[#allocation2 + $0x19] sm:$0xff] }
  0xed   : > { %v2609_v11 = vld [vmem:[#allocation2 + $0x1a] sm:$0xff]  ;;  %5177 = vmatmul.msk.f32.gmra.mxu2 %vm1757_vm0, %v5977_v10  ;;  %596 = vperm.xlu1 %5500, %v492_v8  }
  0xee   : > { %5215 = vmatmul.msk.f32.gmra.mxu3 %vm1757_vm0, %v2609_v11  ;;  %897 = vperm.xlu2 %5501, %v1091_v42   ;;  %v495_v11 = vld [vmem:[%s5754_s18 + $0x98] sm:$0xff] }
  0xef   : > { %1494 = vperm.xlu0 %5499, %v1393_v12   ;;  %v1144_v16 = vpop.permute.xlu1 %1143  ;;  %v5986_v17 = vpop.permute.xlu2 %556  ;;  %v1396_v12 = vld [vmem:[%s5754_s18 + $0xa2] sm:$0xff] }
  0xf0   : > { %v1309_v19 = vmul.f32 %v5828_v57, %v1144_v16  ;;  %v1425_v21 = vpop.permute.xlu0 %1424 }
  0xf1   : > { %v1606_v23 = vmul.f32 %v5840_v0, %v1425_v21 }
  0xf2   : > { %v1346_v20 = vadd.f32 %v1309_v19, %v1045_v18  ;;  %v1798_v19 = vld [vmem:[#allocation2 + $0x18] sm:$0xff] }
  0xf3   : > { %v1643_v54 = vadd.f32 %v1606_v23, %v1342_v22  ;;  %v710_v23 = vmul.f32 %v5815_v51, %v5986_v17  ;;  %v496_v17 = vld [vmem:[%s5754_s18 + $0xa0] sm:$0xff] }
  0xf4   : > { %v1647_v28 = vadd.f32 %v1610_v24, %v1346_v20 }
  0xf5   : > { %v1684_v30 = vadd.f32 %v5850_v6, %v1643_v54  ;;  %1499 = vperm.xlu1 %5500, %v1394_v25  }
  0xf6   : > { %v1688_v5 = vadd.f32 %v5850_v6, %v1647_v28  ;;  %601 = vperm.xlu2 %5501, %v493_v26   ;;  %v1397_v26 = vld [vmem:[%s5754_s18 + $0xaa] sm:$0xff] }
  0xf7   : > { %v1721_v31 = vmax.f32 %v1684_v30, 0.0  ;;  %1198 = vperm.xlu0 %5499, %v1093_v29   ;;  %v848_v32 = vpop.permute.xlu1 %847  ;;  %v5997_v33 = vpop.permute.xlu2 %1459  ;;  %v1096_v28 = vld [vmem:[%s5754_s18 + $0xa9] sm:$0xff] }
  0xf8   : > { %v1725_v34 = vmax.f32 %v1688_v5, 0.0  ;;  %v547_v35 = vpop.permute.xlu0 %546  ;;  %v1009_v36 = vmul.f32 %v5820_v52, %v848_v32 }
  0xf9   : > { %1759 = vst.msk [vmem:[#allocation2 + $0x8] sm:$0xff] %vm1757_vm0, %v1721_v31  ;;  %v708_v37 = vmul.f32 %v5815_v51, %v547_v35 }
  0xfa   : > { %1763 = vst.msk [vmem:[#allocation2 + $0x28] sm:$0xff] %vm1757_vm0, %v1725_v34  ;;  %v1799_v34 = vld [vmem:[#allocation2 + $0x20] sm:$0xff] }
  0xfb   : > { %v1046_v41 = vadd.f32 %v1009_v36, %v708_v37 }
  0xfd   : > { %1203 = vperm.xlu1 %5500, %v1094_v39   ;;  %v1347_v47 = vadd.f32 %v1310_v38, %v1046_v41  ;;  %v1097_v41 = vld [vmem:[%s5754_s18 + $0xb1] sm:$0xff] }
  0xfe   : > { %1504 = vperm.xlu2 %5501, %v1395_v40   ;;  %v1398_v38 = vld [vmem:[%s5754_s18 + $0xb2] sm:$0xff] }
  0xff   : > { %902 = vperm.xlu0 %5499, %v1092_v61   ;;  %v552_v42 = vpop.permute.xlu1 %551  ;;  %v6007_v43 = vpop.permute.xlu2 %1163  ;;  %v1010_v61 = vmul.f32 %v5820_v52, %v5970_v1 }
 0x100   : > { %v1450_v44 = vpop.permute.xlu0 %1449  ;;  %v1833_v46 = vld [vmem:[#allocation2 + $0x1] sm:$0xff]  ;;  %v709_v58 = vmul.f32 %v5815_v51, %v552_v42  ;;  %v1834_v3 = vld [vmem:[#allocation2 + $0x9] sm:$0xff] }
 0x101   : > { %v1796_v48 = vld [vmem:[#allocation2 + $0x8] sm:$0xff]  ;;  %v1611_v49 = vmul.f32 %v5840_v0, %v1450_v44  ;;  %5104 = vmatmul.msk.f32.vlgmr.msra.gmra.mxu0 %vm1757_vm0, %v1833_v46 }
 0x102   : > { %5139 = vmatmul.msk.f32.gmra.mxu1 %vm1757_vm0, %v1796_v48  ;;  %v6012_v27 = vld [vmem:[#allocation2 + $0x21] sm:$0xff]  ;;  %v1047_v7 = vadd.f32 %v1010_v61, %v709_v58 }
 0x103   : > { %v2610_v50 = vld [vmem:[#allocation2 + $0x22] sm:$0xff]  ;;  %5178 = vmatmul.msk.f32.gmra.mxu2 %vm1757_vm0, %v6012_v27  ;;  %v1648_v53 = vadd.f32 %v1611_v49, %v1347_v47 }
 0x104   : > { %5216 = vmatmul.msk.f32.gmra.mxu3 %vm1757_vm0, %v2610_v50  ;;  %v1800_v47 = vld [vmem:[#allocation2 + $0x28] sm:$0xff] }
 0x105   : > { %v1689_v59 = vadd.f32 %v5850_v6, %v1648_v53  ;;  %907 = vperm.xlu1 %5500, %v1093_v29   ;;  %v1613_v29 = vmul.f32 %v5840_v0, %v5997_v33 }
 0x106   : > { %1208 = vperm.xlu2 %5501, %v6018_v55  }
 0x107   : > { %v1726_v60 = vmax.f32 %v1689_v59, 0.0  ;;  %606 = vperm.xlu0 %5499, %v494_v45   ;;  %v1455_v62 = vpop.permute.xlu1 %1454  ;;  %v6026_v63 = vpop.permute.xlu2 %867  ;;  %v6079_v45 = vld [vmem:[%s5754_s18 + $0xb9] sm:$0xff]  ;;  %v497_v59 = vld [vmem:[%s5754_s18 + $0xa8] sm:$0xff] }
 0x108   : > { %v1154_v2 = vpop.permute.xlu0 %1153  ;;  %v1612_v1 = vmul.f32 %v5840_v0, %v1455_v62 }
 0x109   : > { %1764 = vst.msk [vmem:[#allocation2 + $0x30] sm:$0xff] %vm1757_vm0, %v1726_v60  ;;  %v1311_v8 = vmul.f32 %v5828_v57, %v1154_v2  ;;  %5105 = vmatmul.msk.f32.gmra.mxu0 %vm1757_vm0, %v1834_v3 }
 0x10a   : > { %5140 = vmatmul.msk.f32.gmra.mxu1 %vm1757_vm0, %v1797_v4 }
 0x10b   : > { %v1348_v9 = vadd.f32 %v1311_v8, %v1047_v7 }
 0x10d   : > { %v1649_v13 = vadd.f32 %v1612_v1, %v1348_v9  ;;  %611 = vperm.xlu1 %5500, %v495_v11   ;;  %v498_v9 = vld [vmem:[%s5754_s18 + $0xb0] sm:$0xff]  ;;  %v1399_v11 = vld [vmem:[%s5754_s18 + $0xba] sm:$0xff] }
 0x10e   : > { %912 = vperm.xlu2 %5501, %v1094_v39  }
 0x10f   : > { %v1690_v14 = vadd.f32 %v5850_v6, %v1649_v13  ;;  %1509 = vperm.xlu0 %5499, %v1396_v12   ;;  %v1159_v15 = vpop.permute.xlu1 %1158  ;;  %v6036_v16 = vpop.permute.xlu2 %571 }
 0x110   : > { %v858_v18 = vpop.permute.xlu0 %857  ;;  %v6038_v21 = vld [vmem:[#allocation2 + $0x29] sm:$0xff]  ;;  %v1312_v54 = vmul.f32 %v5828_v57, %v1159_v15 }
 0x111   : > { %v2611_v22 = vld [vmem:[#allocation2 + $0x2a] sm:$0xff]  ;;  %v1727_v24 = vmax.f32 %v1690_v14, 0.0  ;;  %v1011_v20 = vmul.f32 %v5820_v52, %v858_v18  ;;  %5106 = vmatmul.msk.f32.gmra.mxu0 %vm1757_vm0, %v5961_v56  ;;  %5179 = vmatmul.msk.f32.gmra.mxu2 %vm1757_vm0, %v6038_v21 }
 0x112   : > { %5141 = vmatmul.msk.f32.gmra.mxu1 %vm1757_vm0, %v1798_v19  ;;  %5217 = vmatmul.msk.f32.gmra.mxu3 %vm1757_vm0, %v2611_v22  ;;  %v1801_v4 = vld [vmem:[#allocation2 + $0x30] sm:$0xff] }
 0x113   : > { %1765 = vst.msk [vmem:[#allocation2 + $0x38] sm:$0xff] %vm1757_vm0, %v1727_v24  ;;  %v1048_v25 = vadd.f32 %v1011_v20, %v710_v23  ;;  %v713_v23 = vmul.f32 %v5815_v51, %v6036_v16 }
 0x115   : > { %v1349_v30 = vadd.f32 %v1312_v54, %v1048_v25  ;;  %1514 = vperm.xlu1 %5500, %v1397_v26   ;;  %v1400_v26 = vld [vmem:[%s5754_s18 + $0xc2] sm:$0xff] }
 0x116   : > { %616 = vperm.xlu2 %5501, %v496_v17   ;;  %v499_v17 = vld [vmem:[%s5754_s18 + $0xb8] sm:$0xff] }
 0x117   : > { %v1650_v56 = vadd.f32 %v1613_v29, %v1349_v30  ;;  %1213 = vperm.xlu0 %5499, %v1096_v28   ;;  %v863_v5 = vpop.permute.xlu1 %862  ;;  %v6056_v31 = vpop.permute.xlu2 %1474 }
 0x118   : > { %v562_v32 = vpop.permute.xlu0 %561  ;;  %v1012_v36 = vmul.f32 %v5820_v52, %v863_v5  ;;  %v1616_v16 = vmul.f32 %v5840_v0, %v6056_v31 }
 0x119   : > { %v1691_v35 = vadd.f32 %v5850_v6, %v1650_v56  ;;  %v711_v37 = vmul.f32 %v5815_v51, %v562_v32  ;;  %5107 = vmatmul.msk.f32.gmra.mxu0 %vm1757_vm0, %v5977_v10  ;;  %v1313_v10 = vmul.f32 %v5828_v57, %v6007_v43 }
 0x11a   : > { %5142 = vmatmul.msk.f32.gmra.mxu1 %vm1757_vm0, %v1799_v34  ;;  %v2318_v33 = vld [vmem:[#allocation2 + $0x31] sm:$0xff] }
 0x11b   : > { %v2612_v39 = vld [vmem:[#allocation2 + $0x32] sm:$0xff]  ;;  %v1728_v40 = vmax.f32 %v1691_v35, 0.0  ;;  %5180 = vmatmul.msk.f32.gmra.mxu2 %vm1757_vm0, %v2318_v33  ;;  %v1049_v42 = vadd.f32 %v1012_v36, %v711_v37 }
 0x11c   : > { %5218 = vmatmul.msk.f32.gmra.mxu3 %vm1757_vm0, %v2612_v39  ;;  %v1802_v19 = vld [vmem:[#allocation2 + $0x38] sm:$0xff] }
 0x11d   : > { %1766 = vst.msk [vmem:[#allocation2 + $0x40] sm:$0xff] %vm1757_vm0, %v1728_v40  ;;  %1218 = vperm.xlu1 %5500, %v1097_v41   ;;  %v1350_v49 = vadd.f32 %v1313_v10, %v1049_v42  ;;  %v1100_v40 = vld [vmem:[%s5754_s18 + $0xc9] sm:$0xff] }
 0x11e   : > { %1519 = vperm.xlu2 %5501, %v1398_v38  }
 0x11f   : > { %917 = vperm.xlu0 %5499, %v6018_v55   ;;  %v567_v44 = vpop.permute.xlu1 %566  ;;  %v6072_v46 = vpop.permute.xlu2 %1178 }
 0x120   : > { %v1465_v48 = vpop.permute.xlu0 %1464  ;;  %v712_v55 = vmul.f32 %v5815_v51, %v567_v44  ;;  %v1316_v42 = vmul.f32 %v5828_v57, %v6072_v46  ;;  %v500_v46 = vld [vmem:[%s5754_s18 + $0xc0] sm:$0xff] }
 0x121   : > { %v1614_v50 = vmul.f32 %v5840_v0, %v1465_v48  ;;  %5108 = vmatmul.msk.f32.gmra.mxu0 %vm1757_vm0, %v6012_v27  ;;  %v1013_v27 = vmul.f32 %v5820_v52, %v6026_v63 }
 0x122   : > { %5143 = vmatmul.msk.f32.gmra.mxu1 %vm1757_vm0, %v1800_v47 }
 0x123   : > { %v1651_v53 = vadd.f32 %v1614_v50, %v1350_v49  ;;  %v1050_v7 = vadd.f32 %v1013_v27, %v712_v55 }
 0x124   : > { %v2319_v58 = vld [vmem:[#allocation2 + $0x39] sm:$0xff] }
 0x125   : > { %v2613_v43 = vld [vmem:[#allocation2 + $0x3a] sm:$0xff]  ;;  %v1692_v61 = vadd.f32 %v5850_v6, %v1651_v53  ;;  %5181 = vmatmul.msk.f32.gmra.mxu2 %vm1757_vm0, %v2319_v58  ;;  %922 = vperm.xlu1 %5500, %v1096_v28  }
 0x126   : > { %5219 = vmatmul.msk.f32.gmra.mxu3 %vm1757_vm0, %v2613_v43  ;;  %1223 = vperm.xlu2 %5501, %v6079_v45   ;;  %v1099_v28 = vld [vmem:[%s5754_s18 + $0xc1] sm:$0xff] }
 0x127   : > { %v1729_v60 = vmax.f32 %v1692_v61, 0.0  ;;  %621 = vperm.xlu0 %5499, %v497_v59   ;;  %v1470_v62 = vpop.permute.xlu1 %1469  ;;  %v6089_v2 = vpop.permute.xlu2 %882  ;;  %v1803_v34 = vld [vmem:[#allocation2 + $0x40] sm:$0xff] }
 0x128   : > { %v1169_v3 = vpop.permute.xlu0 %1168  ;;  %v1615_v1 = vmul.f32 %v5840_v0, %v1470_v62  ;;  %v1016_v61 = vmul.f32 %v5820_v52, %v6089_v2  ;;  %v501_v2 = vld [vmem:[%s5754_s18 + $0xc8] sm:$0xff] }
 0x129   : > { %1767 = vst.msk [vmem:[#allocation2 + $0x48] sm:$0xff] %vm1757_vm0, %v1729_v60  ;;  %v1314_v8 = vmul.f32 %v5828_v57, %v1169_v3  ;;  %5109 = vmatmul.msk.f32.gmra.mxu0 %vm1757_vm0, %v6038_v21 }
 0x12a   : > { %5144 = vmatmul.msk.f32.gmra.mxu1 %vm1757_vm0, %v1801_v4 }
 0x12b   : > { %v1351_v63 = vadd.f32 %v1314_v8, %v1050_v7 }
 0x12d   : > { %v1652_v12 = vadd.f32 %v1615_v1, %v1351_v63  ;;  %626 = vperm.xlu1 %5500, %v498_v9   ;;  %v1402_v9 = vld [vmem:[%s5754_s18 + $0xd2] sm:$0xff] }
 0x12e   : > { %927 = vperm.xlu2 %5501, %v1097_v41   ;;  %v1401_v41 = vld [vmem:[%s5754_s18 + $0xca] sm:$0xff] }
 0x12f   : > { %v1693_v13 = vadd.f32 %v5850_v6, %v1652_v12  ;;  %1524 = vperm.xlu0 %5499, %v1399_v11   ;;  %v1174_v14 = vpop.permute.xlu1 %1173  ;;  %v6100_v15 = vpop.permute.xlu2 %586 }
 0x130   : > { %v873_v18 = vpop.permute.xlu0 %872  ;;  %v2320_v21 = vld [vmem:[#allocation2 + $0x41] sm:$0xff]  ;;  %v1315_v54 = vmul.f32 %v5828_v57, %v1174_v14 }
 0x131   : > { %v2614_v22 = vld [vmem:[#allocation2 + $0x42] sm:$0xff]  ;;  %v1730_v24 = vmax.f32 %v1693_v13, 0.0  ;;  %v1014_v20 = vmul.f32 %v5820_v52, %v873_v18  ;;  %5110 = vmatmul.msk.f32.gmra.mxu0 %vm1757_vm0, %v2318_v33  ;;  %5182 = vmatmul.msk.f32.gmra.mxu2 %vm1757_vm0, %v2320_v21 }
 0x132   : > { %5145 = vmatmul.msk.f32.gmra.mxu1 %vm1757_vm0, %v1802_v19  ;;  %5220 = vmatmul.msk.f32.gmra.mxu3 %vm1757_vm0, %v2614_v22  ;;  %v1804_v47 = vld [vmem:[#allocation2 + $0x48] sm:$0xff] }
 0x133   : > { %1768 = vst.msk [vmem:[#allocation2 + $0x50] sm:$0xff] %vm1757_vm0, %v1730_v24  ;;  %v1051_v25 = vadd.f32 %v1014_v20, %v713_v23  ;;  %v716_v23 = vmul.f32 %v5815_v51, %v6100_v15 }
 0x135   : > { %v1352_v29 = vadd.f32 %v1315_v54, %v1051_v25  ;;  %1529 = vperm.xlu1 %5500, %v1400_v26   ;;  %v1403_v26 = vld [vmem:[%s5754_s18 + $0xda] sm:$0xff] }
 0x136   : > { %631 = vperm.xlu2 %5501, %v499_v17   ;;  %v502_v17 = vld [vmem:[%s5754_s18 + $0xd0] sm:$0xff] }
 0x137   : > { %v1653_v30 = vadd.f32 %v1616_v16, %v1352_v29  ;;  %1228 = vperm.xlu0 %5499, %v1099_v28   ;;  %v878_v56 = vpop.permute.xlu1 %877  ;;  %v6116_v5 = vpop.permute.xlu2 %1489 }
 0x138   : > { %v577_v32 = vpop.permute.xlu0 %576  ;;  %v1015_v36 = vmul.f32 %v5820_v52, %v878_v56  ;;  %v1619_v15 = vmul.f32 %v5840_v0, %v6116_v5 }
 0x139   : > { %v1694_v35 = vadd.f32 %v5850_v6, %v1653_v30  ;;  %v714_v37 = vmul.f32 %v5815_v51, %v577_v32  ;;  %5111 = vmatmul.msk.f32.gmra.mxu0 %vm1757_vm0, %v2319_v58  ;;  %v6137_v58 = vld [vmem:[%s5754_s18 + $0xd1] sm:$0xff] }
 0x13a   : > { %5146 = vmatmul.msk.f32.gmra.mxu1 %vm1757_vm0, %v1803_v34  ;;  %v2321_v31 = vld [vmem:[#allocation2 + $0x49] sm:$0xff] }
 0x13b   : > { %v2615_v33 = vld [vmem:[#allocation2 + $0x4a] sm:$0xff]  ;;  %v1731_v39 = vmax.f32 %v1694_v35, 0.0  ;;  %5183 = vmatmul.msk.f32.gmra.mxu2 %vm1757_vm0, %v2321_v31  ;;  %v1052_v38 = vadd.f32 %v1015_v36, %v714_v37 }
 0x13c   : > { %5221 = vmatmul.msk.f32.gmra.mxu3 %vm1757_vm0, %v2615_v33  ;;  %v1805_v4 = vld [vmem:[#allocation2 + $0x50] sm:$0xff] }
 0x13d   : > { %1769 = vst.msk [vmem:[#allocation2 + $0x58] sm:$0xff] %vm1757_vm0, %v1731_v39  ;;  %1233 = vperm.xlu1 %5500, %v1100_v40   ;;  %v1353_v49 = vadd.f32 %v1316_v42, %v1052_v38  ;;  %v1103_v39 = vld [vmem:[%s5754_s18 + $0xe1] sm:$0xff] }
 0x13e   : > { %1534 = vperm.xlu2 %5501, %v1401_v41  }
 0x13f   : > { %932 = vperm.xlu0 %5499, %v6079_v45   ;;  %v582_v10 = vpop.permute.xlu1 %581  ;;  %v6131_v44 = vpop.permute.xlu2 %1193 }
 0x140   : > { %v1480_v48 = vpop.permute.xlu0 %1479  ;;  %v715_v45 = vmul.f32 %v5815_v51, %v582_v10 }
 0x141   : > { %v1617_v50 = vmul.f32 %v5840_v0, %v1480_v48  ;;  %5112 = vmatmul.msk.f32.gmra.mxu0 %vm1757_vm0, %v2320_v21 }
 0x142   : > { %5147 = vmatmul.msk.f32.gmra.mxu1 %vm1757_vm0, %v1804_v47  ;;  %v1053_v7 = vadd.f32 %v1016_v61, %v715_v45 }
 0x143   : > { %v1654_v53 = vadd.f32 %v1617_v50, %v1353_v49  ;;  %v6194_v49 = vld [vmem:[%s5754_s18 + $0xe9] sm:$0xff] }
 0x144   : > { %v2322_v43 = vld [vmem:[#allocation2 + $0x51] sm:$0xff] }
 0x145   : > { %v2616_v59 = vld [vmem:[#allocation2 + $0x52] sm:$0xff]  ;;  %v1695_v55 = vadd.f32 %v5850_v6, %v1654_v53  ;;  %5184 = vmatmul.msk.f32.gmra.mxu2 %vm1757_vm0, %v2322_v43  ;;  %937 = vperm.xlu1 %5500, %v1099_v28  }
 0x146   : > { %5222 = vmatmul.msk.f32.gmra.mxu3 %vm1757_vm0, %v2616_v59  ;;  %1238 = vperm.xlu2 %5501, %v6137_v58   ;;  %v1806_v19 = vld [vmem:[#allocation2 + $0x58] sm:$0xff] }
 0x147   : > { %v1732_v27 = vmax.f32 %v1695_v55, 0.0  ;;  %636 = vperm.xlu0 %5499, %v500_v46   ;;  %v1485_v60 = vpop.permute.xlu1 %1484  ;;  %v1102_v28 = vld [vmem:[%s5754_s18 + $0xd9] sm:$0xff]  ;;  %v6212_v46 = vld [vmem:[%s7692_s1 + $0x1] ss:$0 sm:$0xff] }
 0x148   : > { %v6147_v62 = vpop.permute.xlu2 %897  ;;  %v1184_v3 = vpop.permute.xlu0 %1183  ;;  %v1618_v1 = vmul.f32 %v5840_v0, %v1485_v60 }
 0x149   : > { %1770 = vst.msk [vmem:[#allocation2 + $0x60] sm:$0xff] %vm1757_vm0, %v1732_v27  ;;  %v1317_v8 = vmul.f32 %v5828_v57, %v1184_v3  ;;  %5113 = vmatmul.msk.f32.gmra.mxu0 %vm1757_vm0, %v2321_v31  ;;  %v1019_v45 = vmul.f32 %v6212_v46, %v6147_v62 }
 0x14a   : > { %5148 = vmatmul.msk.f32.gmra.mxu1 %vm1757_vm0, %v1805_v4  ;;  %v6224_v4 = vld [vmem:[%s7692_s1 + $0x2] ss:$0 sm:$0xff] }
 0x14b   : > { %v1354_v63 = vadd.f32 %v1317_v8, %v1053_v7  ;;  %v504_v7 = vld [vmem:[%s5754_s18 + $0xe0] sm:$0xff] }
 0x14c   : > { %v6231_v8 = vld [vmem:[%s7692_s1 + $0x3] ss:$0 sm:$0xff] }
 0x14d   : > { %v1655_v11 = vadd.f32 %v1618_v1, %v1354_v63  ;;  %641 = vperm.xlu1 %5500, %v501_v2   ;;  %v1405_v2 = vld [vmem:[%s5754_s18 + $0xea] sm:$0xff] }
 0x14e   : > { %942 = vperm.xlu2 %5501, %v1100_v40   ;;  %v1404_v40 = vld [vmem:[%s5754_s18 + $0xe2] sm:$0xff] }
 0x14f   : > { %v1696_v12 = vadd.f32 %v5850_v6, %v1655_v11  ;;  %1539 = vperm.xlu0 %5499, %v1402_v9   ;;  %v1189_v13 = vpop.permute.xlu1 %1188 }
 0x150   : > { %v6157_v14 = vpop.permute.xlu2 %601  ;;  %v888_v18 = vpop.permute.xlu0 %887  ;;  %v2323_v21 = vld [vmem:[#allocation2 + $0x59] sm:$0xff]  ;;  %v1318_v54 = vmul.f32 %v5828_v57, %v1189_v13 }
 0x151   : > { %v2617_v22 = vld [vmem:[#allocation2 + $0x5a] sm:$0xff]  ;;  %v1733_v24 = vmax.f32 %v1696_v12, 0.0  ;;  %v1017_v20 = vmul.f32 %v5820_v52, %v888_v18  ;;  %5114 = vmatmul.msk.f32.gmra.mxu0 %vm1757_vm0, %v2322_v43  ;;  %5185 = vmatmul.msk.f32.gmra.mxu2 %vm1757_vm0, %v2323_v21 }
 0x152   : > { %5149 = vmatmul.msk.f32.gmra.mxu1 %vm1757_vm0, %v1806_v19  ;;  %5223 = vmatmul.msk.f32.gmra.mxu3 %vm1757_vm0, %v2617_v22  ;;  %v1807_v34 = vld [vmem:[#allocation2 + $0x60] sm:$0xff]  ;;  %v503_v43 = vld [vmem:[%s5754_s18 + $0xd8] sm:$0xff] }
 0x153   : > { %1771 = vst.msk [vmem:[#allocation2 + $0x68] sm:$0xff] %vm1757_vm0, %v1733_v24  ;;  %v1054_v25 = vadd.f32 %v1017_v20, %v716_v23  ;;  %v6240_v12 = vld [vmem:[%s7693_s2] ss:$0 sm:$0xff] }
 0x155   : > { %v1355_v16 = vadd.f32 %v1318_v54, %v1054_v25  ;;  %1544 = vperm.xlu1 %5500, %v1403_v26   ;;  %v1406_v26 = vld [vmem:[%s5754_s18 + $0xf2] sm:$0xff] }
 0x156   : > { %646 = vperm.xlu2 %5501, %v502_v17   ;;  %v505_v17 = vld [vmem:[%s5754_s18 + $0xe8] sm:$0xff] }
 0x157   : > { %v1656_v29 = vadd.f32 %v1619_v15, %v1355_v16  ;;  %1243 = vperm.xlu0 %5499, %v1102_v28   ;;  %v893_v30 = vpop.permute.xlu1 %892 }
 0x158   : > { %v6173_v56 = vpop.permute.xlu2 %1504  ;;  %v592_v32 = vpop.permute.xlu0 %591  ;;  %v1018_v5 = vmul.f32 %v5820_v52, %v893_v30 }
 0x159   : > { %v1697_v35 = vadd.f32 %v5850_v6, %v1656_v29  ;;  %5115 = vmatmul.msk.f32.gmra.mxu0 %vm1757_vm0, %v2323_v21  ;;  %v717_v36 = vmul.f32 %v5815_v51, %v592_v32  ;;  %v1319_v51 = vmul.f32 %v5828_v57, %v6131_v44  ;;  %v6199_v57 = vpop.f32.mrf.mxu1  ;;  %v6204_v44 = vld [vmem:[%s7692_s1] ss:$0 sm:$0xff] }
 0x15a   : > { %5150 = vmatmul.msk.f32.gmra.mxu1 %vm1757_vm0, %v1807_v34  ;;  %v2324_v37 = vld [vmem:[#allocation2 + $0x61] sm:$0xff]  ;;  %v719_v54 = vmul.f32 %v6204_v44, %v6157_v14  ;;  %v1622_v14 = vmul.f32 %v6231_v8, %v6173_v56 }
 0x15b   : > { %v2618_v31 = vld [vmem:[#allocation2 + $0x62] sm:$0xff]  ;;  %v1734_v33 = vmax.f32 %v1697_v35, 0.0  ;;  %5186 = vmatmul.msk.f32.gmra.mxu2 %vm1757_vm0, %v2324_v37  ;;  %v1055_v41 = vadd.f32 %v1018_v5, %v717_v36  ;;  %v6262_v36 = vld [vmem:[%s5754_s18 + $0xf9] sm:$0xff] }
 0x15c   : > { %5224 = vmatmul.msk.f32.gmra.mxu3 %vm1757_vm0, %v2618_v31  ;;  %v1808_v42 = vld [vmem:[#allocation2 + $0x68] sm:$0xff] }
 0x15d   : > { %1772 = vst.msk [vmem:[#allocation2 + $0x70] sm:$0xff] %vm1757_vm0, %v1734_v33  ;;  %1248 = vperm.xlu1 %5500, %v1103_v39   ;;  %v1356_v48 = vadd.f32 %v1319_v51, %v1055_v41 }
 0x15e   : > { %1549 = vperm.xlu2 %5501, %v1404_v40  }
 0x15f   : > { %947 = vperm.xlu0 %5499, %v6137_v58   ;;  %v597_v52 = vpop.permute.xlu1 %596 }
 0x160   : > { %v6188_v38 = vpop.permute.xlu2 %1208  ;;  %v718_v59 = vmul.f32 %v6204_v44, %v597_v52 }
 0x161   : > { %v1495_v10 = vpop.permute.xlu0 %1494  ;;  %5116 = vmatmul.msk.f32.gmra.mxu0 %vm1757_vm0, %v2324_v37  ;;  %v6235_v9 = vpop.f32.mrf.mxu1  ;;  %v1407_v37 = vld [vmem:[%s5754_s18 + $0xfa] sm:$0xff] }
 0x162   : > { %5151 = vmatmul.msk.f32.gmra.mxu1 %vm1757_vm0, %v1808_v42  ;;  %v1620_v47 = vmul.f32 %v5840_v0, %v1495_v10  ;;  %v1056_v3 = vadd.f32 %v1019_v45, %v718_v59 }
 0x164   : > { %v1657_v50 = vadd.f32 %v1620_v47, %v1356_v48  ;;  %v2325_v53 = vld [vmem:[#allocation2 + $0x69] sm:$0xff]  ;;  %v2472_v10 = vpop.f32.mrf.mxu2 }
 0x165   : > { %v2619_v58 = vld [vmem:[#allocation2 + $0x6a] sm:$0xff]  ;;  %5187 = vmatmul.msk.f32.gmra.mxu2 %vm1757_vm0, %v2325_v53  ;;  %952 = vperm.xlu1 %5500, %v1102_v28  }
 0x166   : > { %5225 = vmatmul.msk.f32.gmra.mxu3 %vm1757_vm0, %v2619_v58  ;;  %v1698_v0 = vadd.f32 %v5850_v6, %v1657_v50  ;;  %1253 = vperm.xlu2 %5501, %v6194_v49   ;;  %v1809_v60 = vld [vmem:[#allocation2 + $0x70] sm:$0xff]  ;;  %v1322_v58 = vmul.f32 %v6224_v4, %v6188_v38 }
 0x167   : > { %651 = vperm.xlu0 %5499, %v503_v43   ;;  %v1500_v61 = vpop.permute.xlu1 %1499  ;;  %v1105_v28 = vld [vmem:[%s5754_s18 + $0xf1] sm:$0xff]  ;;  %v2766_v43 = vpop.f32.mrf.mxu3 }
 0x168   : > { %v1735_v55 = vmax.f32 %v1698_v0, 0.0  ;;  %v6216_v27 = vpop.permute.xlu2 %912  ;;  %v1621_v1 = vmul.f32 %v6231_v8, %v1500_v61  ;;  %v6282_v0 = vld [vmem:[%s7694_s4] ss:$0 sm:$0xff] }
 0x169   : > { %v1199_v6 = vpop.permute.xlu0 %1198  ;;  %5117 = vmatmul.msk.f32.gmra.mxu0 %vm1757_vm0, %v2325_v53  ;;  %v2212_v29 = vpop.f32.mrf.mxu1 }
 0x16a   : > { %5152 = vmatmul.msk.f32.gmra.mxu1 %vm1757_vm0, %v1809_v60  ;;  %1773 = vst.msk [vmem:[#allocation2 + $0x78] sm:$0xff] %vm1757_vm0, %v1735_v55  ;;  %v1320_v62 = vmul.f32 %v6224_v4, %v1199_v6 }
 0x16c   : > { %v1357_v63 = vadd.f32 %v1320_v62, %v1056_v3  ;;  %v506_v62 = vld [vmem:[%s5754_s18 + $0xf0] sm:$0xff] }
 0x16d   : > { %656 = vperm.xlu1 %5500, %v504_v7  }
 0x16e   : > { %v1658_v11 = vadd.f32 %v1621_v1, %v1357_v63  ;;  %957 = vperm.xlu2 %5501, %v1103_v39  }
 0x16f   : > { %1554 = vperm.xlu0 %5499, %v1405_v2   ;;  %v1204_v18 = vpop.permute.xlu1 %1203 }
 0x170   : > { %v1699_v13 = vadd.f32 %v6240_v12, %v1658_v11  ;;  %v6243_v19 = vpop.permute.xlu2 %616  ;;  %v1321_v15 = vmul.f32 %v6224_v4, %v1204_v18  ;;  %v2475_v2 = vpop.f32.mrf.mxu2 }
 0x171   : > { %v1847_v21 = vld [vmem:[#allocation2 + $0x71] sm:$0xff]  ;;  %v903_v20 = vpop.permute.xlu0 %902 }
 0x172   : > { %v1810_v22 = vld [vmem:[#allocation2 + $0x78] sm:$0xff]  ;;  %v1736_v24 = vmax.f32 %v1699_v13, 0.0  ;;  %5118 = vmatmul.msk.f32.gmra.mxu0 %vm1757_vm0, %v1847_v21  ;;  %v1020_v25 = vmul.f32 %v6212_v46, %v903_v20  ;;  %5188 = vmatmul.msk.f32.gmra.mxu2 %vm1757_vm0, %v1847_v21  ;;  %v2769_v20 = vpop.f32.mrf.mxu3 }
 0x173   : > { %v2620_v23 = vld [vmem:[#allocation2 + $0x72] sm:$0xff]  ;;  %5153 = vmatmul.msk.f32.gmra.mxu1 %vm1757_vm0, %v1810_v22 }
 0x174   : > { %5226 = vmatmul.msk.f32.gmra.mxu3 %vm1757_vm0, %v2620_v23  ;;  %1774 = vst.msk [vmem:[#allocation2 + $0x80] sm:$0xff] %vm1757_vm0, %v1736_v24  ;;  %v1057_v16 = vadd.f32 %v1020_v25, %v719_v54  ;;  %v1022_v24 = vmul.f32 %v6212_v46, %v6216_v27 }
 0x175   : > { %1559 = vperm.xlu1 %5500, %v1406_v26  }
 0x176   : > { %661 = vperm.xlu2 %5501, %v505_v17   ;;  %v1358_v30 = vadd.f32 %v1321_v15, %v1057_v16 }
 0x177   : > { %1258 = vperm.xlu0 %5499, %v1105_v28   ;;  %v908_v32 = vpop.permute.xlu1 %907 }
 0x178   : > { %v6259_v34 = vpop.permute.xlu2 %1519  ;;  %v1659_v35 = vadd.f32 %v1622_v14, %v1358_v30  ;;  %v1021_v33 = vmul.f32 %v6212_v46, %v908_v32  ;;  %v1408_v32 = vld [vmem:[%s5754_s18 + $0x102] sm:$0xff] }
 0x179   : > { %v607_v5 = vpop.permute.xlu0 %606 }
 0x17a   : > { %v1700_v31 = vadd.f32 %v6240_v12, %v1659_v35  ;;  %v720_v39 = vmul.f32 %v6204_v44, %v607_v5 }
 0x17b   : > { %v1848_v40 = vld [vmem:[#allocation2 + $0x79] sm:$0xff] }
 0x17c   : > { %v1811_v41 = vld [vmem:[#allocation2 + $0x80] sm:$0xff]  ;;  %5119 = vmatmul.msk.f32.gmra.mxu0 %vm1757_vm0, %v1848_v40  ;;  %v1737_v56 = vmax.f32 %v1700_v31, 0.0  ;;  %5189 = vmatmul.msk.f32.gmra.mxu2 %vm1757_vm0, %v1848_v40  ;;  %v1058_v48 = vadd.f32 %v1021_v33, %v720_v39 }
 0x17d   : > { %v2621_v51 = vld [vmem:[#allocation2 + $0x7a] sm:$0xff]  ;;  %5154 = vmatmul.msk.f32.gmra.mxu1 %vm1757_vm0, %v1811_v41  ;;  %1263 = vperm.xlu1 %5500, %v6262_v36  }
 0x17e   : > { %5227 = vmatmul.msk.f32.gmra.mxu3 %vm1757_vm0, %v2621_v51  ;;  %1564 = vperm.xlu2 %5501, %v1407_v37   ;;  %v1991_v52 = vpop.f32.mrf.mxu0  ;;  %1775 = vst.msk [vmem:[#allocation2 + $0x88] sm:$0xff] %vm1757_vm0, %v1737_v56  ;;  %v1359_v61 = vadd.f32 %v1322_v58, %v1058_v48  ;;  %v722_v48 = vmul.f32 %v6204_v44, %v6243_v19 }
 0x17f   : > { %v2215_v42 = vpop.f32.mrf.mxu1  ;;  %962 = vperm.xlu0 %5499, %v6194_v49   ;;  %v2213_v47 = vadd.f32 %v2212_v29, %v1991_v52  ;;  %v612_v50 = vpop.permute.xlu1 %611  ;;  %v1107_v49 = vld [vmem:[%s5754_s18 + $0x101] sm:$0xff]  ;;  %v507_v29 = vld [vmem:[%s5754_s18 + $0xf8] sm:$0xff] }
 0x180   : > { %v6275_v53 = vpop.permute.xlu2 %1223  ;;  %v721_v13 = vmul.f32 %v6204_v44, %v612_v50 }
 0x181   : > { %v2574_v59 = vadd.f32 %v2472_v10, %v2213_v47  ;;  %v1510_v45 = vpop.permute.xlu0 %1509 }
 0x182   : > { %v1623_v60 = vmul.f32 %v6231_v8, %v1510_v45  ;;  %v511_v45 = vld [vmem:[%s5754_s18 + $0x118] sm:$0xff] }
 0x183   : > { %v2868_v55 = vadd.f32 %v2766_v43, %v2574_v59  ;;  %v1409_v59 = vld [vmem:[%s5754_s18 + $0x10a] sm:$0xff] }
 0x184   : > { %v1660_v3 = vadd.f32 %v1623_v60, %v1359_v61  ;;  %v1108_v60 = vld [vmem:[%s5754_s18 + $0x109] sm:$0xff] }
 0x185   : > { %v2906_v6 = vadd.f32 %v6282_v0, %v2868_v55  ;;  %v1849_v7 = vld [vmem:[#allocation2 + $0x81] sm:$0xff]  ;;  %967 = vperm.xlu1 %5500, %v1105_v28   ;;  %v1059_v28 = vadd.f32 %v1022_v24, %v721_v13  ;;  %v1413_v24 = vld [vmem:[%s5754_s18 + $0x12a] sm:$0xff] }
 0x186   : > { %v1812_v38 = vld [vmem:[#allocation2 + $0x88] sm:$0xff]  ;;  %1268 = vperm.xlu2 %5501, %v1107_v49   ;;  %v1994_v63 = vpop.f32.mrf.mxu0  ;;  %v1701_v18 = vadd.f32 %v6240_v12, %v1660_v3  ;;  %5120 = vmatmul.msk.f32.gmra.mxu0 %vm1757_vm0, %v1849_v7  ;;  %v2478_v33 = vpop.f32.mrf.mxu2 }
 0x187   : > { %v2622_v1 = vld [vmem:[#allocation2 + $0x82] sm:$0xff]  ;;  %v2940_v11 = vmax.f32 %v2906_v6, 0.0  ;;  %5155 = vmatmul.msk.f32.gmra.mxu1 %vm1757_vm0, %v1812_v38  ;;  %v2216_v21 = vadd.f32 %v2215_v42, %v1994_v63  ;;  %5190 = vmatmul.msk.f32.gmra.mxu2 %vm1757_vm0, %v1849_v7  ;;  %v2218_v22 = vpop.f32.mrf.mxu1  ;;  %v1515_v23 = vpop.permute.xlu1 %1514  ;;  %v1625_v6 = vmul.f32 %v6231_v8, %v6259_v34 }
 0x188   : > { %5228 = vmatmul.msk.f32.gmra.mxu3 %vm1757_vm0, %v2622_v1  ;;  %v1738_v54 = vmax.f32 %v1701_v18, 0.0  ;;  %666 = vperm.xlu0 %5499, %v506_v62   ;;  %v6297_v26 = vpop.permute.xlu2 %927  ;;  %v1624_v27 = vmul.f32 %v6231_v8, %v1515_v23  ;;  %v2772_v40 = vpop.f32.mrf.mxu3  ;;  %v1112_v23 = vld [vmem:[%s5754_s18 + $0x129] sm:$0xff] }
 0x189   : > { %2975 = vst.msk [vmem:[#allocation3] sm:$0xff] %vm2974_vm1, %v2940_v11  ;;  %v2575_v25 = vadd.f32 %v2475_v2, %v2216_v21  ;;  %v1214_v17 = vpop.permute.xlu0 %1213 }
 0x18a   : > { %1776 = vst.msk [vmem:[#allocation2 + $0x90] sm:$0xff] %vm1757_vm0, %v1738_v54  ;;  %v1323_v16 = vmul.f32 %v6224_v4, %v1214_v17 }
 0x18b   : > { %v2869_v15 = vadd.f32 %v2769_v20, %v2575_v25 }
 0x18c   : > { %v1360_v30 = vadd.f32 %v1323_v16, %v1059_v28 }
 0x18d   : > { %v2907_v14 = vadd.f32 %v6282_v0, %v2869_v15  ;;  %671 = vperm.xlu1 %5500, %v507_v29   ;;  %v811_v29 = vld [vmem:[%s5754_s18 + $0x119] sm:$0xff] }
 0x18e   : > { %972 = vperm.xlu2 %5501, %v6262_v36   ;;  %v1997_v35 = vpop.f32.mrf.mxu0  ;;  %v1661_v37 = vadd.f32 %v1624_v27, %v1360_v30 }
 0x18f   : > { %v2941_v5 = vmax.f32 %v2907_v14, 0.0  ;;  %v2219_v31 = vadd.f32 %v2218_v22, %v1997_v35  ;;  %v1219_v39 = vpop.permute.xlu1 %1218  ;;  %v2221_v56 = vpop.f32.mrf.mxu1 }
 0x190   : > { %v1702_v41 = vadd.f32 %v6240_v12, %v1661_v37  ;;  %1569 = vperm.xlu0 %5499, %v1408_v32   ;;  %v6310_v58 = vpop.permute.xlu2 %631  ;;  %v1324_v55 = vmul.f32 %v6224_v4, %v1219_v39  ;;  %v1325_v37 = vmul.f32 %v6224_v4, %v6275_v53 }
 0x191   : > { %2976 = vst.msk [vmem:[#allocation3 + $0x8] sm:$0xff] %vm2974_vm1, %v2941_v5  ;;  %v2576_v51 = vadd.f32 %v2478_v33, %v2219_v31  ;;  %v918_v52 = vpop.permute.xlu0 %917  ;;  %v1850_v42 = vld [vmem:[#allocation2 + $0x89] sm:$0xff] }
 0x192   : > { %v1813_v36 = vld [vmem:[#allocation2 + $0x90] sm:$0xff]  ;;  %v1739_v47 = vmax.f32 %v1702_v41, 0.0  ;;  %v1023_v43 = vmul.f32 %v6212_v46, %v918_v52  ;;  %5121 = vmatmul.msk.f32.gmra.mxu0 %vm1757_vm0, %v1850_v42  ;;  %5191 = vmatmul.msk.f32.gmra.mxu2 %vm1757_vm0, %v1850_v42  ;;  %v812_v42 = vld [vmem:[%s5754_s18 + $0x121] sm:$0xff] }
 0x193   : > { %v2623_v10 = vld [vmem:[#allocation2 + $0x8a] sm:$0xff]  ;;  %v2870_v50 = vadd.f32 %v2772_v40, %v2576_v51  ;;  %5156 = vmatmul.msk.f32.gmra.mxu1 %vm1757_vm0, %v1813_v36 }
 0x194   : > { %5229 = vmatmul.msk.f32.gmra.mxu3 %vm1757_vm0, %v2623_v10  ;;  %1777 = vst.msk [vmem:[#allocation2 + $0x98] sm:$0xff] %vm1757_vm0, %v1739_v47  ;;  %v1060_v61 = vadd.f32 %v1023_v43, %v722_v48  ;;  %v2481_v38 = vpop.f32.mrf.mxu2  ;;  %v1113_v36 = vld [vmem:[%s5754_s18 + $0x131] sm:$0xff] }
 0x195   : > { %v2908_v19 = vadd.f32 %v6282_v0, %v2870_v50  ;;  %1574 = vperm.xlu1 %5500, %v1409_v59   ;;  %v2775_v11 = vpop.f32.mrf.mxu3 }
 0x196   : > { %691 = vperm.xlu2 %5501, %v511_v45   ;;  %v2000_v49 = vpop.f32.mrf.mxu0  ;;  %v1361_v62 = vadd.f32 %v1324_v55, %v1060_v61  ;;  %v512_v55 = vld [vmem:[%s5754_s18 + $0x120] sm:$0xff] }
 0x197   : > { %v2942_v3 = vmax.f32 %v2908_v19, 0.0  ;;  %v2222_v7 = vadd.f32 %v2221_v56, %v2000_v49  ;;  %v923_v1 = vpop.permute.xlu1 %922  ;;  %v2224_v20 = vpop.f32.mrf.mxu1  ;;  %v1025_v49 = vmul.f32 %v6212_v46, %v6297_v26 }
 0x198   : > { %v1662_v63 = vadd.f32 %v1625_v6, %v1361_v62  ;;  %1273 = vperm.xlu0 %5499, %v1108_v60   ;;  %v1024_v34 = vmul.f32 %v6212_v46, %v923_v1  ;;  %v6332_v16 = vpop.permute.xlu2 %1534 }
 0x199   : > { %2977 = vst.msk [vmem:[#allocation3 + $0x10] sm:$0xff] %vm2974_vm1, %v2942_v3  ;;  %v2577_v2 = vadd.f32 %v2481_v38, %v2222_v7  ;;  %v622_v13 = vpop.permute.xlu0 %621 }
 0x19a   : > { %v1703_v18 = vadd.f32 %v6240_v12, %v1662_v63  ;;  %v723_v22 = vmul.f32 %v6204_v44, %v622_v13 }
 0x19b   : > { %v2871_v21 = vadd.f32 %v2775_v11, %v2577_v2  ;;  %v1851_v54 = vld [vmem:[#allocation2 + $0x91] sm:$0xff] }
 0x19c   : > { %v1814_v25 = vld [vmem:[#allocation2 + $0x98] sm:$0xff]  ;;  %v1740_v28 = vmax.f32 %v1703_v18, 0.0  ;;  %5122 = vmatmul.msk.f32.gmra.mxu0 %vm1757_vm0, %v1851_v54  ;;  %5192 = vmatmul.msk.f32.gmra.mxu2 %vm1757_vm0, %v1851_v54  ;;  %v1061_v30 = vadd.f32 %v1024_v34, %v723_v22 }
 0x19d   : > { %v2624_v17 = vld [vmem:[#allocation2 + $0x92] sm:$0xff]  ;;  %v2909_v15 = vadd.f32 %v6282_v0, %v2871_v21  ;;  %5157 = vmatmul.msk.f32.gmra.mxu1 %vm1757_vm0, %v1814_v25  ;;  %1293 = vperm.xlu1 %5500, %v1112_v23  }
 0x19e   : > { %5230 = vmatmul.msk.f32.gmra.mxu3 %vm1757_vm0, %v2624_v17  ;;  %v2003_v14 = vpop.f32.mrf.mxu0  ;;  %1778 = vst.msk [vmem:[#allocation2 + $0xa0] sm:$0xff] %vm1757_vm0, %v1740_v28  ;;  %1594 = vperm.xlu2 %5501, %v1413_v24   ;;  %v2484_v35 = vpop.f32.mrf.mxu2  ;;  %v1362_v41 = vadd.f32 %v1325_v37, %v1061_v30  ;;  %v1414_v21 = vld [vmem:[%s5754_s18 + $0x132] sm:$0xff]  ;;  %v1628_v37 = vmul.f32 %v6231_v8, %v6332_v16  ;;  %s5619_s18 = smov 16  }
 0x19f   : > { %v2943_v27 = vmax.f32 %v2909_v15, 0.0  ;;  %v2225_v32 = vadd.f32 %v2224_v20, %v2003_v14  ;;  %v627_v5 = vpop.permute.xlu1 %626  ;;  %v2778_v33 = vpop.f32.mrf.mxu3  ;;  %v725_v15 = vmul.f32 %v6204_v44, %v6310_v58 }
 0x1a0   : > { %992 = vperm.xlu0 %5499, %v811_v29   ;;  %v2227_v10 = vpop.f32.mrf.mxu1  ;;  %v724_v59 = vmul.f32 %v6204_v44, %v627_v5  ;;  %v6348_v45 = vpop.permute.xlu2 %1238 }
 0x1a1   : > { %2978 = vst.msk [vmem:[#allocation3 + $0x18] sm:$0xff] %vm2974_vm1, %v2943_v27  ;;  %v2578_v31 = vadd.f32 %v2484_v35, %v2225_v32  ;;  %v1525_v39 = vpop.permute.xlu0 %1524 }
 0x1a2   : > { %v1626_v51 = vmul.f32 %v6231_v8, %v1525_v39  ;;  %v1062_v38 = vadd.f32 %v1025_v49, %v724_v59 }
 0x1a3   : > { %v2872_v40 = vadd.f32 %v2778_v33, %v2578_v31 }
 0x1a4   : > { %v1663_v52 = vadd.f32 %v1626_v51, %v1362_v41 }
 0x1a5   : > { %v2910_v56 = vadd.f32 %v6282_v0, %v2872_v40  ;;  %v1852_v48 = vld [vmem:[#allocation2 + $0x99] sm:$0xff]  ;;  %997 = vperm.xlu1 %5500, %v812_v42  }
 0x1a6   : > { %v1815_v47 = vld [vmem:[#allocation2 + $0xa0] sm:$0xff]  ;;  %v2006_v50 = vpop.f32.mrf.mxu0  ;;  %v1704_v19 = vadd.f32 %v6240_v12, %v1663_v52  ;;  %5123 = vmatmul.msk.f32.gmra.mxu0 %vm1757_vm0, %v1852_v48  ;;  %5193 = vmatmul.msk.f32.gmra.mxu2 %vm1757_vm0, %v1852_v48 }
 0x1a7   : > { %v2625_v53 = vld [vmem:[#allocation2 + $0x9a] sm:$0xff]  ;;  %v2944_v43 = vmax.f32 %v2910_v56, 0.0  ;;  %5158 = vmatmul.msk.f32.gmra.mxu1 %vm1757_vm0, %v1815_v47  ;;  %v2228_v61 = vadd.f32 %v2227_v10, %v2006_v50  ;;  %v1530_v60 = vpop.permute.xlu1 %1529  ;;  %1298 = vperm.xlu2 %5501, %v1113_v36  }
 0x1a8   : > { %5231 = vmatmul.msk.f32.gmra.mxu3 %vm1757_vm0, %v2625_v53  ;;  %v1741_v6 = vmax.f32 %v1704_v19, 0.0  ;;  %v2487_v3 = vpop.f32.mrf.mxu2  ;;  %696 = vperm.xlu0 %5499, %v512_v55   ;;  %v1627_v11 = vmul.f32 %v6231_v8, %v1530_v60  ;;  %v6364_v23 = vpop.permute.xlu2 %942 }
 0x1a9   : > { %2979 = vst.msk [vmem:[#allocation3 + $0x20] sm:$0xff] %vm2974_vm1, %v2944_v43  ;;  %v2579_v62 = vadd.f32 %v2487_v3, %v2228_v61  ;;  %v1229_v7 = vpop.permute.xlu0 %1228  ;;  %v2781_v1 = vpop.f32.mrf.mxu3 }
 0x1aa   : > { %1779 = vst.msk [vmem:[#allocation2 + $0xa8] sm:$0xff] %vm1757_vm0, %v1741_v6  ;;  %v1326_v63 = vmul.f32 %v6224_v4, %v1229_v7  ;;  %v2230_v29 = vpop.f32.mrf.mxu1  ;;  %v1328_v6 = vmul.f32 %v6224_v4, %v6348_v45 }
 0x1ab   : > { %v2873_v2 = vadd.f32 %v2781_v1, %v2579_v62 }
 0x1ac   : > { %v1363_v26 = vadd.f32 %v1326_v63, %v1062_v38 }
 0x1ad   : > { %v2911_v13 = vadd.f32 %v6282_v0, %v2873_v2 }
 0x1ae   : > { %v1664_v18 = vadd.f32 %v1627_v11, %v1363_v26  ;;  %v2009_v20 = vpop.f32.mrf.mxu0 }
 0x1af   : > { %v2945_v34 = vmax.f32 %v2911_v13, 0.0  ;;  %v1234_v22 = vpop.permute.xlu1 %1233  ;;  %v2231_v30 = vadd.f32 %v2230_v29, %v2009_v20 }
 0x1b0   : > { %v1705_v24 = vadd.f32 %v6240_v12, %v1664_v18  ;;  %1599 = vperm.xlu0 %5499, %v1414_v21   ;;  %v1327_v32 = vmul.f32 %v6224_v4, %v1234_v22  ;;  %v6380_v52 = vpop.permute.xlu2 %646 }
 0x1b1   : > { %2980 = vst.msk [vmem:[#allocation3 + $0x28] sm:$0xff] %vm2974_vm1, %v2945_v34  ;;  %v933_v54 = vpop.permute.xlu0 %932  ;;  %v1853_v25 = vld [vmem:[#allocation2 + $0xa1] sm:$0xff] }
 0x1b2   : > { %v1816_v17 = vld [vmem:[#allocation2 + $0xa8] sm:$0xff]  ;;  %v1742_v14 = vmax.f32 %v1705_v24, 0.0  ;;  %v1026_v27 = vmul.f32 %v6212_v46, %v933_v54  ;;  %5124 = vmatmul.msk.f32.gmra.mxu0 %vm1757_vm0, %v1853_v25  ;;  %5194 = vmatmul.msk.f32.gmra.mxu2 %vm1757_vm0, %v1853_v25  ;;  %v2233_v43 = vpop.f32.mrf.mxu1  ;;  %v1028_v25 = vmul.f32 %v6212_v46, %v6364_v23 }
 0x1b3   : > { %v2626_v28 = vld [vmem:[#allocation2 + $0xa2] sm:$0xff]  ;;  %5159 = vmatmul.msk.f32.gmra.mxu1 %vm1757_vm0, %v1816_v17 }
 0x1b4   : > { %5232 = vmatmul.msk.f32.gmra.mxu3 %vm1757_vm0, %v2626_v28  ;;  %1780 = vst.msk [vmem:[#allocation2 + $0xb0] sm:$0xff] %vm1757_vm0, %v1742_v14  ;;  %v1063_v35 = vadd.f32 %v1026_v27, %v725_v15  ;;  %v2490_v5 = vpop.f32.mrf.mxu2 }
 0x1b5   : > { %v2580_v58 = vadd.f32 %v2490_v5, %v2231_v30  ;;  %v2784_v33 = vpop.f32.mrf.mxu3 }
 0x1b6   : > { %v1364_v31 = vadd.f32 %v1327_v32, %v1063_v35  ;;  %v2012_v36 = vpop.f32.mrf.mxu0 }
 0x1b7   : > { %v2874_v39 = vadd.f32 %v2784_v33, %v2580_v58  ;;  %v938_v40 = vpop.permute.xlu1 %937  ;;  %v2234_v19 = vadd.f32 %v2233_v43, %v2012_v36  ;;  %v728_v36 = vmul.f32 %v6204_v44, %v6380_v52 }
 0x1b8   : > { %v1665_v41 = vadd.f32 %v1628_v37, %v1364_v31  ;;  %v1027_v10 = vmul.f32 %v6212_v46, %v938_v40  ;;  %v1550_v2 = vpop.permute.xlu2 %1549 }
 0x1b9   : > { %v2912_v51 = vadd.f32 %v6282_v0, %v2874_v39  ;;  %v637_v56 = vpop.permute.xlu0 %636 }
 0x1ba   : > { %v1706_v42 = vadd.f32 %v6240_v12, %v1665_v41  ;;  %v726_v48 = vmul.f32 %v6204_v44, %v637_v56  ;;  %v2236_v22 = vpop.f32.mrf.mxu1 }
 0x1bb   : > { %v2946_v47 = vmax.f32 %v2912_v51, 0.0  ;;  %v1854_v53 = vld [vmem:[#allocation2 + $0xa9] sm:$0xff] }
 0x1bc   : > { %v1817_v16 = vld [vmem:[#allocation2 + $0xb0] sm:$0xff]  ;;  %v1743_v59 = vmax.f32 %v1706_v42, 0.0  ;;  %5125 = vmatmul.msk.f32.gmra.mxu0 %vm1757_vm0, %v1854_v53  ;;  %5195 = vmatmul.msk.f32.gmra.mxu2 %vm1757_vm0, %v1854_v53  ;;  %v1064_v55 = vadd.f32 %v1027_v10, %v726_v48 }
 0x1bd   : > { %v2627_v50 = vld [vmem:[#allocation2 + $0xaa] sm:$0xff]  ;;  %5160 = vmatmul.msk.f32.gmra.mxu1 %vm1757_vm0, %v1817_v16  ;;  %2981 = vst.msk [vmem:[#allocation3 + $0x30] sm:$0xff] %vm2974_vm1, %v2946_v47 }
 0x1be   : > { %5233 = vmatmul.msk.f32.gmra.mxu3 %vm1757_vm0, %v2627_v50  ;;  %1781 = vst.msk [vmem:[#allocation2 + $0xb8] sm:$0xff] %vm1757_vm0, %v1743_v59  ;;  %v2493_v61 = vpop.f32.mrf.mxu2  ;;  %v1365_v38 = vadd.f32 %v1328_v6, %v1064_v55  ;;  %v2015_v11 = vpop.f32.mrf.mxu0  ;;  %v1631_v59 = vmul.f32 %v6231_v8, %v1550_v2 }
 0x1bf   : > { %v2581_v60 = vadd.f32 %v2493_v61, %v2234_v19  ;;  %v642_v49 = vpop.permute.xlu1 %641  ;;  %v2787_v3 = vpop.f32.mrf.mxu3  ;;  %v2237_v20 = vadd.f32 %v2236_v22, %v2015_v11 }
 0x1c0   : > { %v727_v24 = vmul.f32 %v6204_v44, %v642_v49  ;;  %v1254_v37 = vpop.permute.xlu2 %1253 }
 0x1c1   : > { %v2875_v62 = vadd.f32 %v2787_v3, %v2581_v60  ;;  %v1540_v7 = vpop.permute.xlu0 %1539 }
 0x1c2   : > { %v1629_v1 = vmul.f32 %v6231_v8, %v1540_v7  ;;  %v1065_v14 = vadd.f32 %v1028_v25, %v727_v24  ;;  %v2239_v10 = vpop.f32.mrf.mxu1 }
 0x1c3   : > { %v2913_v63 = vadd.f32 %v6282_v0, %v2875_v62 }
 0x1c4   : > { %v1666_v26 = vadd.f32 %v1629_v1, %v1365_v38 }
 0x1c5   : > { %v2947_v13 = vmax.f32 %v2913_v63, 0.0  ;;  %v1855_v18 = vld [vmem:[#allocation2 + $0xb1] sm:$0xff] }
 0x1c6   : > { %v1818_v21 = vld [vmem:[#allocation2 + $0xb8] sm:$0xff]  ;;  %v1707_v45 = vadd.f32 %v6240_v12, %v1666_v26  ;;  %5126 = vmatmul.msk.f32.gmra.mxu0 %vm1757_vm0, %v1855_v18  ;;  %5196 = vmatmul.msk.f32.gmra.mxu2 %vm1757_vm0, %v1855_v18  ;;  %v2018_v39 = vpop.f32.mrf.mxu0 }
 0x1c7   : > { %v2628_v34 = vld [vmem:[#allocation2 + $0xb2] sm:$0xff]  ;;  %5161 = vmatmul.msk.f32.gmra.mxu1 %vm1757_vm0, %v1818_v21  ;;  %2982 = vst.msk [vmem:[#allocation3 + $0x38] sm:$0xff] %vm2974_vm1, %v2947_v13  ;;  %v1545_v54 = vpop.permute.xlu1 %1544  ;;  %v2240_v53 = vadd.f32 %v2239_v10, %v2018_v39 }
 0x1c8   : > { %5234 = vmatmul.msk.f32.gmra.mxu3 %vm1757_vm0, %v2628_v34  ;;  %v1744_v17 = vmax.f32 %v1707_v45, 0.0  ;;  %v2496_v28 = vpop.f32.mrf.mxu2  ;;  %v1630_v35 = vmul.f32 %v6231_v8, %v1545_v54  ;;  %v958_v49 = vpop.permute.xlu2 %957  ;;  %v1331_v54 = vmul.f32 %v6224_v4, %v1254_v37 }
 0x1c9   : > { %v2582_v15 = vadd.f32 %v2496_v28, %v2237_v20  ;;  %v1244_v29 = vpop.permute.xlu0 %1243  ;;  %v2790_v27 = vpop.f32.mrf.mxu3 }
 0x1ca   : > { %1782 = vst.msk [vmem:[#allocation2 + $0xc0] sm:$0xff] %vm1757_vm0, %v1744_v17  ;;  %v1329_v30 = vmul.f32 %v6224_v4, %v1244_v29  ;;  %v2242_v18 = vpop.f32.mrf.mxu1 }
 0x1cb   : > { %v2876_v32 = vadd.f32 %v2790_v27, %v2582_v15 }
 0x1cc   : > { %v1366_v5 = vadd.f32 %v1329_v30, %v1065_v14 }
 0x1cd   : > { %v2914_v58 = vadd.f32 %v6282_v0, %v2876_v32 }
 0x1ce   : > { %v1667_v31 = vadd.f32 %v1630_v35, %v1366_v5  ;;  %v2021_v7 = vpop.f32.mrf.mxu0 }
 0x1cf   : > { %v2948_v33 = vmax.f32 %v2914_v58, 0.0  ;;  %v1249_v23 = vpop.permute.xlu1 %1248  ;;  %v2243_v34 = vadd.f32 %v2242_v18, %v2021_v7 }
 0x1d0   : > { %v1708_v40 = vadd.f32 %v6240_v12, %v1667_v31  ;;  %v1330_v16 = vmul.f32 %v6224_v4, %v1249_v23  ;;  %v662_v15 = vpop.permute.xlu2 %661 }
 0x1d1   : > { %2983 = vst.msk [vmem:[#allocation3 + $0x40] sm:$0xff] %vm2974_vm1, %v2948_v33  ;;  %v948_v41 = vpop.permute.xlu0 %947  ;;  %v1856_v51 = vld [vmem:[#allocation2 + $0xb9] sm:$0xff]  ;;  %v731_v7 = vmul.f32 %v6204_v44, %v662_v15 }
 0x1d2   : > { %v1819_v56 = vld [vmem:[#allocation2 + $0xc0] sm:$0xff]  ;;  %v1745_v48 = vmax.f32 %v1708_v40, 0.0  ;;  %v1029_v47 = vmul.f32 %v6212_v46, %v948_v41  ;;  %5127 = vmatmul.msk.f32.gmra.mxu0 %vm1757_vm0, %v1856_v51  ;;  %5197 = vmatmul.msk.f32.gmra.mxu2 %vm1757_vm0, %v1856_v51  ;;  %v2245_v33 = vpop.f32.mrf.mxu1  ;;  %v1031_v41 = vmul.f32 %v6212_v46, %v958_v49 }
 0x1d3   : > { %v2629_v42 = vld [vmem:[#allocation2 + $0xba] sm:$0xff]  ;;  %5162 = vmatmul.msk.f32.gmra.mxu1 %vm1757_vm0, %v1819_v56 }
 0x1d4   : > { %5235 = vmatmul.msk.f32.gmra.mxu3 %vm1757_vm0, %v2629_v42  ;;  %1783 = vst.msk [vmem:[#allocation2 + $0xc8] sm:$0xff] %vm1757_vm0, %v1745_v48  ;;  %v1066_v50 = vadd.f32 %v1029_v47, %v728_v36  ;;  %v2499_v43 = vpop.f32.mrf.mxu2 }
 0x1d5   : > { %v2583_v52 = vadd.f32 %v2499_v43, %v2240_v53  ;;  %v2793_v55 = vpop.f32.mrf.mxu3 }
 0x1d6   : > { %v1367_v19 = vadd.f32 %v1330_v16, %v1066_v50  ;;  %v2024_v30 = vpop.f32.mrf.mxu0 }
 0x1d7   : > { %v2877_v61 = vadd.f32 %v2793_v55, %v2583_v52  ;;  %v953_v60 = vpop.permute.xlu1 %952  ;;  %v2246_v39 = vadd.f32 %v2245_v33, %v2024_v30 }
 0x1d8   : > { %v1668_v6 = vadd.f32 %v1631_v59, %v1367_v19  ;;  %v1030_v1 = vmul.f32 %v6212_v46, %v953_v60  ;;  %v1565_v16 = vpop.permute.xlu2 %1564 }
 0x1d9   : > { %v2915_v3 = vadd.f32 %v6282_v0, %v2877_v61  ;;  %v652_v62 = vpop.permute.xlu0 %651  ;;  %v1634_v18 = vmul.f32 %v6231_v8, %v1565_v16 }
 0x1da   : > { %v1709_v38 = vadd.f32 %v6240_v12, %v1668_v6  ;;  %v729_v63 = vmul.f32 %v6204_v44, %v652_v62 }
 0x1db   : > { %v2949_v11 = vmax.f32 %v2915_v3, 0.0  ;;  %v1857_v26 = vld [vmem:[#allocation2 + $0xc1] sm:$0xff] }
 0x1dc   : > { %v1820_v13 = vld [vmem:[#allocation2 + $0xc8] sm:$0xff]  ;;  %v1746_v21 = vmax.f32 %v1709_v38, 0.0  ;;  %5128 = vmatmul.msk.f32.gmra.mxu0 %vm1757_vm0, %v1857_v26  ;;  %5198 = vmatmul.msk.f32.gmra.mxu2 %vm1757_vm0, %v1857_v26  ;;  %v1067_v22 = vadd.f32 %v1030_v1, %v729_v63  ;;  %v2248_v63 = vpop.f32.mrf.mxu1 }
 0x1dd   : > { %v2630_v2 = vld [vmem:[#allocation2 + $0xc2] sm:$0xff]  ;;  %5163 = vmatmul.msk.f32.gmra.mxu1 %vm1757_vm0, %v1820_v13  ;;  %2984 = vst.msk [vmem:[#allocation3 + $0x48] sm:$0xff] %vm2974_vm1, %v2949_v11 }
 0x1de   : > { %5236 = vmatmul.msk.f32.gmra.mxu3 %vm1757_vm0, %v2630_v2  ;;  %1784 = vst.msk [vmem:[#allocation2 + $0xd0] sm:$0xff] %vm1757_vm0, %v1746_v21  ;;  %v2502_v24 = vpop.f32.mrf.mxu2  ;;  %v1368_v29 = vadd.f32 %v1331_v54, %v1067_v22  ;;  %v2027_v60 = vpop.f32.mrf.mxu0 }
 0x1df   : > { %v2584_v45 = vadd.f32 %v2502_v24, %v2243_v34  ;;  %v657_v20 = vpop.permute.xlu1 %656  ;;  %v2796_v25 = vpop.f32.mrf.mxu3  ;;  %v2249_v11 = vadd.f32 %v2248_v63, %v2027_v60 }
 0x1e0   : > { %v730_v23 = vmul.f32 %v6204_v44, %v657_v20  ;;  %v1269_v21 = vpop.permute.xlu2 %1268 }
 0x1e1   : > { %v2878_v17 = vadd.f32 %v2796_v25, %v2584_v45  ;;  %v1555_v28 = vpop.permute.xlu0 %1554 }
 0x1e2   : > { %v1632_v14 = vmul.f32 %v6231_v8, %v1555_v28  ;;  %v1068_v10 = vadd.f32 %v1031_v41, %v730_v23 }
 0x1e3   : > { %v2916_v27 = vadd.f32 %v6282_v0, %v2878_v17 }
 0x1e4   : > { %v1669_v32 = vadd.f32 %v1632_v14, %v1368_v29 }
 0x1e5   : > { %v2950_v35 = vmax.f32 %v2916_v27, 0.0  ;;  %v1858_v5 = vld [vmem:[#allocation2 + $0xc9] sm:$0xff] }
 0x1e6   : > { %v1821_v58 = vld [vmem:[#allocation2 + $0xd0] sm:$0xff]  ;;  %v1710_v37 = vadd.f32 %v6240_v12, %v1669_v32  ;;  %5129 = vmatmul.msk.f32.gmra.mxu0 %vm1757_vm0, %v1858_v5  ;;  %5199 = vmatmul.msk.f32.gmra.mxu2 %vm1757_vm0, %v1858_v5  ;;  %v2030_v15 = vpop.f32.mrf.mxu0 }
 0x1e7   : > { %v2631_v31 = vld [vmem:[#allocation2 + $0xca] sm:$0xff]  ;;  %5164 = vmatmul.msk.f32.gmra.mxu1 %vm1757_vm0, %v1821_v58  ;;  %2985 = vst.msk [vmem:[#allocation3 + $0x50] sm:$0xff] %vm2974_vm1, %v2950_v35  ;;  %v1560_v40 = vpop.permute.xlu1 %1559  ;;  %v2251_v58 = vpop.f32.mrf.mxu1 }
 0x1e8   : > { %5237 = vmatmul.msk.f32.gmra.mxu3 %vm1757_vm0, %v2631_v31  ;;  %v1747_v51 = vmax.f32 %v1710_v37, 0.0  ;;  %v2505_v56 = vpop.f32.mrf.mxu2  ;;  %v1633_v50 = vmul.f32 %v6231_v8, %v1560_v40  ;;  %v2252_v31 = vadd.f32 %v2251_v58, %v2030_v15  ;;  %v5321_v37 = vld [vmem:[%s7695_s5 + $0x88] sm:$0xff]  ;;  %v973_v40 = vpop.permute.xlu2 %972 }
 0x1e9   : > { %v2585_v42 = vadd.f32 %v2505_v56, %v2246_v39  ;;  %v1259_v36 = vpop.permute.xlu0 %1258  ;;  %v2799_v48 = vpop.f32.mrf.mxu3  ;;  %v1334_v39 = vmul.f32 %v6224_v4, %v1269_v21  ;;  %3631 = vmatpush.msrb.mxu2 %v5321_v37 }
 0x1ea   : > { %1785 = vst.msk [vmem:[#allocation2 + $0xd8] sm:$0xff] %vm1757_vm0, %v1747_v51  ;;  %v1332_v47 = vmul.f32 %v6224_v4, %v1259_v36 }
 0x1eb   : > { %v2879_v53 = vadd.f32 %v2799_v48, %v2585_v42 }
 0x1ec   : > { %v1369_v43 = vadd.f32 %v1332_v47, %v1068_v10  ;;  %v5253_v10 = vld [vmem:[%s7695_s5 + $0x58] sm:$0xff] }
 0x1ed   : > { %v2917_v52 = vadd.f32 %v6282_v0, %v2879_v53  ;;  %3187 = vmatpush.msrb.mxu0 %v5253_v10 }
 0x1ee   : > { %v1670_v59 = vadd.f32 %v1633_v50, %v1369_v43 }
 0x1ef   : > { %v2951_v19 = vmax.f32 %v2917_v52, 0.0  ;;  %v1264_v55 = vpop.permute.xlu1 %1263 }
 0x1f0   : > { %v1711_v61 = vadd.f32 %v6240_v12, %v1670_v59  ;;  %v1333_v26 = vmul.f32 %v6224_v4, %v1264_v55  ;;  %v2033_v4 = vpop.f32.mrf.mxu0  ;;  %v2254_v59 = vpop.f32.mrf.mxu1 }
 0x1f1   : > { %2986 = vst.msk [vmem:[#allocation3 + $0x58] sm:$0xff] %vm2974_vm1, %v2951_v19  ;;  %v963_v49 = vpop.permute.xlu0 %962  ;;  %v1859_v6 = vld [vmem:[#allocation2 + $0xd1] sm:$0xff]  ;;  %v6487_v19 = vld [vmem:[%s7692_s1] ss:$0 sm:$0xff]  ;;  %v2255_v60 = vadd.f32 %v2254_v59, %v2033_v4  ;;  %v692_v63 = vpop.permute.xlu2 %691 }
 0x1f2   : > { %v1822_v3 = vld [vmem:[#allocation2 + $0xd8] sm:$0xff]  ;;  %v1748_v38 = vmax.f32 %v1711_v61, 0.0  ;;  %v1032_v1 = vmul.f32 %v6212_v46, %v963_v49  ;;  %5130 = vmatmul.msk.f32.gmra.mxu0 %vm1757_vm0, %v1859_v6  ;;  %5200 = vmatmul.msk.f32.gmra.mxu2 %vm1757_vm0, %v1859_v6 }
 0x1f3   : > { %v2632_v62 = vld [vmem:[#allocation2 + $0xd2] sm:$0xff]  ;;  %5165 = vmatmul.msk.f32.gmra.mxu1 %vm1757_vm0, %v1822_v3  ;;  %v3045_v3 = vld [vmem:[%s7695_s5 + $0x28] sm:$0xff] }
 0x1f4   : > { %5238 = vmatmul.msk.f32.gmra.mxu3 %vm1757_vm0, %v2632_v62  ;;  %1786 = vst.msk [vmem:[#allocation2 + $0xe0] sm:$0xff] %vm1757_vm0, %v1748_v38  ;;  %v1069_v13 = vadd.f32 %v1032_v1, %v731_v7  ;;  %v5358_v6 = vld [vmem:[%s7695_s5 + $0xb8] sm:$0xff]  ;;  %v6502_v62 = vld [vmem:[%s7692_s1 + $0x1] ss:$0 sm:$0xff]  ;;  %3390 = vmatpush.msra.mxu1 %v3045_v3 }
 0x1f5   : > { %v2508_v2 = vpop.f32.mrf.mxu2  ;;  %v1034_v7 = vmul.f32 %v6502_v62, %v973_v40  ;;  %3903 = vmatpush.msrb.mxu3 %v5358_v6  ;;  %v5250_v1 = vld [vmem:[%s7695_s5 + $0x40] sm:$0xff] }
 0x1f6   : > { %v1370_v34 = vadd.f32 %v1333_v26, %v1069_v13  ;;  %v2586_v22 = vadd.f32 %v2508_v2, %v2249_v11  ;;  %v3040_v40 = vld [vmem:[%s7695_s5] sm:$0xff] }
 0x1f7   : > { %v2802_v24 = vpop.f32.mrf.mxu3  ;;  %v968_v45 = vpop.permute.xlu1 %967 }
 0x1f8   : > { %v1671_v20 = vadd.f32 %v1634_v18, %v1370_v34  ;;  %v2880_v54 = vadd.f32 %v2802_v24, %v2586_v22  ;;  %v1033_v29 = vmul.f32 %v6212_v46, %v968_v45  ;;  %v6512_v18 = vld [vmem:[%s7692_s1 + $0x2] ss:$0 sm:$0xff]  ;;  %v5249_v34 = vld [vmem:[%s7695_s5 + $0x38] sm:$0xff]  ;;  %v6524_v45 = vld [vmem:[%s7692_s1 + $0x3] ss:$0 sm:$0xff]  ;;  %s7701_s1 = smov 48  }
 0x1f9   : > { %v3044_v24 = vld [vmem:[%s7695_s5 + $0x20] sm:$0xff] }
 0x1fa   : > { %v1712_v25 = vadd.f32 %v6240_v12, %v1671_v20  ;;  %v2918_v17 = vadd.f32 %v6282_v0, %v2880_v54  ;;  %v667_v28 = vpop.permute.xlu0 %666  ;;  %3391 = vmatpush.msra.mxu1 %v3044_v24 }
 0x1fb   : > { %v732_v14 = vmul.f32 %v6204_v44, %v667_v28  ;;  %v1860_v27 = vld [vmem:[#allocation2 + $0xd9] sm:$0xff] }
 0x1fc   : > { %v1823_v30 = vld [vmem:[#allocation2 + $0xe0] sm:$0xff]  ;;  %v1749_v35 = vmax.f32 %v1712_v25, 0.0  ;;  %v2952_v5 = vmax.f32 %v2918_v17, 0.0  ;;  %5131 = vmatmul.msk.f32.gmra.mxu0 %vm1757_vm0, %v1860_v27  ;;  %5201 = vmatmul.msk.f32.gmra.mxu2 %vm1757_vm0, %v1860_v27  ;;  %v5248_v25 = vld [vmem:[%s7695_s5 + $0x30] sm:$0xff]  ;;  %v3043_v28 = vld [vmem:[%s7695_s5 + $0x18] sm:$0xff] }
 0x1fd   : > { %v2633_v32 = vld [vmem:[#allocation2 + $0xda] sm:$0xff]  ;;  %5166 = vmatmul.msk.f32.gmra.mxu1 %vm1757_vm0, %v1823_v30  ;;  %v1070_v44 = vadd.f32 %v1033_v29, %v732_v14  ;;  %v3042_v27 = vld [vmem:[%s7695_s5 + $0x10] sm:$0xff]  ;;  %v2036_v30 = vpop.f32.mrf.mxu0 }
 0x1fe   : > { %5239 = vmatmul.msk.f32.gmra.mxu3 %vm1757_vm0, %v2633_v32  ;;  %1787 = vst.msk [vmem:[#allocation2 + $0xe8] sm:$0xff] %vm1757_vm0, %v1749_v35  ;;  %3392 = vmatpush.msra.mxu1 %v3043_v28  ;;  %v6540_v32 = vld [vmem:[%s7693_s2] ss:$0 sm:$0xff]  ;;  %s5625_s2 = smov 112  }
 0x1ff   : > { %2987 = vst.msk [vmem:[#allocation3 + $0x60] sm:$0xff] %vm2974_vm1, %v2952_v5  ;;  %v2511_v46 = vpop.f32.mrf.mxu2  ;;  %v672_v23 = vpop.permute.xlu1 %671  ;;  %v1371_v42 = vadd.f32 %v1334_v39, %v1070_v44 }
 0x200   : > { %v2587_v33 = vadd.f32 %v2511_v46, %v2252_v31  ;;  %v733_v55 = vmul.f32 %v6487_v19, %v672_v23  ;;  %3393 = vmatpush.msra.mxu1 %v3042_v27  ;;  %v3041_v46 = vld [vmem:[%s7695_s5 + $0x8] sm:$0xff]  ;;  %v737_v23 = vmul.f32 %v6487_v19, %v692_v63 }
 0x201   : > { %v2805_v41 = vpop.f32.mrf.mxu3  ;;  %v5356_v27 = vld [vmem:[%s7695_s5 + $0xa8] sm:$0xff] }
 0x202   : > { %v2881_v51 = vadd.f32 %v2805_v41, %v2587_v33  ;;  %v1570_v56 = vpop.permute.xlu0 %1569  ;;  %v1071_v13 = vadd.f32 %v1034_v7, %v733_v55  ;;  %v2257_v33 = vpop.f32.mrf.mxu1  ;;  %3394 = vmatpush.msra.mxu1 %v3041_v46  ;;  %v1828_v46 = vld [vmem:[#allocation2 + $0x108] sm:$0xff] }
 0x203   : > { %v1635_v36 = vmul.f32 %v6231_v8, %v1570_v56  ;;  %v5252_v8 = vld [vmem:[%s7695_s5 + $0x50] sm:$0xff]  ;;  %v1595_v41 = vpop.permute.xlu2 %1594 }
 0x204   : > { %v2919_v48 = vadd.f32 %v6282_v0, %v2881_v51  ;;  %3188 = vmatpush.msrb.mxu0 %v5252_v8  ;;  %v2258_v51 = vadd.f32 %v2257_v33, %v2036_v30  ;;  %3395 = vmatpush.msra.mxu1 %v3040_v40  ;;  %v2344_v40 = vld [vmem:[#allocation2 + $0x101] sm:$0xff] }
 0x205   : > { %v1672_v47 = vadd.f32 %v1635_v36, %v1371_v42  ;;  %v1861_v53 = vld [vmem:[#allocation2 + $0xe1] sm:$0xff] }
 0x206   : > { %v1824_v16 = vld [vmem:[#allocation2 + $0xe8] sm:$0xff]  ;;  %v2953_v43 = vmax.f32 %v2919_v48, 0.0  ;;  %5132 = vmatmul.msk.f32.gmra.mxu0 %vm1757_vm0, %v1861_v53  ;;  %5202 = vmatmul.msk.f32.gmra.mxu2 %vm1757_vm0, %v1861_v53  ;;  %v1640_v48 = vmul.f32 %v6524_v45, %v1595_v41 }
 0x207   : > { %v2634_v50 = vld [vmem:[#allocation2 + $0xe2] sm:$0xff]  ;;  %5167 = vmatmul.msk.f32.gmra.mxu1 %vm1757_vm0, %v1824_v16  ;;  %v1713_v52 = vadd.f32 %v6240_v12, %v1672_v47  ;;  %v1575_v61 = vpop.permute.xlu1 %1574 }
 0x208   : > { %5240 = vmatmul.msk.f32.gmra.mxu3 %vm1757_vm0, %v2634_v50  ;;  %2988 = vst.msk [vmem:[#allocation3 + $0x68] sm:$0xff] %vm2974_vm1, %v2953_v43  ;;  %v5251_v12 = vld [vmem:[%s7695_s5 + $0x48] sm:$0xff]  ;;  %v1636_v20 = vmul.f32 %v6524_v45, %v1575_v61 }
 0x209   : > { %v1750_v49 = vmax.f32 %v1713_v52, 0.0  ;;  %3189 = vmatpush.msrb.mxu0 %v5251_v12  ;;  %v2039_v52 = vpop.f32.mrf.mxu0  ;;  %v2638_v41 = vld [vmem:[#allocation2 + $0x102] sm:$0xff] }
 0x20a   : > { %v2514_v38 = vpop.f32.mrf.mxu2  ;;  %v1274_v26 = vpop.permute.xlu0 %1273 }
 0x20b   : > { %1788 = vst.msk [vmem:[#allocation2 + $0xf0] sm:$0xff] %vm1757_vm0, %v1750_v49  ;;  %v2588_v11 = vadd.f32 %v2514_v38, %v2255_v60  ;;  %v2808_v2 = vpop.f32.mrf.mxu3  ;;  %v1335_v21 = vmul.f32 %v6512_v18, %v1274_v26  ;;  %3190 = vmatpush.msrb.mxu0 %v5250_v1  ;;  %v2260_v3 = vpop.f32.mrf.mxu1 }
 0x20c   : > { %v1299_v38 = vpop.permute.xlu2 %1298 }
 0x20d   : > { %v2882_v22 = vadd.f32 %v2808_v2, %v2588_v11  ;;  %v1372_v54 = vadd.f32 %v1335_v21, %v1071_v13  ;;  %3191 = vmatpush.msrb.mxu0 %v5249_v34  ;;  %v1340_v63 = vmul.f32 %v6512_v18, %v1299_v38  ;;  %v1827_v34 = vld [vmem:[#allocation2 + $0x100] sm:$0xff] }
 0x20f   : > { %v2920_v17 = vadd.f32 %v6282_v0, %v2882_v22  ;;  %v1673_v15 = vadd.f32 %v1636_v20, %v1372_v54  ;;  %v1294_v29 = vpop.permute.xlu1 %1293  ;;  %3192 = vmatpush.msrb.mxu0 %v5248_v25  ;;  %v6574_v22 = vld [vmem:[%s7694_s4] ss:$0 sm:$0xff] }
 0x210   : > { %v1339_v56 = vmul.f32 %v6512_v18, %v1294_v29  ;;  %v5320_v54 = vld [vmem:[%s7695_s5 + $0x80] sm:$0xff]  ;;  %v5357_v18 = vld [vmem:[%s7695_s5 + $0xb0] sm:$0xff] }
 0x211   : > { %v2954_v14 = vmax.f32 %v2920_v17, 0.0  ;;  %v1714_v35 = vadd.f32 %v6540_v32, %v1673_v15  ;;  %v2042_v25 = vpop.f32.mrf.mxu0  ;;  %v5319_v15 = vld [vmem:[%s7695_s5 + $0x78] sm:$0xff]  ;;  %3632 = vmatpush.msrb.mxu2 %v5320_v54  ;;  %3904 = vmatpush.msrb.mxu3 %v5357_v18 }
 0x212   : > { %v1862_v5 = vld [vmem:[#allocation2 + $0xe9] sm:$0xff]  ;;  %v993_v44 = vpop.permute.xlu0 %992 }
 0x213   : > { %v1825_v58 = vld [vmem:[#allocation2 + $0xf0] sm:$0xff]  ;;  %2989 = vst.msk [vmem:[#allocation3 + $0x70] sm:$0xff] %vm2974_vm1, %v2954_v14  ;;  %5133 = vmatmul.msk.f32.gmra.mxu0 %vm1757_vm0, %v1862_v5  ;;  %v1751_v37 = vmax.f32 %v1714_v35, 0.0  ;;  %v1038_v39 = vmul.f32 %v6502_v62, %v993_v44  ;;  %5203 = vmatmul.msk.f32.gmra.mxu2 %vm1757_vm0, %v1862_v5  ;;  %v2263_v29 = vpop.f32.mrf.mxu1  ;;  %v5355_v5 = vld [vmem:[%s7695_s5 + $0xa0] sm:$0xff] }
 0x214   : > { %v2635_v31 = vld [vmem:[#allocation2 + $0xea] sm:$0xff]  ;;  %5168 = vmatmul.msk.f32.gmra.mxu1 %vm1757_vm0, %v1825_v58  ;;  %v2264_v30 = vadd.f32 %v2263_v29, %v2042_v25  ;;  %3633 = vmatpush.msrb.mxu2 %v5319_v15  ;;  %v3012_v15 = vld [vmem:[#allocation3 + $0x18] sm:$0xff] }
 0x215   : > { %5241 = vmatmul.msk.f32.gmra.mxu3 %vm1757_vm0, %v2635_v31  ;;  %1789 = vst.msk [vmem:[#allocation2 + $0xf8] sm:$0xff] %vm1757_vm0, %v1751_v37  ;;  %v1075_v42 = vadd.f32 %v1038_v39, %v737_v23  ;;  %v2517_v36 = vpop.f32.mrf.mxu2  ;;  %v5318_v35 = vld [vmem:[%s7695_s5 + $0x70] sm:$0xff]  ;;  %v5317_v37 = vld [vmem:[%s7695_s5 + $0x68] sm:$0xff]  ;;  %v5354_v39 = vld [vmem:[%s7695_s5 + $0x98] sm:$0xff] }
 0x216   : > { %v2589_v10 = vadd.f32 %v2517_v36, %v2258_v51  ;;  %3905 = vmatpush.msrb.mxu3 %v5356_v27  ;;  %3634 = vmatpush.msrb.mxu2 %v5318_v35  ;;  %v3046_v23 = vld [vmem:[#allocation3 + $0x1] sm:$0xff]  ;;  %v3762_v29 = vld [vmem:[#allocation3 + $0x12] sm:$0xff] }
 0x217   : > { %v1376_v47 = vadd.f32 %v1339_v56, %v1075_v42  ;;  %v2811_v53 = vpop.f32.mrf.mxu3  ;;  %v998_v4 = vpop.permute.xlu1 %997  ;;  %v5316_v56 = vld [vmem:[%s7695_s5 + $0x60] sm:$0xff]  ;;  %v5353_v42 = vld [vmem:[%s7695_s5 + $0x90] sm:$0xff]  ;;  %s5540_s5 = scalar_lea.hbm %s7674_s14, 6 }
 0x218   : > { %v2883_v16 = vadd.f32 %v2811_v53, %v2589_v10  ;;  %v1039_v55 = vmul.f32 %v6502_v62, %v998_v4  ;;  %3906 = vmatpush.msrb.mxu3 %v5355_v5  ;;  %3635 = vmatpush.msrb.mxu2 %v5317_v37  ;;  %v3047_v53 = vld [vmem:[#allocation3 + $0x9] sm:$0xff] }
 0x219   : > { %v1677_v50 = vadd.f32 %v1640_v48, %v1376_v47  ;;  %v2045_v10 = vpop.f32.mrf.mxu0  ;;  %v2639_v4 = vld [vmem:[#allocation2 + $0x10a] sm:$0xff] }
 0x21a   : > { %v2921_v43 = vadd.f32 %v6282_v0, %v2883_v16  ;;  %v697_v8 = vpop.permute.xlu0 %696  ;;  %v2261_v0 = vadd.f32 %v2260_v3, %v2039_v52  ;;  %3907 = vmatpush.msrb.mxu3 %v5354_v39  ;;  %3636 = vmatpush.msrb.mxu2 %v5316_v56  ;;  %v3009_v16 = vld [vmem:[#allocation3] sm:$0xff]  ;;  %v3014_v56 = vld [vmem:[#allocation3 + $0x28] sm:$0xff] }
 0x21b   : > { %v1718_v59 = vadd.f32 %v6540_v32, %v1677_v50  ;;  %v738_v61 = vmul.f32 %v6487_v19, %v697_v8  ;;  %v2266_v48 = vpop.f32.mrf.mxu1  ;;  %v2345_v50 = vld [vmem:[#allocation2 + $0x109] sm:$0xff] }
 0x21c   : > { %v2955_v12 = vmax.f32 %v2921_v43, 0.0  ;;  %v1863_v60 = vld [vmem:[#allocation2 + $0xf1] sm:$0xff]  ;;  %v1864_v20 = vld [vmem:[#allocation2 + $0xf9] sm:$0xff]  ;;  %3908 = vmatpush.msrb.mxu3 %v5353_v42  ;;  %v2267_v47 = vadd.f32 %v2266_v48, %v2045_v10 }
 0x21d   : > { %v1826_v49 = vld [vmem:[#allocation2 + $0xf8] sm:$0xff]  ;;  %v1755_v7 = vmax.f32 %v1718_v59, 0.0  ;;  %5134 = vmatmul.msk.f32.gmra.mxu0 %vm1757_vm0, %v1863_v60  ;;  %5204 = vmatmul.msk.f32.gmra.mxu2 %vm1757_vm0, %v1863_v60  ;;  %v1076_v19 = vadd.f32 %v1039_v55, %v738_v61  ;;  %v3764_v42 = vld [vmem:[#allocation3 + $0x22] sm:$0xff] }
 0x21e   : > { %v2636_v6 = vld [vmem:[#allocation2 + $0xf2] sm:$0xff]  ;;  %5169 = vmatmul.msk.f32.gmra.mxu1 %vm1757_vm0, %v1826_v49  ;;  %2990 = vst.msk [vmem:[#allocation3 + $0x78] sm:$0xff] %vm2974_vm1, %v2955_v12 }
 0x21f   : > { %5242 = vmatmul.msk.f32.gmra.mxu3 %vm1757_vm0, %v2636_v6  ;;  %1793 = vst.msk [vmem:[#allocation2 + $0x118] sm:$0xff] %vm1757_vm0, %v1755_v7  ;;  %v2520_v62 = vpop.f32.mrf.mxu2  ;;  %v1377_v2 = vadd.f32 %v1340_v63, %v1076_v19  ;;  %v3048_v49 = vld [vmem:[#allocation3 + $0x11] sm:$0xff]  ;;  %v3010_v6 = vld [vmem:[#allocation3 + $0x8] sm:$0xff] }
 0x220   : > { %v2590_v1 = vadd.f32 %v2520_v62, %v2261_v0 }
 0x221   : > { %v2814_v11 = vpop.f32.mrf.mxu3 }
 0x222   : > { %v2884_v26 = vadd.f32 %v2814_v11, %v2590_v1  ;;  %v1600_v13 = vpop.permute.xlu0 %1599 }
 0x223   : > { %v1641_v21 = vmul.f32 %v6524_v45, %v1600_v13  ;;  %v2637_v45 = vld [vmem:[#allocation2 + $0xfa] sm:$0xff]  ;;  %v2269_v55 = vpop.f32.mrf.mxu1  ;;  %v2048_v12 = vpop.f32.mrf.mxu0 }
 0x224   : > { %v2922_v24 = vadd.f32 %v6574_v22, %v2884_v26  ;;  %v2270_v38 = vadd.f32 %v2269_v55, %v2048_v12  ;;  %v3049_v26 = vld [vmem:[#allocation3 + $0x19] sm:$0xff]  ;;  %v3011_v13 = vld [vmem:[#allocation3 + $0x10] sm:$0xff] }
 0x225   : > { %v1678_v17 = vadd.f32 %v1641_v21, %v1377_v2  ;;  %5135 = vmatmul.msk.f32.gmra.mxu0 %vm1757_vm0, %v1864_v20  ;;  %5205 = vmatmul.msk.f32.gmra.mxu2 %vm1757_vm0, %v1864_v20 }
 0x226   : > { %5170 = vmatmul.msk.f32.gmra.mxu1 %vm1757_vm0, %v1827_v34  ;;  %v2956_v28 = vmax.f32 %v2922_v24, 0.0  ;;  %v2346_v3 = vld [vmem:[#allocation2 + $0x111] sm:$0xff] }
 0x227   : > { %5243 = vmatmul.msk.f32.gmra.mxu3 %vm1757_vm0, %v2637_v45  ;;  %v1719_v14 = vadd.f32 %v6540_v32, %v1678_v17  ;;  %v2640_v7 = vld [vmem:[#allocation2 + $0x112] sm:$0xff] }
 0x228   : > { %2991 = vst.msk [vmem:[#allocation3 + $0x80] sm:$0xff] %vm2974_vm1, %v2956_v28  ;;  %v3050_v28 = vld [vmem:[#allocation3 + $0x21] sm:$0xff] }
 0x229   : > { %v1756_v58 = vmax.f32 %v1719_v14, 0.0  ;;  %v2523_v31 = vpop.f32.mrf.mxu2 }
 0x22a   : > { %v2591_v32 = vadd.f32 %v2523_v31, %v2264_v30  ;;  %v3013_v31 = vld [vmem:[#allocation3 + $0x20] sm:$0xff] }
 0x22b   : > { %1794 = vst.msk [vmem:[#allocation2 + $0x120] sm:$0xff] %vm1757_vm0, %v1756_v58  ;;  %v2817_v44 = vpop.f32.mrf.mxu3  ;;  %v2272_v1 = vpop.f32.mrf.mxu1  ;;  %v3051_v58 = vld [vmem:[#allocation3 + $0x29] sm:$0xff] }
 0x22c   : > { %v2885_v33 = vadd.f32 %v2817_v44, %v2591_v32  ;;  %v3763_v32 = vld [vmem:[#allocation3 + $0x1a] sm:$0xff] }
 0x22d   : > { %5254 = vmatmul.msk.f32.vlgmr.msrb.gmra.mxu0 %vm2974_vm1, %v3046_v23  ;;  %5206 = vmatmul.msk.f32.gmra.mxu2 %vm1757_vm0, %v2344_v40 }
 0x22e   : > { %5171 = vmatmul.msk.f32.gmra.mxu1 %vm1757_vm0, %v1828_v46  ;;  %v2923_v51 = vadd.f32 %v6574_v22, %v2885_v33 }
 0x22f   : > { %5244 = vmatmul.msk.f32.gmra.mxu3 %vm1757_vm0, %v2638_v41  ;;  %v2051_v2 = vpop.f32.mrf.mxu0 }
 0x230   : > { %v2957_v36 = vmax.f32 %v2923_v51, 0.0  ;;  %v2273_v20 = vadd.f32 %v2272_v1, %v2051_v2  ;;  %v3052_v51 = vld [vmem:[#allocation3 + $0x31] sm:$0xff]  ;;  %v3767_v2 = vld [vmem:[#allocation3 + $0x3a] sm:$0xff] }
 0x232   : > { %2992 = vst.msk [vmem:[#allocation3 + $0x88] sm:$0xff] %vm2974_vm1, %v2957_v36  ;;  %v2347_v21 = vld [vmem:[#allocation2 + $0x119] sm:$0xff] }
 0x233   : > { %v2641_v34 = vld [vmem:[#allocation2 + $0x11a] sm:$0xff]  ;;  %v2275_v18 = vpop.f32.mrf.mxu1 }
 0x235   : > { %5255 = vmatmul.msk.f32.gmra.mxu0 %vm2974_vm1, %v3047_v53  ;;  %v2526_v43 = vpop.f32.mrf.mxu2  ;;  %5207 = vmatmul.msk.f32.gmra.mxu2 %vm1757_vm0, %v2345_v50 }
 0x236   : > { %5285 = vmatmul.msk.f32.vlgmr.msra.gmra.mxu1 %vm2974_vm1, %v3009_v16  ;;  %v2592_v8 = vadd.f32 %v2526_v43, %v2267_v47  ;;  %v3053_v43 = vld [vmem:[#allocation3 + $0x39] sm:$0xff] }
 0x237   : > { %5245 = vmatmul.msk.f32.gmra.mxu3 %vm1757_vm0, %v2639_v4  ;;  %v2820_v52 = vpop.f32.mrf.mxu3 }
 0x238   : > { %v2886_v59 = vadd.f32 %v2820_v52, %v2592_v8  ;;  %v3015_v8 = vld [vmem:[#allocation3 + $0x30] sm:$0xff] }
 0x239   : > { %v2054_v30 = vpop.f32.mrf.mxu0  ;;  %v3765_v52 = vld [vmem:[#allocation3 + $0x2a] sm:$0xff] }
 0x23a   : > { %v2924_v61 = vadd.f32 %v6574_v22, %v2886_v59  ;;  %v2276_v5 = vadd.f32 %v2275_v18, %v2054_v30 }
 0x23b   : > { %v2278_v35 = vpop.f32.mrf.mxu1 }
 0x23c   : > { %v2958_v60 = vmax.f32 %v2924_v61, 0.0 }
 0x23d   : > { %5256 = vmatmul.msk.f32.gmra.mxu0 %vm2974_vm1, %v3048_v49  ;;  %5208 = vmatmul.msk.f32.gmra.mxu2 %vm1757_vm0, %v2346_v3 }
 0x23e   : > { %5286 = vmatmul.msk.f32.gmra.mxu1 %vm2974_vm1, %v3010_v6  ;;  %2993 = vst.msk [vmem:[#allocation3 + $0x90] sm:$0xff] %vm2974_vm1, %v2958_v60 }
 0x23f   : > { %5246 = vmatmul.msk.f32.gmra.mxu3 %vm1757_vm0, %v2640_v7  ;;  %v2529_v0 = vpop.f32.mrf.mxu2  ;;  %v3054_v7 = vld [vmem:[#allocation3 + $0x41] sm:$0xff] }
 0x240   : > { %v2593_v19 = vadd.f32 %v2529_v0, %v2270_v38  ;;  %v3016_v38 = vld [vmem:[#allocation3 + $0x38] sm:$0xff] }
 0x241   : > { %v2823_v62 = vpop.f32.mrf.mxu3  ;;  %v3766_v0 = vld [vmem:[#allocation3 + $0x32] sm:$0xff] }
 0x242   : > { %v2887_v63 = vadd.f32 %v2823_v62, %v2593_v19 }
 0x243   : > { %v2057_v37 = vpop.f32.mrf.mxu0 }
 0x244   : > { %v2925_v11 = vadd.f32 %v6574_v22, %v2887_v63  ;;  %v2281_v39 = vpop.f32.mrf.mxu1  ;;  %v2279_v36 = vadd.f32 %v2278_v35, %v2057_v37 }
 0x245   : > { %5257 = vmatmul.msk.f32.gmra.mxu0 %vm2974_vm1, %v3049_v26  ;;  %5209 = vmatmul.msk.f32.gmra.mxu2 %vm1757_vm0, %v2347_v21 }
 0x246   : > { %5287 = vmatmul.msk.f32.gmra.mxu1 %vm2974_vm1, %v3011_v13  ;;  %v2959_v24 = vmax.f32 %v2925_v11, 0.0  ;;  %v3017_v13 = vld [vmem:[#allocation3 + $0x40] sm:$0xff] }
 0x247   : > { %5247 = vmatmul.msk.f32.gmra.mxu3 %vm1757_vm0, %v2641_v34 }
 0x248   : > { %2994 = vst.msk [vmem:[#allocation3 + $0x98] sm:$0xff] %vm2974_vm1, %v2959_v24 }
 0x249   : > { %v2532_v54 = vpop.f32.mrf.mxu2 }
 0x24a   : > { %v2594_v25 = vadd.f32 %v2532_v54, %v2273_v20 }
 0x24b   : > { %v2826_v17 = vpop.f32.mrf.mxu3 }
 0x24c   : > { %v2888_v45 = vadd.f32 %v2826_v17, %v2594_v25 }
 0x24d   : > { %5258 = vmatmul.msk.f32.gmra.mxu0 %vm2974_vm1, %v3050_v28  ;;  %5322 = vmatmul.msk.f32.vlgmr.msrb.gmra.mxu2 %vm2974_vm1, %v3048_v49 }
 0x24e   : > { %5288 = vmatmul.msk.f32.gmra.mxu1 %vm2974_vm1, %v3012_v15  ;;  %v2926_v14 = vadd.f32 %v6574_v22, %v2888_v45  ;;  %v3056_v45 = vld [vmem:[#allocation3 + $0x51] sm:$0xff]  ;;  %v3768_v15 = vld [vmem:[#allocation3 + $0x42] sm:$0xff] }
 0x24f   : > { %5359 = vmatmul.msk.f32.vlgmr.msrb.gmra.mxu3 %vm2974_vm1, %v3762_v29  ;;  %v2060_v53 = vpop.f32.mrf.mxu0 }
 0x250   : > { %v2960_v27 = vmax.f32 %v2926_v14, 0.0  ;;  %v2284_v16 = vpop.f32.mrf.mxu1  ;;  %v2282_v55 = vadd.f32 %v2281_v39, %v2060_v53 }
 0x252   : > { %2995 = vst.msk [vmem:[#allocation3 + $0xa0] sm:$0xff] %vm2974_vm1, %v2960_v27 }
 0x255   : > { %5259 = vmatmul.msk.f32.gmra.mxu0 %vm2974_vm1, %v3051_v58  ;;  %v2535_v44 = vpop.f32.mrf.mxu2  ;;  %5323 = vmatmul.msk.f32.gmra.mxu2 %vm2974_vm1, %v3049_v26  ;;  %v3055_v26 = vld [vmem:[#allocation3 + $0x49] sm:$0xff] }
 0x256   : > { %5289 = vmatmul.msk.f32.gmra.mxu1 %vm2974_vm1, %v3013_v31  ;;  %v2595_v46 = vadd.f32 %v2535_v44, %v2276_v5  ;;  %v3019_v44 = vld [vmem:[#allocation3 + $0x50] sm:$0xff] }
 0x257   : > { %5360 = vmatmul.msk.f32.gmra.mxu3 %vm2974_vm1, %v3763_v32  ;;  %v2829_v33 = vpop.f32.mrf.mxu3  ;;  %v3057_v32 = vld [vmem:[#allocation3 + $0x59] sm:$0xff] }
 0x258   : > { %v2889_v23 = vadd.f32 %v2829_v33, %v2595_v46  ;;  %v3769_v46 = vld [vmem:[#allocation3 + $0x4a] sm:$0xff] }
 0x259   : > { %v2063_v12 = vpop.f32.mrf.mxu0 }
 0x25a   : > { %v2927_v40 = vadd.f32 %v6574_v22, %v2889_v23  ;;  %v2287_v60 = vpop.f32.mrf.mxu1  ;;  %v2285_v11 = vadd.f32 %v2284_v16, %v2063_v12 }
 0x25c   : > { %v2961_v41 = vmax.f32 %v2927_v40, 0.0 }
 0x25d   : > { %5260 = vmatmul.msk.f32.gmra.mxu0 %vm2974_vm1, %v3052_v51  ;;  %5324 = vmatmul.msk.f32.gmra.mxu2 %vm2974_vm1, %v3050_v28  ;;  %v3018_v28 = vld [vmem:[#allocation3 + $0x48] sm:$0xff] }
 0x25e   : > { %5290 = vmatmul.msk.f32.gmra.mxu1 %vm2974_vm1, %v3014_v56  ;;  %2996 = vst.msk [vmem:[#allocation3 + $0xa8] sm:$0xff] %vm2974_vm1, %v2961_v41 }
 0x25f   : > { %5361 = vmatmul.msk.f32.gmra.mxu3 %vm2974_vm1, %v3764_v42  ;;  %v2538_v10 = vpop.f32.mrf.mxu2  ;;  %v3058_v42 = vld [vmem:[#allocation3 + $0x61] sm:$0xff] }
 0x260   : > { %v2596_v48 = vadd.f32 %v2538_v10, %v2279_v36  ;;  %v3020_v36 = vld [vmem:[#allocation3 + $0x58] sm:$0xff] }
 0x261   : > { %v2832_v47 = vpop.f32.mrf.mxu3  ;;  %v3770_v10 = vld [vmem:[#allocation3 + $0x52] sm:$0xff] }
 0x262   : > { %v2890_v50 = vadd.f32 %v2832_v47, %v2596_v48 }
 0x263   : > { %v2066_v1 = vpop.f32.mrf.mxu0 }
 0x264   : > { %v2928_v4 = vadd.f32 %v6574_v22, %v2890_v50  ;;  %v2290_v63 = vpop.f32.mrf.mxu1  ;;  %v2288_v29 = vadd.f32 %v2287_v60, %v2066_v1  ;;  %v3059_v50 = vld [vmem:[#allocation3 + $0x69] sm:$0xff] }
 0x265   : > { %5261 = vmatmul.msk.f32.gmra.mxu0 %vm2974_vm1, %v3053_v43  ;;  %5325 = vmatmul.msk.f32.gmra.mxu2 %vm2974_vm1, %v3051_v58 }
 0x266   : > { %5291 = vmatmul.msk.f32.gmra.mxu1 %vm2974_vm1, %v3015_v8  ;;  %v2962_v59 = vmax.f32 %v2928_v4, 0.0  ;;  %v3021_v4 = vld [vmem:[#allocation3 + $0x60] sm:$0xff] }
 0x267   : > { %5362 = vmatmul.msk.f32.gmra.mxu3 %vm2974_vm1, %v3765_v52  ;;  %v3771_v8 = vld [vmem:[#allocation3 + $0x5a] sm:$0xff] }
 0x268   : > { %2997 = vst.msk [vmem:[#allocation3 + $0xb0] sm:$0xff] %vm2974_vm1, %v2962_v59 }
 0x269   : > { %v2541_v61 = vpop.f32.mrf.mxu2 }
 0x26a   : > { %v2597_v49 = vadd.f32 %v2541_v61, %v2282_v55 }
 0x26b   : > { %v2835_v6 = vpop.f32.mrf.mxu3 }
 0x26c   : > { %v2891_v3 = vadd.f32 %v2835_v6, %v2597_v49  ;;  %v3060_v6 = vld [vmem:[#allocation3 + $0x71] sm:$0xff] }
 0x26d   : > { %5262 = vmatmul.msk.f32.gmra.mxu0 %vm2974_vm1, %v3054_v7  ;;  %5326 = vmatmul.msk.f32.gmra.mxu2 %vm2974_vm1, %v3052_v51 }
 0x26e   : > { %5292 = vmatmul.msk.f32.gmra.mxu1 %vm2974_vm1, %v3016_v38  ;;  %v2929_v19 = vadd.f32 %v6574_v22, %v2891_v3  ;;  %v3022_v3 = vld [vmem:[#allocation3 + $0x68] sm:$0xff] }
 0x26f   : > { %5363 = vmatmul.msk.f32.gmra.mxu3 %vm2974_vm1, %v3766_v0  ;;  %v2069_v54 = vpop.f32.mrf.mxu0  ;;  %v3772_v38 = vld [vmem:[#allocation3 + $0x62] sm:$0xff] }
 0x270   : > { %v2963_v62 = vmax.f32 %v2929_v19, 0.0  ;;  %v2293_v18 = vpop.f32.mrf.mxu1  ;;  %v2291_v23 = vadd.f32 %v2290_v63, %v2069_v54 }
 0x272   : > { %2998 = vst.msk [vmem:[#allocation3 + $0xb8] sm:$0xff] %vm2974_vm1, %v2963_v62 }
 0x275   : > { %5263 = vmatmul.msk.f32.gmra.mxu0 %vm2974_vm1, %v3055_v26  ;;  %v2544_v21 = vpop.f32.mrf.mxu2  ;;  %5327 = vmatmul.msk.f32.gmra.mxu2 %vm2974_vm1, %v3053_v43 }
 0x276   : > { %5293 = vmatmul.msk.f32.gmra.mxu1 %vm2974_vm1, %v3017_v13  ;;  %v2598_v34 = vadd.f32 %v2544_v21, %v2285_v11  ;;  %v3061_v13 = vld [vmem:[#allocation3 + $0x79] sm:$0xff]  ;;  %v3773_v21 = vld [vmem:[#allocation3 + $0x6a] sm:$0xff] }
 0x277   : > { %5364 = vmatmul.msk.f32.gmra.mxu3 %vm2974_vm1, %v3767_v2  ;;  %v2838_v24 = vpop.f32.mrf.mxu3  ;;  %v3023_v2 = vld [vmem:[#allocation3 + $0x70] sm:$0xff] }
 0x278   : > { %v2892_v20 = vadd.f32 %v2838_v24, %v2598_v34 }
 0x279   : > { %v2072_v35 = vpop.f32.mrf.mxu0 }
 0x27a   : > { %v2930_v25 = vadd.f32 %v6574_v22, %v2892_v20  ;;  %v2296_v5 = vpop.f32.mrf.mxu1  ;;  %v2294_v43 = vadd.f32 %v2293_v18, %v2072_v35 }
 0x27c   : > { %v2964_v17 = vmax.f32 %v2930_v25, 0.0 }
 0x27d   : > { %5264 = vmatmul.msk.f32.gmra.mxu0 %vm2974_vm1, %v3056_v45  ;;  %5328 = vmatmul.msk.f32.gmra.mxu2 %vm2974_vm1, %v3054_v7 }
 0x27e   : > { %5294 = vmatmul.msk.f32.gmra.mxu1 %vm2974_vm1, %v3018_v28  ;;  %2999 = vst.msk [vmem:[#allocation3 + $0xc0] sm:$0xff] %vm2974_vm1, %v2964_v17 }
 0x27f   : > { %5365 = vmatmul.msk.f32.gmra.mxu3 %vm2974_vm1, %v3768_v15  ;;  %v2547_v14 = vpop.f32.mrf.mxu2  ;;  %v3062_v15 = vld [vmem:[#allocation3 + $0x81] sm:$0xff] }
 0x280   : > { %v2599_v27 = vadd.f32 %v2547_v14, %v2288_v29  ;;  %v3024_v29 = vld [vmem:[#allocation3 + $0x78] sm:$0xff] }
 0x281   : > { %v2841_v30 = vpop.f32.mrf.mxu3  ;;  %v3774_v14 = vld [vmem:[#allocation3 + $0x72] sm:$0xff] }
 0x282   : > { %v2893_v58 = vadd.f32 %v2841_v30, %v2599_v27 }
 0x283   : > { %v2075_v39 = vpop.f32.mrf.mxu0 }
 0x284   : > { %v2931_v31 = vadd.f32 %v6574_v22, %v2893_v58  ;;  %v2299_v40 = vpop.f32.mrf.mxu1  ;;  %v2297_v0 = vadd.f32 %v2296_v5, %v2075_v39 }
 0x285   : > { %5265 = vmatmul.msk.f32.gmra.mxu0 %vm2974_vm1, %v3057_v32  ;;  %5329 = vmatmul.msk.f32.gmra.mxu2 %vm2974_vm1, %v3055_v26 }
 0x286   : > { %5295 = vmatmul.msk.f32.gmra.mxu1 %vm2974_vm1, %v3019_v44  ;;  %v2965_v33 = vmax.f32 %v2931_v31, 0.0 }
 0x287   : > { %5366 = vmatmul.msk.f32.gmra.mxu3 %vm2974_vm1, %v3769_v46 }
 0x288   : > { %3000 = vst.msk [vmem:[#allocation3 + $0xc8] sm:$0xff] %vm2974_vm1, %v2965_v33  ;;  %v3063_v33 = vld [vmem:[#allocation3 + $0x89] sm:$0xff] }
 0x289   : > { %v2550_v37 = vpop.f32.mrf.mxu2 }
 0x28a   : > { %v2600_v41 = vadd.f32 %v2550_v37, %v2291_v23  ;;  %v3025_v23 = vld [vmem:[#allocation3 + $0x80] sm:$0xff] }
 0x28b   : > { %v2844_v51 = vpop.f32.mrf.mxu3  ;;  %v3775_v37 = vld [vmem:[#allocation3 + $0x7a] sm:$0xff] }
 0x28c   : > { %v2894_v56 = vadd.f32 %v2844_v51, %v2600_v41 }
 0x28d   : > { %5266 = vmatmul.msk.f32.gmra.mxu0 %vm2974_vm1, %v3058_v42  ;;  %5330 = vmatmul.msk.f32.gmra.mxu2 %vm2974_vm1, %v3056_v45 }
 0x28e   : > { %5296 = vmatmul.msk.f32.gmra.mxu1 %vm2974_vm1, %v3020_v36  ;;  %v2932_v48 = vadd.f32 %v6574_v22, %v2894_v56 }
 0x28f   : > { %5367 = vmatmul.msk.f32.gmra.mxu3 %vm2974_vm1, %v3770_v10 }
 0x290   : > { %v2966_v47 = vmax.f32 %v2932_v48, 0.0  ;;  %v2078_v53 = vpop.f32.mrf.mxu0 }
 0x291   : > { %v2302_v16 = vpop.f32.mrf.mxu1  ;;  %v2300_v24 = vadd.f32 %v2299_v40, %v2078_v53  ;;  %v3026_v53 = vld [vmem:[#allocation3 + $0x88] sm:$0xff] }
 0x292   : > { %3001 = vst.msk [vmem:[#allocation3 + $0xd0] sm:$0xff] %vm2974_vm1, %v2966_v47  ;;  %v3064_v47 = vld [vmem:[#allocation3 + $0x91] sm:$0xff] }
 0x295   : > { %5267 = vmatmul.msk.f32.gmra.mxu0 %vm2974_vm1, %v3059_v50  ;;  %5331 = vmatmul.msk.f32.gmra.mxu2 %vm2974_vm1, %v3057_v32 }
 0x296   : > { %5297 = vmatmul.msk.f32.gmra.mxu1 %vm2974_vm1, %v3021_v4  ;;  %v2553_v52 = vpop.f32.mrf.mxu2 }
 0x297   : > { %5368 = vmatmul.msk.f32.gmra.mxu3 %vm2974_vm1, %v3771_v8  ;;  %v2601_v59 = vadd.f32 %v2553_v52, %v2294_v43 }
 0x298   : > { %v2847_v55 = vpop.f32.mrf.mxu3 }
 0x299   : > { %v2895_v61 = vadd.f32 %v2847_v55, %v2601_v59 }
 0x29a   : > { %v2081_v12 = vpop.f32.mrf.mxu0 }
 0x29b   : > { %v2305_v60 = vpop.f32.mrf.mxu1  ;;  %v2933_v49 = vadd.f32 %v6574_v22, %v2895_v61  ;;  %v2303_v30 = vadd.f32 %v2302_v16, %v2081_v12  ;;  %v3776_v16 = vld [vmem:[#allocation3 + $0x82] sm:$0xff] }
 0x29d   : > { %v2967_v7 = vmax.f32 %v2933_v49, 0.0  ;;  %5268 = vmatmul.msk.f32.gmra.mxu0 %vm2974_vm1, %v3060_v6  ;;  %5332 = vmatmul.msk.f32.gmra.mxu2 %vm2974_vm1, %v3058_v42  ;;  %v3027_v49 = vld [vmem:[#allocation3 + $0x90] sm:$0xff] }
 0x29e   : > { %5298 = vmatmul.msk.f32.gmra.mxu1 %vm2974_vm1, %v3022_v3 }
 0x29f   : > { %5369 = vmatmul.msk.f32.gmra.mxu3 %vm2974_vm1, %v3772_v38  ;;  %3002 = vst.msk [vmem:[#allocation3 + $0xd8] sm:$0xff] %vm2974_vm1, %v2967_v7 }
 0x2a0   : > { %v2556_v19 = vpop.f32.mrf.mxu2 }
 0x2a1   : > { %v2602_v1 = vadd.f32 %v2556_v19, %v2297_v0 }
 0x2a2   : > { %v2850_v62 = vpop.f32.mrf.mxu3  ;;  %v2084_v63 = vpop.f32.mrf.mxu0 }
 0x2a3   : > { %v2308_v11 = vpop.f32.mrf.mxu1  ;;  %v2896_v26 = vadd.f32 %v2850_v62, %v2602_v1  ;;  %v2306_v40 = vadd.f32 %v2305_v60, %v2084_v63  ;;  %v3065_v60 = vld [vmem:[#allocation3 + $0x99] sm:$0xff] }
 0x2a4   : > { %v2309_v4 = vadd.f32 %v2308_v11, %v6199_v57  ;;  %v3066_v11 = vld [vmem:[#allocation3 + $0xa1] sm:$0xff] }
 0x2a5   : > { %5269 = vmatmul.msk.f32.gmra.mxu0 %vm2974_vm1, %v3061_v13  ;;  %v2934_v34 = vadd.f32 %v6574_v22, %v2896_v26  ;;  %5333 = vmatmul.msk.f32.gmra.mxu2 %vm2974_vm1, %v3059_v50  ;;  %v3028_v26 = vld [vmem:[#allocation3 + $0x98] sm:$0xff] }
 0x2a6   : > { %5299 = vmatmul.msk.f32.gmra.mxu1 %vm2974_vm1, %v3023_v2 }
 0x2a7   : > { %5370 = vmatmul.msk.f32.gmra.mxu3 %vm2974_vm1, %v3773_v21  ;;  %v2968_v20 = vmax.f32 %v2934_v34, 0.0 }
 0x2a8   : > { %v2559_v54 = vpop.f32.mrf.mxu2 }
 0x2a9   : > { %3003 = vst.msk [vmem:[#allocation3 + $0xe0] sm:$0xff] %vm2974_vm1, %v2968_v20  ;;  %v2603_v25 = vadd.f32 %v2559_v54, %v2300_v24  ;;  %v6748_v54 = vld [vmem:[%s7696_s6] ss:$0 sm:$0xff] }
 0x2aa   : > { %v2853_v18 = vpop.f32.mrf.mxu3  ;;  %v6702_v45 = vpop.f32.mrf.mxu0 }
 0x2ab   : > { %v2311_v17 = vpop.f32.mrf.mxu1  ;;  %v2897_v28 = vadd.f32 %v2853_v18, %v2603_v25 }
 0x2ac   : > { %v2312_v57 = vadd.f32 %v2311_v17, %v6235_v9  ;;  %v3067_v17 = vld [vmem:[#allocation3 + $0xa9] sm:$0xff] }
 0x2ad   : > { %5270 = vmatmul.msk.f32.gmra.mxu0 %vm2974_vm1, %v3062_v15  ;;  %v2935_v27 = vadd.f32 %v6574_v22, %v2897_v28  ;;  %5334 = vmatmul.msk.f32.gmra.mxu2 %vm2974_vm1, %v3060_v6  ;;  %v3777_v6 = vld [vmem:[#allocation3 + $0x8a] sm:$0xff]  ;;  %v3029_v28 = vld [vmem:[#allocation3 + $0xa0] sm:$0xff] }
 0x2ae   : > { %5300 = vmatmul.msk.f32.gmra.mxu1 %vm2974_vm1, %v3024_v29 }
 0x2af   : > { %5371 = vmatmul.msk.f32.gmra.mxu3 %vm2974_vm1, %v3774_v14  ;;  %v2969_v35 = vmax.f32 %v2935_v27, 0.0 }
 0x2b0   : > { %v2562_v5 = vpop.f32.mrf.mxu2 }
 0x2b1   : > { %3004 = vst.msk [vmem:[#allocation3 + $0xe8] sm:$0xff] %vm2974_vm1, %v2969_v35  ;;  %v2604_v31 = vadd.f32 %v2562_v5, %v2303_v30 }
 0x2b2   : > { %v2856_v58 = vpop.f32.mrf.mxu3  ;;  %v6710_v32 = vpop.f32.mrf.mxu0 }
 0x2b3   : > { %v3397_v44 = vpop.f32.mrf.mxu1  ;;  %v2898_v46 = vadd.f32 %v2856_v58, %v2604_v31 }
 0x2b4   : > { %v3398_v9 = vadd.f32 %v3397_v44, %v6702_v45  ;;  %v3779_v45 = vld [vmem:[#allocation3 + $0x9a] sm:$0xff]  ;;  %v3068_v44 = vld [vmem:[#allocation3 + $0xb1] sm:$0xff] }
 0x2b5   : > { %5271 = vmatmul.msk.f32.gmra.mxu0 %vm2974_vm1, %v3063_v33  ;;  %v2936_v39 = vadd.f32 %v6574_v22, %v2898_v46  ;;  %5335 = vmatmul.msk.f32.gmra.mxu2 %vm2974_vm1, %v3061_v13  ;;  %v3778_v13 = vld [vmem:[#allocation3 + $0x92] sm:$0xff]  ;;  %v3030_v46 = vld [vmem:[#allocation3 + $0xa8] sm:$0xff] }
 0x2b6   : > { %5301 = vmatmul.msk.f32.gmra.mxu1 %vm2974_vm1, %v3025_v23 }
 0x2b7   : > { %5372 = vmatmul.msk.f32.gmra.mxu3 %vm2974_vm1, %v3775_v37  ;;  %v2970_v41 = vmax.f32 %v2936_v39, 0.0 }
 0x2b8   : > { %v2565_v51 = vpop.f32.mrf.mxu2 }
 0x2b9   : > { %3005 = vst.msk [vmem:[#allocation3 + $0xf0] sm:$0xff] %vm2974_vm1, %v2970_v41  ;;  %v2605_v42 = vadd.f32 %v2565_v51, %v2306_v40 }
 0x2ba   : > { %v2859_v56 = vpop.f32.mrf.mxu3  ;;  %v6718_v36 = vpop.f32.mrf.mxu0 }
 0x2bb   : > { %v3400_v10 = vpop.f32.mrf.mxu1  ;;  %v2899_v48 = vadd.f32 %v2859_v56, %v2605_v42 }
 0x2bc   : > { %v3401_v29 = vadd.f32 %v3400_v10, %v6710_v32  ;;  %v3069_v10 = vld [vmem:[#allocation3 + $0xb9] sm:$0xff] }
 0x2bd   : > { %5272 = vmatmul.msk.f32.gmra.mxu0 %vm2974_vm1, %v3064_v47  ;;  %v2937_v50 = vadd.f32 %v6574_v22, %v2899_v48  ;;  %5336 = vmatmul.msk.f32.gmra.mxu2 %vm2974_vm1, %v3062_v15  ;;  %v3031_v48 = vld [vmem:[#allocation3 + $0xb0] sm:$0xff] }
 0x2be   : > { %5302 = vmatmul.msk.f32.gmra.mxu1 %vm2974_vm1, %v3026_v53 }
 0x2bf   : > { %5373 = vmatmul.msk.f32.gmra.mxu3 %vm2974_vm1, %v3776_v16  ;;  %v2971_v43 = vmax.f32 %v2937_v50, 0.0 }
 0x2c0   : > { %v2568_v8 = vpop.f32.mrf.mxu2 }
 0x2c1   : > { %3006 = vst.msk [vmem:[#allocation3 + $0xf8] sm:$0xff] %vm2974_vm1, %v2971_v43  ;;  %v2606_v59 = vadd.f32 %v2568_v8, %v2309_v4 }
 0x2c2   : > { %v2862_v52 = vpop.f32.mrf.mxu3  ;;  %v6727_v55 = vpop.f32.mrf.mxu0 }
 0x2c3   : > { %v3403_v61 = vpop.f32.mrf.mxu1  ;;  %v2900_v12 = vadd.f32 %v2862_v52, %v2606_v59 }
 0x2c4   : > { %v3404_v23 = vadd.f32 %v3403_v61, %v6718_v36  ;;  %v3070_v61 = vld [vmem:[#allocation3 + $0xc1] sm:$0xff] }
 0x2c5   : > { %5273 = vmatmul.msk.f32.gmra.mxu0 %vm2974_vm1, %v3065_v60  ;;  %v2938_v3 = vadd.f32 %v6574_v22, %v2900_v12  ;;  %5337 = vmatmul.msk.f32.gmra.mxu2 %vm2974_vm1, %v3063_v33  ;;  %v3780_v33 = vld [vmem:[#allocation3 + $0xa2] sm:$0xff]  ;;  %v3032_v12 = vld [vmem:[#allocation3 + $0xb8] sm:$0xff] }
 0x2c6   : > { %5303 = vmatmul.msk.f32.gmra.mxu1 %vm2974_vm1, %v3027_v49 }
 0x2c7   : > { %5374 = vmatmul.msk.f32.gmra.mxu3 %vm2974_vm1, %v3777_v6  ;;  %v2972_v7 = vmax.f32 %v2938_v3, 0.0 }
 0x2c8   : > { %v2571_v38 = vpop.f32.mrf.mxu2 }
 0x2c9   : > { %3007 = vst.msk [vmem:[#allocation3 + $0x100] sm:$0xff] %vm2974_vm1, %v2972_v7  ;;  %v2607_v19 = vadd.f32 %v2571_v38, %v2312_v57 }
 0x2ca   : > { %v2865_v0 = vpop.f32.mrf.mxu3  ;;  %v6736_v62 = vpop.f32.mrf.mxu0 }
 0x2cb   : > { %v3406_v1 = vpop.f32.mrf.mxu1  ;;  %v2901_v63 = vadd.f32 %v2865_v0, %v2607_v19 }
 0x2cc   : > { %v3407_v53 = vadd.f32 %v3406_v1, %v6727_v55  ;;  %v3071_v1 = vld [vmem:[#allocation3 + $0xc9] sm:$0xff] }
 0x2cd   : > { %5274 = vmatmul.msk.f32.gmra.mxu0 %vm2974_vm1, %v3066_v11  ;;  %v2939_v2 = vadd.f32 %v6574_v22, %v2901_v63  ;;  %5338 = vmatmul.msk.f32.gmra.mxu2 %vm2974_vm1, %v3064_v47  ;;  %v3781_v47 = vld [vmem:[#allocation3 + $0xaa] sm:$0xff]  ;;  %v3033_v63 = vld [vmem:[#allocation3 + $0xc0] sm:$0xff] }
 0x2ce   : > { %5304 = vmatmul.msk.f32.gmra.mxu1 %vm2974_vm1, %v3028_v26 }
 0x2cf   : > { %5375 = vmatmul.msk.f32.gmra.mxu3 %vm2974_vm1, %v3778_v13  ;;  %v2973_v21 = vmax.f32 %v2939_v2, 0.0 }
 0x2d0   : > { %v3638_v34 = vpop.f32.mrf.mxu2 }
 0x2d1   : > { %3008 = vst.msk [vmem:[#allocation3 + $0x108] sm:$0xff] %vm2974_vm1, %v2973_v21  ;;  %v3731_v20 = vadd.f32 %v3638_v34, %v3398_v9 }
 0x2d2   : > { %v3910_v24 = vpop.f32.mrf.mxu3  ;;  %v6750_v18 = vpop.f32.mrf.mxu0 }
 0x2d3   : > { %v3409_v22 = vpop.f32.mrf.mxu1  ;;  %v4003_v25 = vadd.f32 %v3910_v24, %v3731_v20 }
 0x2d4   : > { %v3410_v49 = vadd.f32 %v3409_v22, %v6736_v62  ;;  %v3072_v22 = vld [vmem:[#allocation3 + $0xd1] sm:$0xff] }
 0x2d5   : > { %5275 = vmatmul.msk.f32.gmra.mxu0 %vm2974_vm1, %v3067_v17  ;;  %v6755_v15 = vadd.f32 %v6748_v54, %v4003_v25  ;;  %5339 = vmatmul.msk.f32.gmra.mxu2 %vm2974_vm1, %v3065_v60  ;;  %v3782_v60 = vld [vmem:[#allocation3 + $0xb2] sm:$0xff]  ;;  %v3034_v25 = vld [vmem:[#allocation3 + $0xc8] sm:$0xff] }
 0x2d6   : > { %5305 = vmatmul.msk.f32.gmra.mxu1 %vm2974_vm1, %v3029_v28 }
 0x2d7   : > { %5376 = vmatmul.msk.f32.gmra.mxu3 %vm2974_vm1, %v3779_v45  ;;  %v4069_v14 = vmax.f32 %v6755_v15, 0.0 }
 0x2d8   : > { %v3641_v27 = vpop.f32.mrf.mxu2 }
 0x2d9   : > { %4100 = vst [vmem:[#allocation4] sm:$0xff] %v4069_v14  ;;  %v3732_v35 = vadd.f32 %v3641_v27, %v3401_v29 }
 0x2da   : > { %v3913_v30 = vpop.f32.mrf.mxu3  ;;  %v6763_v5 = vpop.f32.mrf.mxu0 }
 0x2db   : > { %v3412_v58 = vpop.f32.mrf.mxu1  ;;  %v4004_v31 = vadd.f32 %v3913_v30, %v3732_v35 }
 0x2dc   : > { %v3413_v26 = vadd.f32 %v3412_v58, %v6750_v18 }
 0x2dd   : > { %5276 = vmatmul.msk.f32.gmra.mxu0 %vm2974_vm1, %v3068_v44  ;;  %v6768_v32 = vadd.f32 %v6748_v54, %v4004_v31  ;;  %5340 = vmatmul.msk.f32.gmra.mxu2 %vm2974_vm1, %v3066_v11  ;;  %v3783_v11 = vld [vmem:[#allocation3 + $0xba] sm:$0xff] }
 0x2de   : > { %5306 = vmatmul.msk.f32.gmra.mxu1 %vm2974_vm1, %v3030_v46  ;;  %v3035_v46 = vld [vmem:[#allocation3 + $0xd0] sm:$0xff] }
 0x2df   : > { %5377 = vmatmul.msk.f32.gmra.mxu3 %vm2974_vm1, %v3780_v33  ;;  %v4070_v37 = vmax.f32 %v6768_v32, 0.0  ;;  %v3785_v33 = vld [vmem:[#allocation3 + $0xca] sm:$0xff] }
 0x2e0   : > { %v3644_v39 = vpop.f32.mrf.mxu2 }
 0x2e1   : > { %4101 = vst [vmem:[#allocation4 + $0x8] sm:$0xff] %v4070_v37  ;;  %v3733_v41 = vadd.f32 %v3644_v39, %v3404_v23 }
 0x2e2   : > { %v3916_v40 = vpop.f32.mrf.mxu3  ;;  %v6776_v51 = vpop.f32.mrf.mxu0 }
 0x2e3   : > { %v3415_v56 = vpop.f32.mrf.mxu1  ;;  %v4005_v42 = vadd.f32 %v3916_v40, %v3733_v41 }
 0x2e4   : > { %v3416_v28 = vadd.f32 %v3415_v56, %v6763_v5 }
 0x2e5   : > { %5277 = vmatmul.msk.f32.gmra.mxu0 %vm2974_vm1, %v3069_v10  ;;  %v6781_v36 = vadd.f32 %v6748_v54, %v4005_v42  ;;  %5341 = vmatmul.msk.f32.gmra.mxu2 %vm2974_vm1, %v3067_v17  ;;  %v3784_v17 = vld [vmem:[#allocation3 + $0xc2] sm:$0xff] }
 0x2e6   : > { %5307 = vmatmul.msk.f32.gmra.mxu1 %vm2974_vm1, %v3031_v48 }
 0x2e7   : > { %5378 = vmatmul.msk.f32.gmra.mxu3 %vm2974_vm1, %v3781_v47  ;;  %v4071_v16 = vmax.f32 %v6781_v36, 0.0  ;;  %v3074_v47 = vld [vmem:[#allocation3 + $0xe1] sm:$0xff] }
 0x2e8   : > { %v3647_v50 = vpop.f32.mrf.mxu2 }
 0x2e9   : > { %4102 = vst [vmem:[#allocation4 + $0x10] sm:$0xff] %v4071_v16  ;;  %v3734_v43 = vadd.f32 %v3647_v50, %v3407_v53  ;;  %v3036_v53 = vld [vmem:[#allocation3 + $0xd8] sm:$0xff] }
 0x2ea   : > { %v3919_v4 = vpop.f32.mrf.mxu3  ;;  %v6789_v8 = vpop.f32.mrf.mxu0  ;;  %v3786_v50 = vld [vmem:[#allocation3 + $0xd2] sm:$0xff] }
 0x2eb   : > { %v3418_v52 = vpop.f32.mrf.mxu1  ;;  %v4006_v59 = vadd.f32 %v3919_v4, %v3734_v43 }
 0x2ec   : > { %v3419_v23 = vadd.f32 %v3418_v52, %v6776_v51 }
 0x2ed   : > { %5278 = vmatmul.msk.f32.gmra.mxu0 %vm2974_vm1, %v3070_v61  ;;  %v6794_v55 = vadd.f32 %v6748_v54, %v4006_v59  ;;  %5342 = vmatmul.msk.f32.gmra.mxu2 %vm2974_vm1, %v3068_v44  ;;  %v3073_v44 = vld [vmem:[#allocation3 + $0xd9] sm:$0xff] }
 0x2ee   : > { %5308 = vmatmul.msk.f32.gmra.mxu1 %vm2974_vm1, %v3032_v12 }
 0x2ef   : > { %5379 = vmatmul.msk.f32.gmra.mxu3 %vm2974_vm1, %v3782_v60  ;;  %v4072_v6 = vmax.f32 %v6794_v55, 0.0 }
 0x2f0   : > { %v3650_v3 = vpop.f32.mrf.mxu2 }
 0x2f1   : > { %4103 = vst [vmem:[#allocation4 + $0x18] sm:$0xff] %v4072_v6  ;;  %v3735_v7 = vadd.f32 %v3650_v3, %v3410_v49  ;;  %v3075_v3 = vld [vmem:[#allocation3 + $0xe9] sm:$0xff] }
 0x2f2   : > { %v3922_v57 = vpop.f32.mrf.mxu3  ;;  %v6802_v38 = vpop.f32.mrf.mxu0 }
 0x2f3   : > { %v3421_v0 = vpop.f32.mrf.mxu1  ;;  %v4007_v19 = vadd.f32 %v3922_v57, %v3735_v7  ;;  %v3037_v57 = vld [vmem:[#allocation3 + $0xe0] sm:$0xff] }
 0x2f4   : > { %v3422_v4 = vadd.f32 %v3421_v0, %v6789_v8  ;;  %v3787_v7 = vld [vmem:[#allocation3 + $0xda] sm:$0xff] }
 0x2f5   : > { %5279 = vmatmul.msk.f32.gmra.mxu0 %vm2974_vm1, %v3071_v1  ;;  %v6807_v62 = vadd.f32 %v6748_v54, %v4007_v19  ;;  %5343 = vmatmul.msk.f32.gmra.mxu2 %vm2974_vm1, %v3069_v10 }
 0x2f6   : > { %5309 = vmatmul.msk.f32.gmra.mxu1 %vm2974_vm1, %v3033_v63 }
 0x2f7   : > { %5380 = vmatmul.msk.f32.gmra.mxu3 %vm2974_vm1, %v3783_v11  ;;  %v4073_v13 = vmax.f32 %v6807_v62, 0.0 }
 0x2f8   : > { %v3653_v2 = vpop.f32.mrf.mxu2 }
 0x2f9   : > { %4104 = vst [vmem:[#allocation4 + $0x20] sm:$0xff] %v4073_v13  ;;  %v3736_v21 = vadd.f32 %v3653_v2, %v3413_v26 }
 0x2fa   : > { %v3925_v9 = vpop.f32.mrf.mxu3  ;;  %v6815_v34 = vpop.f32.mrf.mxu0 }
 0x2fb   : > { %v3424_v24 = vpop.f32.mrf.mxu1  ;;  %v4008_v20 = vadd.f32 %v3925_v9, %v3736_v21  ;;  %v3076_v9 = vld [vmem:[#allocation3 + $0xf1] sm:$0xff]  ;;  %v3038_v21 = vld [vmem:[#allocation3 + $0xe8] sm:$0xff] }
 0x2fc   : > { %v3425_v0 = vadd.f32 %v3424_v24, %v6802_v38 }
 0x2fd   : > { %5280 = vmatmul.msk.f32.gmra.mxu0 %vm2974_vm1, %v3072_v22  ;;  %v6820_v18 = vadd.f32 %v6748_v54, %v4008_v20  ;;  %5344 = vmatmul.msk.f32.gmra.mxu2 %vm2974_vm1, %v3070_v61  ;;  %v3788_v20 = vld [vmem:[#allocation3 + $0xe2] sm:$0xff] }
 0x2fe   : > { %5310 = vmatmul.msk.f32.gmra.mxu1 %vm2974_vm1, %v3034_v25 }
 0x2ff   : > { %5381 = vmatmul.msk.f32.gmra.mxu3 %vm2974_vm1, %v3784_v17  ;;  %v4074_v45 = vmax.f32 %v6820_v18, 0.0  ;;  %v4161_v18 = vld [vmem:[#allocation4 + $0x11] sm:$0xff] }
 0x300   : > { %v3656_v29 = vpop.f32.mrf.mxu2 }
 0x301   : > { %4105 = vst [vmem:[#allocation4 + $0x28] sm:$0xff] %v4074_v45  ;;  %v3737_v30 = vadd.f32 %v3656_v29, %v3416_v28 }
 0x302   : > { %v3928_v27 = vpop.f32.mrf.mxu3  ;;  %v6828_v35 = vpop.f32.mrf.mxu0 }
 0x303   : > { %v3427_v58 = vpop.f32.mrf.mxu1  ;;  %v4009_v31 = vadd.f32 %v3928_v27, %v3737_v30 }
 0x304   : > { %v3428_v24 = vadd.f32 %v3427_v58, %v6815_v34 }
 0x305   : > { %5281 = vmatmul.msk.f32.gmra.mxu0 %vm2974_vm1, %v3073_v44  ;;  %v6833_v5 = vadd.f32 %v6748_v54, %v4009_v31  ;;  %5345 = vmatmul.msk.f32.gmra.mxu2 %vm2974_vm1, %v3071_v1  ;;  %v3039_v31 = vld [vmem:[#allocation3 + $0xf0] sm:$0xff] }
 0x306   : > { %5311 = vmatmul.msk.f32.gmra.mxu1 %vm2974_vm1, %v3035_v46 }
 0x307   : > { %5382 = vmatmul.msk.f32.gmra.mxu3 %vm2974_vm1, %v3785_v33  ;;  %v4075_v39 = vmax.f32 %v6833_v5, 0.0 }
 0x308   : > { %v3659_v40 = vpop.f32.mrf.mxu2  ;;  %v4247_v32 = vld [vmem:[#allocation4 + $0x22] sm:$0xff] }
 0x309   : > { %4106 = vst [vmem:[#allocation4 + $0x30] sm:$0xff] %v4075_v39  ;;  %v3738_v56 = vadd.f32 %v3659_v40, %v3419_v23 }
 0x30a   : > { %v3931_v41 = vpop.f32.mrf.mxu3  ;;  %v6841_v42 = vpop.f32.mrf.mxu0 }
 0x30b   : > { %v3430_v10 = vpop.f32.mrf.mxu1  ;;  %v4010_v48 = vadd.f32 %v3931_v41, %v3738_v56 }
 0x30c   : > { %v3431_v34 = vadd.f32 %v3430_v10, %v6828_v35 }
 0x30d   : > { %5282 = vmatmul.msk.f32.gmra.mxu0 %vm2974_vm1, %v3074_v47  ;;  %v6846_v51 = vadd.f32 %v6748_v54, %v4010_v48  ;;  %5346 = vmatmul.msk.f32.gmra.mxu2 %vm2974_vm1, %v3072_v22 }
 0x30e   : > { %5312 = vmatmul.msk.f32.gmra.mxu1 %vm2974_vm1, %v3036_v53 }
 0x30f   : > { %5383 = vmatmul.msk.f32.gmra.mxu3 %vm2974_vm1, %v3786_v50  ;;  %v4076_v43 = vmax.f32 %v6846_v51, 0.0 }
 0x310   : > { %v3662_v52 = vpop.f32.mrf.mxu2 }
 0x311   : > { %4107 = vst [vmem:[#allocation4 + $0x38] sm:$0xff] %v4076_v43  ;;  %v3739_v61 = vadd.f32 %v3662_v52, %v3422_v4 }
 0x312   : > { %v3934_v59 = vpop.f32.mrf.mxu3  ;;  %v6854_v49 = vpop.f32.mrf.mxu0 }
 0x313   : > { %v3433_v12 = vpop.f32.mrf.mxu1  ;;  %v4011_v60 = vadd.f32 %v3934_v59, %v3739_v61 }
 0x314   : > { %v3434_v35 = vadd.f32 %v3433_v12, %v6841_v42 }
 0x315   : > { %5283 = vmatmul.msk.f32.gmra.mxu0 %vm2974_vm1, %v3075_v3  ;;  %v6859_v8 = vadd.f32 %v6748_v54, %v4011_v60  ;;  %5347 = vmatmul.msk.f32.gmra.mxu2 %vm2974_vm1, %v3073_v44  ;;  %v3789_v44 = vld [vmem:[#allocation3 + $0xea] sm:$0xff] }
 0x316   : > { %5313 = vmatmul.msk.f32.gmra.mxu1 %vm2974_vm1, %v3037_v57  ;;  %v3791_v57 = vld [vmem:[#allocation3 + $0xfa] sm:$0xff] }
 0x317   : > { %5384 = vmatmul.msk.f32.gmra.mxu3 %vm2974_vm1, %v3787_v7  ;;  %v4077_v19 = vmax.f32 %v6859_v8, 0.0 }
 0x318   : > { %v3665_v1 = vpop.f32.mrf.mxu2 }
 0x319   : > { %4108 = vst [vmem:[#allocation4 + $0x40] sm:$0xff] %v4077_v19  ;;  %v3740_v11 = vadd.f32 %v3665_v1, %v3425_v0 }
 0x31a   : > { %v3937_v63 = vpop.f32.mrf.mxu3  ;;  %v3236_v38 = vpop.f32.mrf.mxu0 }
 0x31b   : > { %v3436_v26 = vpop.f32.mrf.mxu1  ;;  %v4012_v2 = vadd.f32 %v3937_v63, %v3740_v11 }
 0x31c   : > { %v3437_v42 = vadd.f32 %v3436_v26, %v6854_v49 }
 0x31d   : > { %5284 = vmatmul.msk.f32.gmra.mxu0 %vm2974_vm1, %v3076_v9  ;;  %v6870_v22 = vadd.f32 %v6748_v54, %v4012_v2  ;;  %5348 = vmatmul.msk.f32.gmra.mxu2 %vm2974_vm1, %v3074_v47  ;;  %v3790_v47 = vld [vmem:[#allocation3 + $0xf2] sm:$0xff] }
 0x31e   : > { %5314 = vmatmul.msk.f32.gmra.mxu1 %vm2974_vm1, %v3038_v21  ;;  %v3520_v21 = vld [vmem:[#allocation3 + $0x101] sm:$0xff] }
 0x31f   : > { %5385 = vmatmul.msk.f32.gmra.mxu3 %vm2974_vm1, %v3788_v20  ;;  %v4078_v25 = vmax.f32 %v6870_v22, 0.0  ;;  %v3792_v20 = vld [vmem:[#allocation3 + $0x102] sm:$0xff] }
 0x320   : > { %v3668_v17 = vpop.f32.mrf.mxu2 }
 0x321   : > { %4109 = vst [vmem:[#allocation4 + $0x48] sm:$0xff] %v4078_v25  ;;  %v3741_v29 = vadd.f32 %v3668_v17, %v3428_v24 }
 0x322   : > { %v3940_v28 = vpop.f32.mrf.mxu3  ;;  %v3239_v33 = vpop.f32.mrf.mxu0 }
 0x323   : > { %v3439_v27 = vpop.f32.mrf.mxu1  ;;  %v4013_v30 = vadd.f32 %v3940_v28, %v3741_v29 }
 0x324   : > { %v3440_v49 = vadd.f32 %v3439_v27, %v3236_v38 }
 0x325   : > { %v6880_v46 = vadd.f32 %v6748_v54, %v4013_v30  ;;  %5349 = vmatmul.msk.f32.gmra.mxu2 %vm2974_vm1, %v3075_v3  ;;  %v3519_v3 = vld [vmem:[#allocation3 + $0xf9] sm:$0xff] }
 0x326   : > { %5315 = vmatmul.msk.f32.gmra.mxu1 %vm2974_vm1, %v3039_v31 }
 0x327   : > { %5386 = vmatmul.msk.f32.gmra.mxu3 %vm2974_vm1, %v3789_v44  ;;  %v4079_v58 = vmax.f32 %v6880_v46, 0.0 }
 0x328   : > { %v3671_v23 = vpop.f32.mrf.mxu2 }
 0x329   : > { %4110 = vst [vmem:[#allocation4 + $0x50] sm:$0xff] %v4079_v58  ;;  %v3742_v41 = vadd.f32 %v3671_v23, %v3431_v34 }
 0x32a   : > { %v3943_v40 = vpop.f32.mrf.mxu3  ;;  %v3242_v52 = vpop.f32.mrf.mxu0 }
 0x32b   : > { %v3442_v56 = vpop.f32.mrf.mxu1  ;;  %v4014_v48 = vadd.f32 %v3943_v40, %v3742_v41 }
 0x32c   : > { %v3443_v23 = vadd.f32 %v3442_v56, %v3239_v33 }
 0x32d   : > { %v6889_v53 = vadd.f32 %v6748_v54, %v4014_v48  ;;  %5350 = vmatmul.msk.f32.gmra.mxu2 %vm2974_vm1, %v3076_v9 }
 0x32f   : > { %5387 = vmatmul.msk.f32.gmra.mxu3 %vm2974_vm1, %v3790_v47  ;;  %v4080_v10 = vmax.f32 %v6889_v53, 0.0 }
 0x330   : > { %v3674_v50 = vpop.f32.mrf.mxu2 }
 0x331   : > { %4111 = vst [vmem:[#allocation4 + $0x58] sm:$0xff] %v4080_v10  ;;  %v3743_v59 = vadd.f32 %v3674_v50, %v3434_v35 }
 0x332   : > { %v3946_v4 = vpop.f32.mrf.mxu3  ;;  %v3245_v2 = vpop.f32.mrf.mxu0 }
 0x333   : > { %v3445_v61 = vpop.f32.mrf.mxu1  ;;  %v4015_v60 = vadd.f32 %v3946_v4, %v3743_v59 }
 0x334   : > { %v3446_v50 = vadd.f32 %v3445_v61, %v3242_v52 }
 0x335   : > { %v6898_v7 = vadd.f32 %v6748_v54, %v4015_v60  ;;  %5351 = vmatmul.msk.f32.gmra.mxu2 %vm2974_vm1, %v3519_v3 }
 0x337   : > { %5388 = vmatmul.msk.f32.gmra.mxu3 %vm2974_vm1, %v3791_v57  ;;  %v4081_v12 = vmax.f32 %v6898_v7, 0.0 }
 0x338   : > { %v3677_v0 = vpop.f32.mrf.mxu2 }
 0x339   : > { %4112 = vst [vmem:[#allocation4 + $0x60] sm:$0xff] %v4081_v12  ;;  %v3744_v63 = vadd.f32 %v3677_v0, %v3437_v42 }
 0x33a   : > { %v3949_v1 = vpop.f32.mrf.mxu3  ;;  %v3248_v44 = vpop.f32.mrf.mxu0 }
 0x33b   : > { %v3448_v11 = vpop.f32.mrf.mxu1  ;;  %v4016_v9 = vadd.f32 %v3949_v1, %v3744_v63 }
 0x33c   : > { %v3449_v33 = vadd.f32 %v3448_v11, %v3245_v2 }
 0x33d   : > { %v6907_v24 = vadd.f32 %v6748_v54, %v4016_v9  ;;  %5352 = vmatmul.msk.f32.gmra.mxu2 %vm2974_vm1, %v3520_v21 }
 0x33f   : > { %5389 = vmatmul.msk.f32.gmra.mxu3 %vm2974_vm1, %v3792_v20  ;;  %v4082_v26 = vmax.f32 %v6907_v24, 0.0 }
 0x340   : > { %v3680_v17 = vpop.f32.mrf.mxu2 }
 0x341   : > { %4113 = vst [vmem:[#allocation4 + $0x68] sm:$0xff] %v4082_v26  ;;  %v3745_v29 = vadd.f32 %v3680_v17, %v3440_v49 }
 0x342   : > { %v3952_v28 = vpop.f32.mrf.mxu3  ;;  %v3251_v4 = vpop.f32.mrf.mxu0 }
 0x343   : > { %v4017_v30 = vadd.f32 %v3952_v28, %v3745_v29  ;;  %v3451_v31 = vpop.f32.mrf.mxu1 }
 0x344   : > { %v3452_v61 = vadd.f32 %v3451_v31, %v3248_v44 }
 0x345   : > { %v4052_v34 = vadd.f32 %v6748_v54, %v4017_v30 }
 0x347   : > { %v4083_v40 = vmax.f32 %v4052_v34, 0.0 }
 0x348   : > { %v3683_v41 = vpop.f32.mrf.mxu2  ;;  %v4255_v22 = vld [vmem:[#allocation4 + $0x62] sm:$0xff] }
 0x349   : > { %4114 = vst [vmem:[#allocation4 + $0x70] sm:$0xff] %v4083_v40  ;;  %v3746_v47 = vadd.f32 %v3683_v41, %v3443_v23 }
 0x34a   : > { %v3955_v48 = vpop.f32.mrf.mxu3  ;;  %v3254_v21 = vpop.f32.mrf.mxu0 }
 0x34b   : > { %v4018_v38 = vadd.f32 %v3955_v48, %v3746_v47  ;;  %v3454_v35 = vpop.f32.mrf.mxu1 }
 0x34c   : > { %v3455_v2 = vadd.f32 %v3454_v35, %v3251_v4 }
 0x34d   : > { %v4053_v27 = vadd.f32 %v6748_v54, %v4018_v38 }
 0x34f   : > { %v4084_v59 = vmax.f32 %v4053_v27, 0.0 }
 0x350   : > { %v3686_v60 = vpop.f32.mrf.mxu2  ;;  %v4172_v4 = vld [vmem:[#allocation4 + $0x69] sm:$0xff] }
 0x351   : > { %4115 = vst [vmem:[#allocation4 + $0x78] sm:$0xff] %v4084_v59  ;;  %v3747_v57 = vadd.f32 %v3686_v60, %v3446_v50 }
 0x352   : > { %v3958_v3 = vpop.f32.mrf.mxu3  ;;  %v3257_v23 = vpop.f32.mrf.mxu0 }
 0x353   : > { %v4019_v42 = vadd.f32 %v3958_v3, %v3747_v57  ;;  %v3457_v1 = vpop.f32.mrf.mxu1 }
 0x355   : > { %v4054_v0 = vadd.f32 %v6748_v54, %v4019_v42 }
 0x357   : > { %v4085_v56 = vmax.f32 %v4054_v0, 0.0  ;;  %v3458_v0 = vadd.f32 %v3457_v1, %v3254_v21  ;;  %v4170_v21 = vld [vmem:[#allocation4 + $0x59] sm:$0xff] }
 0x358   : > { %v3689_v63 = vpop.f32.mrf.mxu2  ;;  %v4173_v57 = vld [vmem:[#allocation4 + $0x71] sm:$0xff] }
 0x359   : > { %4116 = vst [vmem:[#allocation4 + $0x80] sm:$0xff] %v4085_v56  ;;  %v3748_v20 = vadd.f32 %v3689_v63, %v3449_v33 }
 0x35a   : > { %v3961_v9 = vpop.f32.mrf.mxu3  ;;  %v6928_v42 = vpop.f32.mrf.mxu0 }
 0x35b   : > { %v4020_v49 = vadd.f32 %v3961_v9, %v3748_v20  ;;  %v3460_v30 = vpop.f32.mrf.mxu1  ;;  %v4201_v9 = vmax.f32 %v4083_v40, %v4173_v57 }
 0x35c   : > { %v3461_v7 = vadd.f32 %v3460_v30, %v3257_v23  ;;  %v4256_v23 = vld [vmem:[#allocation4 + $0x6a] sm:$0xff] }
 0x35d   : > { %v4055_v52 = vadd.f32 %v6748_v54, %v4020_v49 }
 0x35f   : > { %v4086_v17 = vmax.f32 %v4055_v52, 0.0  ;;  %v4200_v52 = vmax.f32 %v4082_v26, %v4172_v4 }
 0x360   : > { %v3692_v28 = vpop.f32.mrf.mxu2  ;;  %v4174_v3 = vld [vmem:[#allocation4 + $0x79] sm:$0xff] }
 0x361   : > { %4117 = vst [vmem:[#allocation4 + $0x88] sm:$0xff] %v4086_v17  ;;  %v3749_v34 = vadd.f32 %v3692_v28, %v3452_v61  ;;  %v4202_v63 = vmax.f32 %v4084_v59, %v4174_v3  ;;  %v4171_v61 = vld [vmem:[#allocation4 + $0x61] sm:$0xff]  ;;  %v4230_v40 = vmax.f32 %v4200_v52, %v4174_v3 }
 0x362   : > { %v3964_v29 = vpop.f32.mrf.mxu3 }
 0x363   : > { %v4021_v41 = vadd.f32 %v3964_v29, %v3749_v34  ;;  %v6926_v50 = vpop.f32.mrf.mxu1 }
 0x364   : > { %v3464_v8 = vadd.f32 %v6926_v50, %v6928_v42  ;;  %v4252_v42 = vld [vmem:[#allocation4 + $0x4a] sm:$0xff] }
 0x365   : > { %v6919_v11 = vadd.f32 %v6748_v54, %v4021_v41 }
 0x367   : > { %v4087_v48 = vmax.f32 %v6919_v11, 0.0 }
 0x368   : > { %v3695_v47 = vpop.f32.mrf.mxu2  ;;  %v4175_v27 = vld [vmem:[#allocation4 + $0x81] sm:$0xff] }
 0x369   : > { %4118 = vst [vmem:[#allocation4 + $0x90] sm:$0xff] %v4087_v48  ;;  %v3750_v31 = vadd.f32 %v3695_v47, %v3455_v2  ;;  %v6924_v44 = vmax.f32 %v4085_v56, %v4175_v27  ;;  %v4231_v34 = vmax.f32 %v4201_v9, %v4175_v27  ;;  %v4199_v47 = vmax.f32 %v4081_v12, %v4171_v61  ;;  %v4259_v24 = vld [vmem:[#allocation4 + $0x82] sm:$0xff]  ;;  %v6951_v12 = vpop.f32.mrf.mxu0 }
 0x36a   : > { %v3967_v38 = vpop.f32.mrf.mxu3 }
 0x36b   : > { %v4022_v60 = vadd.f32 %v3967_v38, %v3750_v31  ;;  %v4169_v38 = vld [vmem:[#allocation4 + $0x51] sm:$0xff]  ;;  %v6942_v26 = vpop.f32.mrf.mxu1  ;;  %v4229_v27 = vmax.f32 %v4199_v47, %v4173_v57  ;;  %v4166_v57 = vld [vmem:[#allocation4 + $0x39] sm:$0xff]  ;;  %v4164_v47 = vld [vmem:[#allocation4 + $0x29] sm:$0xff] }
 0x36c   : > { %v4197_v3 = vmax.f32 %v4079_v58, %v4169_v38  ;;  %v4192_v51 = vmax.f32 %v4074_v45, %v4164_v47  ;;  %v4251_v45 = vld [vmem:[#allocation4 + $0x42] sm:$0xff]  ;;  %v3467_v62 = vadd.f32 %v6942_v26, %v6951_v12  ;;  %v4248_v12 = vld [vmem:[#allocation4 + $0x2a] sm:$0xff] }
 0x36d   : > { %v6931_v35 = vadd.f32 %v6748_v54, %v4022_v60  ;;  %v4287_v60 = vmax.f32 %v4231_v34, %v4259_v24  ;;  %v4254_v24 = vld [vmem:[#allocation4 + $0x5a] sm:$0xff] }
 0x36e   : > { %v4227_v30 = vmax.f32 %v4197_v3, %v4171_v61  ;;  %v4194_v61 = vmax.f32 %v4076_v43, %v4166_v57  ;;  %v4163_v43 = vld [vmem:[#allocation4 + $0x21] sm:$0xff] }
 0x36f   : > { %v4088_v33 = vmax.f32 %v6931_v35, 0.0 }
 0x370   : > { %v3698_v20 = vpop.f32.mrf.mxu2  ;;  %v4176_v56 = vld [vmem:[#allocation4 + $0x89] sm:$0xff] }
 0x371   : > { %4119 = vst [vmem:[#allocation4 + $0x98] sm:$0xff] %v4088_v33  ;;  %v3751_v28 = vadd.f32 %v3698_v20, %v3458_v0  ;;  %v4232_v29 = vmax.f32 %v4202_v63, %v4176_v56  ;;  %v6938_v41 = vmax.f32 %v4086_v17, %v4176_v56  ;;  %v4260_v1 = vld [vmem:[#allocation4 + $0x8a] sm:$0xff]  ;;  %v4198_v17 = vmax.f32 %v4080_v10, %v4170_v21  ;;  %v4258_v63 = vld [vmem:[#allocation4 + $0x7a] sm:$0xff] }
 0x372   : > { %v3970_v49 = vpop.f32.mrf.mxu3  ;;  %v4168_v0 = vld [vmem:[#allocation4 + $0x49] sm:$0xff]  ;;  %v4286_v20 = vmax.f32 %v4230_v40, %v4258_v63  ;;  %v4167_v10 = vld [vmem:[#allocation4 + $0x41] sm:$0xff] }
 0x373   : > { %v4023_v2 = vadd.f32 %v3970_v49, %v3751_v28  ;;  %v4288_v59 = vmax.f32 %v4232_v29, %v4260_v1  ;;  %v4228_v49 = vmax.f32 %v4198_v17, %v4172_v4  ;;  %v4257_v28 = vld [vmem:[#allocation4 + $0x72] sm:$0xff]  ;;  %v4196_v53 = vmax.f32 %v4078_v25, %v4168_v0 }
 0x374   : > { %v4285_v58 = vmax.f32 %v4229_v27, %v4257_v28  ;;  %v4195_v1 = vmax.f32 %v4077_v19, %v4167_v10  ;;  %v3469_v19 = vpop.f32.mrf.mxu1  ;;  %v4224_v17 = vmax.f32 %v4194_v61, %v4168_v0 }
 0x375   : > { %v6945_v31 = vadd.f32 %v6748_v54, %v4023_v2  ;;  %4336 = vmatpush.msra.mxu0 %v4288_v59  ;;  %v4284_v34 = vmax.f32 %v4228_v49, %v4256_v23  ;;  %v4226_v4 = vmax.f32 %v4196_v53, %v4170_v21  ;;  %v4165_v2 = vld [vmem:[#allocation4 + $0x31] sm:$0xff]  ;;  %v4283_v59 = vmax.f32 %v4227_v30, %v4255_v22  ;;  %v4250_v30 = vld [vmem:[#allocation4 + $0x3a] sm:$0xff] }
 0x376   : > { %v4225_v40 = vmax.f32 %v4195_v1, %v4169_v38  ;;  %v4253_v38 = vld [vmem:[#allocation4 + $0x52] sm:$0xff]  ;;  %v4280_v0 = vmax.f32 %v4224_v17, %v4252_v42  ;;  %v4189_v23 = vmax.f32 %v4071_v16, %v4161_v18 }
 0x377   : > { %v4089_v9 = vmax.f32 %v6945_v31, 0.0  ;;  %4337 = vmatpush.msra.mxu0 %v4287_v60  ;;  %v4193_v60 = vmax.f32 %v4075_v39, %v4165_v2  ;;  %v4282_v27 = vmax.f32 %v4226_v4, %v4254_v24  ;;  %v4249_v1 = vld [vmem:[#allocation4 + $0x32] sm:$0xff] }
 0x378   : > { %v3701_v56 = vpop.f32.mrf.mxu2  ;;  %v4281_v39 = vmax.f32 %v4225_v40, %v4253_v38  ;;  %v4219_v26 = vmax.f32 %v4189_v23, %v4163_v43 }
 0x379   : > { %4120 = vst [vmem:[#allocation4 + $0xa0] sm:$0xff] %v4089_v9  ;;  %v3752_v46 = vadd.f32 %v3701_v56, %v3461_v7  ;;  %4338 = vmatpush.msra.mxu0 %v4286_v20  ;;  %v3266_v7 = vpop.f32.mrf.mxu0  ;;  %v4223_v50 = vmax.f32 %v4193_v60, %v4167_v10  ;;  %v4162_v20 = vld [vmem:[#allocation4 + $0x19] sm:$0xff]  ;;  %v4222_v56 = vmax.f32 %v4192_v51, %v4166_v57 }
 0x37a   : > { %v3973_v52 = vpop.f32.mrf.mxu3  ;;  %v4190_v10 = vmax.f32 %v4072_v6, %v4162_v20  ;;  %v4159_v6 = vld [vmem:[#allocation4 + $0x1] sm:$0xff]  ;;  %v4275_v24 = vmax.f32 %v4219_v26, %v4247_v32  ;;  %v4245_v51 = vld [vmem:[#allocation4 + $0x12] sm:$0xff] }
 0x37b   : > { %v4024_v29 = vadd.f32 %v3973_v52, %v3752_v46  ;;  %4339 = vmatpush.msra.mxu0 %v4285_v58  ;;  %v4191_v52 = vmax.f32 %v4073_v13, %v4163_v43  ;;  %v4279_v53 = vmax.f32 %v4223_v50, %v4251_v45  ;;  %v4160_v58 = vld [vmem:[#allocation4 + $0x9] sm:$0xff]  ;;  %v4278_v57 = vmax.f32 %v4222_v56, %v4250_v30 }
 0x37c   : > { %v4188_v55 = vmax.f32 %v4070_v37, %v4160_v58 }
 0x37d   : > { %v6961_v25 = vadd.f32 %v6748_v54, %v4024_v29  ;;  %4340 = vmatpush.msra.mxu0 %v4284_v34  ;;  %v4221_v46 = vmax.f32 %v4191_v52, %v4165_v2  ;;  %v4220_v29 = vmax.f32 %v4190_v10, %v4164_v47  ;;  %v3472_v2 = vpop.f32.mrf.mxu1  ;;  %v4187_v47 = vmax.f32 %v4069_v14, %v4159_v6 }
 0x37e   : > { %v4218_v61 = vmax.f32 %v4188_v55, %v4162_v20 }
 0x37f   : > { %v4090_v21 = vmax.f32 %v6961_v25, 0.0  ;;  %4341 = vmatpush.msra.mxu0 %v4283_v59  ;;  %v4277_v16 = vmax.f32 %v4221_v46, %v4249_v1  ;;  %v4276_v40 = vmax.f32 %v4220_v29, %v4248_v12  ;;  %v4217_v60 = vmax.f32 %v4187_v47, %v4161_v18 }
 0x380   : > { %v3704_v63 = vpop.f32.mrf.mxu2 }
 0x381   : > { %4121 = vst [vmem:[#allocation4 + $0xa8] sm:$0xff] %v4090_v21  ;;  %v3753_v5 = vadd.f32 %v3704_v63, %v3464_v8  ;;  %4342 = vmatpush.msra.mxu0 %v4282_v27  ;;  %v3269_v22 = vpop.f32.mrf.mxu0  ;;  %v4246_v8 = vld [vmem:[#allocation4 + $0x1a] sm:$0xff]  ;;  %v3470_v27 = vadd.f32 %v3469_v19, %v3266_v7  ;;  %v4273_v14 = vmax.f32 %v4217_v60, %v4245_v51 }
 0x382   : > { %v3976_v3 = vpop.f32.mrf.mxu3  ;;  %v4274_v63 = vmax.f32 %v4218_v61, %v4246_v8  ;;  %v3473_v19 = vadd.f32 %v3472_v2, %v3269_v22 }
 0x383   : > { %v4025_v49 = vadd.f32 %v3976_v3, %v3753_v5  ;;  %4343 = vmatpush.msra.mxu0 %v4281_v39 }
 0x385   : > { %v6977_v28 = vadd.f32 %v6748_v54, %v4025_v49  ;;  %4344 = vmatpush.msra.mxu0 %v4280_v0  ;;  %v3475_v43 = vpop.f32.mrf.mxu1 }
 0x387   : > { %v4091_v13 = vmax.f32 %v6977_v28, 0.0  ;;  %4345 = vmatpush.msra.mxu0 %v4279_v53 }
 0x388   : > { %v3707_v34 = vpop.f32.mrf.mxu2  ;;  %v4263_v35 = vld [vmem:[#allocation4 + $0xa2] sm:$0xff] }
 0x389   : > { %4122 = vst [vmem:[#allocation4 + $0xb0] sm:$0xff] %v4091_v13  ;;  %v3754_v36 = vadd.f32 %v3707_v34, %v3467_v62  ;;  %4346 = vmatpush.msra.mxu0 %v4278_v57  ;;  %v3272_v39 = vpop.f32.mrf.mxu0 }
 0x38a   : > { %v3979_v4 = vpop.f32.mrf.mxu3  ;;  %v3476_v45 = vadd.f32 %v3475_v43, %v3272_v39 }
 0x38b   : > { %v4026_v59 = vadd.f32 %v3979_v4, %v3754_v36  ;;  %4347 = vmatpush.msra.mxu0 %v4277_v16 }
 0x38d   : > { %v6993_v37 = vadd.f32 %v6748_v54, %v4026_v59  ;;  %4348 = vmatpush.msra.mxu0 %v4276_v40  ;;  %v3478_v56 = vpop.f32.mrf.mxu1 }
 0x38f   : > { %v4092_v17 = vmax.f32 %v6993_v37, 0.0  ;;  %4349 = vmatpush.msra.mxu0 %v4275_v24 }
 0x390   : > { %v3710_v3 = vpop.f32.mrf.mxu2 }
 0x391   : > { %4123 = vst [vmem:[#allocation4 + $0xb8] sm:$0xff] %v4092_v17  ;;  %v3755_v15 = vadd.f32 %v3710_v3, %v3470_v27  ;;  %4350 = vmatpush.msra.mxu0 %v4274_v63  ;;  %v3275_v18 = vpop.f32.mrf.mxu0 }
 0x392   : > { %v3982_v38 = vpop.f32.mrf.mxu3  ;;  %v3479_v62 = vadd.f32 %v3478_v56, %v3275_v18 }
 0x393   : > { %v4027_v5 = vadd.f32 %v3982_v38, %v3755_v15  ;;  %4351 = vmatpush.msra.mxu0 %v4273_v14 }
 0x395   : > { %v6999_v50 = vadd.f32 %v6748_v54, %v4027_v5  ;;  %v3481_v57 = vpop.f32.mrf.mxu1  ;;  %v4301_v5 = vlaneseq }
 0x397   : > { %v4093_v7 = vmax.f32 %v6999_v50, 0.0  ;;  %vm7089_vm11 = vcmp.lt.s32.totalorder %v4301_v5, 16  ;;  %vm4537_vm12 = vcmp.ge.s32.totalorder %v4301_v5, 16  ;;  %vm4538_vm13 = vcmp.lt.s32.totalorder %v4301_v5, 32 }
 0x398   : > { %v3713_v42 = vpop.f32.mrf.mxu2  ;;  %vm7146_vm14 = vmand %vm4537_vm12, %vm4538_vm13  ;;  %vm4546_vm15 = vcmp.ge.s32.totalorder %v4301_v5, 32  ;;  %vm4547_vm1 = vcmp.lt.s32.totalorder %v4301_v5, 48 }
 0x399   : > { %4124 = vst [vmem:[#allocation4 + $0xc0] sm:$0xff] %v4093_v7  ;;  %v3756_v49 = vadd.f32 %v3713_v42, %v3473_v19  ;;  %v3278_v55 = vpop.f32.mrf.mxu0  ;;  %v7018_v42 = vshrl.u32 %v4301_v5, 7 }
 0x39a   : > { %v3985_v20 = vpop.f32.mrf.mxu3  ;;  %v3482_v36 = vadd.f32 %v3481_v57, %v3278_v55  ;;  %v5617_v57 = vmov 1.0  }
 0x39b   : > { %v4028_v0 = vadd.f32 %v3985_v20, %v3756_v49  ;;  %v4307_v49 = vshra.s32 %v7018_v42, 2 }
 0x39d   : > { %v7005_v52 = vadd.f32 %v6748_v54, %v4028_v0  ;;  %v3484_v59 = vpop.f32.mrf.mxu1  ;;  %v4311_v0 = vand.u32 3, %v7018_v42  ;;  %v4309_v18 = vmul.u32 68, %v4307_v49 }
 0x39f   : > { %v4094_v53 = vmax.f32 %v7005_v52, 0.0 }
 0x3a0   : > { %v3716_v46 = vpop.f32.mrf.mxu2 }
 0x3a1   : > { %4125 = vst [vmem:[#allocation4 + $0xc8] sm:$0xff] %v4094_v53  ;;  %v3757_v58 = vadd.f32 %v3716_v46, %v3476_v45  ;;  %v3281_v61 = vpop.f32.mrf.mxu0  ;;  %v4313_v45 = vmul.u32 4, %v4311_v0 }
 0x3a2   : > { %v3988_v10 = vpop.f32.mrf.mxu3  ;;  %v3485_v32 = vadd.f32 %v3484_v59, %v3281_v61 }
 0x3a3   : > { %v4029_v30 = vadd.f32 %v3988_v10, %v3757_v58  ;;  %v7023_v10 = vadd.s32 %v4313_v45, %v4309_v18  ;;  %v7026_v58 = vand.u32 127, %v4301_v5  ;;  %v4266_v45 = vld [vmem:[#allocation4 + $0xba] sm:$0xff] }
 0x3a5   : > { %v7011_v23 = vadd.f32 %v6748_v54, %v4029_v30  ;;  %v3487_v3 = vpop.f32.mrf.mxu1  ;;  %v7029_v30 = vadd.s32 8, %v7018_v42  ;;  %vm4317_vm2 = vcmp.eq.s32.totalorder %v7026_v58, %v7023_v10  ;;  %vm4396_vm7 = vcmp.eq.s32.totalorder %v7018_v42, %v7026_v58 }
 0x3a6   : > { %5394 = vmatmul.msk.f32.vlgmr.msra.gmra.mxu0 %vm4317_vm2, %v5617_v57 }
 0x3a7   : > { %v4095_v29 = vmax.f32 %v7011_v23, 0.0  ;;  %vm4397_vm8 = vcmp.eq.s32.totalorder %v7029_v30, %v7026_v58 }
 0x3a8   : > { %v3719_v34 = vpop.f32.mrf.mxu2  ;;  %v4267_v0 = vld [vmem:[#allocation4 + $0xc2] sm:$0xff] }
 0x3a9   : > { %4126 = vst [vmem:[#allocation4 + $0xd0] sm:$0xff] %v4095_v29  ;;  %v3758_v1 = vadd.f32 %v3719_v34, %v3479_v62  ;;  %v3284_v51 = vpop.f32.mrf.mxu0  ;;  %v4312_v34 = vand.u32 3, %v7029_v30 }
 0x3aa   : > { %v3991_v4 = vpop.f32.mrf.mxu3  ;;  %v3488_v15 = vadd.f32 %v3487_v3, %v3284_v51  ;;  %v4180_v3 = vld [vmem:[#allocation4 + $0xa9] sm:$0xff] }
 0x3ab   : > { %v4030_v6 = vadd.f32 %v3991_v4, %v3758_v1 }
 0x3ad   : > { %v4065_v2 = vadd.f32 %v6748_v54, %v4030_v6  ;;  %v4314_v6 = vmul.u32 4, %v4312_v34 }
 0x3af   : > { %v4096_v16 = vmax.f32 %v4065_v2, 0.0 }
 0x3b0   : > { %v3722_v26 = vpop.f32.mrf.mxu2  ;;  %v4184_v1 = vld [vmem:[#allocation4 + $0xc9] sm:$0xff] }
 0x3b1   : > { %4127 = vst [vmem:[#allocation4 + $0xd8] sm:$0xff] %v4096_v16  ;;  %v3759_v22 = vadd.f32 %v3722_v26, %v3482_v36  ;;  %v4212_v61 = vmax.f32 %v4094_v53, %v4184_v1 }
 0x3b2   : > { %v3994_v12 = vpop.f32.mrf.mxu3 }
 0x3b3   : > { %v4031_v40 = vadd.f32 %v3994_v12, %v3759_v22  ;;  %v4183_v12 = vld [vmem:[#allocation4 + $0xc1] sm:$0xff] }
 0x3b5   : > { %v4066_v47 = vadd.f32 %v6748_v54, %v4031_v40 }
 0x3b7   : > { %v4097_v24 = vmax.f32 %v4066_v47, 0.0 }
 0x3b8   : > { %v3725_v60 = vpop.f32.mrf.mxu2  ;;  %v4185_v62 = vld [vmem:[#allocation4 + $0xd1] sm:$0xff] }
 0x3b9   : > { %4128 = vst [vmem:[#allocation4 + $0xe0] sm:$0xff] %v4097_v24  ;;  %v3760_v27 = vadd.f32 %v3725_v60, %v3485_v32  ;;  %v4213_v36 = vmax.f32 %v4095_v29, %v4185_v62  ;;  %v4182_v32 = vld [vmem:[#allocation4 + $0xb9] sm:$0xff] }
 0x3ba   : > { %v3997_v8 = vpop.f32.mrf.mxu3  ;;  %v4210_v52 = vmax.f32 %v4092_v17, %v4182_v32  ;;  %v4269_v50 = vld [vmem:[#allocation4 + $0xd2] sm:$0xff] }
 0x3bb   : > { %v4032_v63 = vadd.f32 %v3997_v8, %v3760_v27  ;;  %v4181_v8 = vld [vmem:[#allocation4 + $0xb1] sm:$0xff] }
 0x3bc   : > { %v4240_v51 = vmax.f32 %v4210_v52, %v4184_v1 }
 0x3bd   : > { %v4067_v38 = vadd.f32 %v6748_v54, %v4032_v63 }
 0x3bf   : > { %v4098_v14 = vmax.f32 %v4067_v38, 0.0 }
 0x3c0   : > { %v3728_v43 = vpop.f32.mrf.mxu2  ;;  %v4186_v23 = vld [vmem:[#allocation4 + $0xd9] sm:$0xff] }
 0x3c1   : > { %4129 = vst [vmem:[#allocation4 + $0xe8] sm:$0xff] %v4098_v14  ;;  %v3761_v39 = vadd.f32 %v3728_v43, %v3488_v15  ;;  %v4214_v2 = vmax.f32 %v4096_v16, %v4186_v23  ;;  %v4242_v60 = vmax.f32 %v4212_v61, %v4186_v23  ;;  %v4211_v16 = vmax.f32 %v4093_v7, %v4183_v12  ;;  %v4270_v53 = vld [vmem:[#allocation4 + $0xda] sm:$0xff]  ;;  %v4265_v23 = vld [vmem:[#allocation4 + $0xb2] sm:$0xff] }
 0x3c2   : > { %v4000_v19 = vpop.f32.mrf.mxu3  ;;  %v4209_v15 = vmax.f32 %v4091_v13, %v4181_v8  ;;  %v4179_v7 = vld [vmem:[#allocation4 + $0xa1] sm:$0xff] }
 0x3c3   : > { %v4033_v20 = vadd.f32 %v4000_v19, %v3761_v39  ;;  %v4241_v63 = vmax.f32 %v4211_v16, %v4185_v62  ;;  %v4298_v38 = vmax.f32 %v4242_v60, %v4270_v53  ;;  %v4208_v39 = vmax.f32 %v4090_v21, %v4180_v3  ;;  %v4268_v19 = vld [vmem:[#allocation4 + $0xca] sm:$0xff] }
 0x3c4   : > { %v4239_v43 = vmax.f32 %v4209_v15, %v4183_v12  ;;  %v4296_v37 = vmax.f32 %v4240_v51, %v4268_v19  ;;  %v4207_v49 = vmax.f32 %v4089_v9, %v4179_v7  ;;  %v4264_v9 = vld [vmem:[#allocation4 + $0xaa] sm:$0xff] }
 0x3c5   : > { %v4068_v56 = vadd.f32 %v6748_v54, %v4033_v20  ;;  %v4308_v54 = vshra.s32 %v7029_v30, 2  ;;  %v4297_v14 = vmax.f32 %v4241_v63, %v4269_v50  ;;  %v4178_v20 = vld [vmem:[#allocation4 + $0x99] sm:$0xff]  ;;  %v4238_v17 = vmax.f32 %v4208_v39, %v4182_v32  ;;  %v4684_v30 = vld [vmem:[%s7697_s7 + $0xc0] sm:$0xff] }
 0x3c6   : > { %v4295_v28 = vmax.f32 %v4239_v43, %v4267_v0  ;;  %v4237_v13 = vmax.f32 %v4207_v49, %v4181_v8  ;;  %v4206_v18 = vmax.f32 %v4088_v33, %v4178_v20  ;;  %v4686_v32 = vld [vmem:[%s7697_s7 + $0xd0] sm:$0xff]  ;;  %v4680_v15 = vld [vmem:[%s7697_s7 + $0xa0] sm:$0xff] }
 0x3c7   : > { %v4099_v46 = vmax.f32 %v4068_v56, 0.0  ;;  %v4310_v55 = vmul.u32 68, %v4308_v54  ;;  %v4177_v56 = vld [vmem:[#allocation4 + $0x91] sm:$0xff]  ;;  %v4294_v25 = vmax.f32 %v4238_v17, %v4266_v45  ;;  %v4306_v54 = vadd.s32 128, %v7026_v58 }
 0x3c8   : > { %v4215_v4 = vld [vmem:[#allocation4 + $0xe1] sm:$0xff]  ;;  %v4236_v21 = vmax.f32 %v4206_v18, %v4180_v3  ;;  %v4293_v62 = vmax.f32 %v4237_v13, %v4265_v23  ;;  %v4233_v1 = vmax.f32 %v6924_v44, %v4177_v56  ;;  %v4690_v44 = vld [vmem:[%s7697_s7 + $0xf0] sm:$0xff] }
 0x3c9   : > { %4130 = vst [vmem:[#allocation4 + $0xf0] sm:$0xff] %v4099_v46  ;;  %v7036_v22 = vadd.s32 %v4314_v6, %v4310_v55  ;;  %v4243_v40 = vmax.f32 %v4213_v36, %v4215_v4  ;;  %v4271_v29 = vld [vmem:[#allocation4 + $0xe2] sm:$0xff]  ;;  %v4205_v46 = vmax.f32 %v4087_v48, %v4177_v56  ;;  %v4234_v4 = vmax.f32 %v6938_v41, %v4178_v20  ;;  %v4262_v55 = vld [vmem:[#allocation4 + $0x9a] sm:$0xff]  ;;  %v4261_v48 = vld [vmem:[#allocation4 + $0x92] sm:$0xff] }
 0x3ca   : > { %v4292_v34 = vmax.f32 %v4236_v21, %v4264_v9  ;;  %vm4318_vm4 = vcmp.eq.s32.totalorder %v4306_v54, %v7023_v10  ;;  %v4289_v6 = vmax.f32 %v4233_v1, %v4261_v48  ;;  %4755 = vmatpush.msra.mxu3 %v4690_v44  ;;  %v4682_v63 = vld [vmem:[%s7697_s7 + $0xb0] sm:$0xff]  ;;  %v4736_v9 = vld [vmem:[%s7697_s7 + $0x260] sm:$0xff] }
 0x3cb   : > { %vm4319_vm3 = vcmp.eq.s32.totalorder %v7026_v58, %v7036_v22  ;;  %v4299_v27 = vmax.f32 %v4243_v40, %v4271_v29  ;;  %v4235_v31 = vmax.f32 %v4205_v46, %v4179_v7  ;;  %v4290_v11 = vmax.f32 %v4234_v4, %v4262_v55  ;;  %v4678_v50 = vld [vmem:[%s7697_s7 + $0x90] sm:$0xff]  ;;  %v4676_v7 = vld [vmem:[%s7697_s7 + $0x80] sm:$0xff] }
 0x3cc   : > { %5395 = vmatmul.msk.f32.gmra.mxu0 %vm4319_vm3, %v5617_v57  ;;  %vm4320_vm6 = vcmp.eq.s32.totalorder %v4306_v54, %v7036_v22  ;;  %v4382_v22 = vadd.s32 16, %v7018_v42  ;;  %v4674_v43 = vld [vmem:[%s7697_s7 + $0x70] sm:$0xff]  ;;  %v4720_v54 = vld [vmem:[%s7697_s7 + $0x1e0] sm:$0xff]  ;;  %vm4555_vm3 = vcmp.ge.s32.totalorder %v4301_v5, 48 }
 0x3cd   : > { %v4291_v33 = vmax.f32 %v4235_v31, %v4263_v35  ;;  %v4670_v46 = vld [vmem:[%s7697_s7 + $0x50] sm:$0xff]  ;;  %v4668_v4 = vld [vmem:[%s7697_s7 + $0x40] sm:$0xff] }
 0x3ce   : > { %vm4398_vm9 = vcmp.eq.s32.totalorder %v4382_v22, %v7026_v58  ;;  %v4738_v23 = vld [vmem:[%s7697_s7 + $0x270] sm:$0xff]  ;;  %v4664_v55 = vld [vmem:[%s7697_s7 + $0x20] sm:$0xff] }
 0x3cf   : > { %v4666_v35 = vld [vmem:[%s7697_s7 + $0x30] sm:$0xff]  ;;  %v4716_v48 = vld [vmem:[%s7697_s7 + $0x1c0] sm:$0xff] }
 0x3d0   : > { %v4216_v26 = vld [vmem:[#allocation4 + $0xe9] sm:$0xff]  ;;  %v4718_v1 = vld [vmem:[%s7697_s7 + $0x1d0] sm:$0xff] }
 0x3d1   : > { %v4244_v59 = vmax.f32 %v4214_v2, %v4216_v26  ;;  %v4272_v47 = vld [vmem:[#allocation4 + $0xea] sm:$0xff]  ;;  %v5618_v2 = vmov 0.0   ;;  %v4710_v22 = vld [vmem:[%s7697_s7 + $0x190] sm:$0xff] }
 0x3d2   : > { %v5391_v36 = vsel %vm4318_vm4, 1.0, %v5618_v2  ;;  %v5393_v41 = vsel %vm4320_vm6, 1.0, %v5618_v2  ;;  %v4714_v2 = vld [vmem:[%s7697_s7 + $0x1b0] sm:$0xff]  ;;  %v4728_v44 = vld [vmem:[%s7697_s7 + $0x220] sm:$0xff]  ;;  %vm4556_vm4 = vcmp.lt.s32.totalorder %v4301_v5, 64 }
 0x3d3   : > { %v4300_v24 = vmax.f32 %v4244_v59, %v4272_v47  ;;  %v4688_v47 = vld [vmem:[%s7697_s7 + $0xe0] sm:$0xff]  ;;  %vm7238_vm6 = vmand %vm4555_vm3, %vm4556_vm4  ;;  %vm7467_vm3 = vcmp.ge.s32.totalorder %v4301_v5, 112  ;;  %vm7472_vm4 = vcmp.lt.s32.totalorder %v4301_v5, 128  ;;  %v4895_v31 = vld [vmem:[%s7669_s9 + $0x90] sm:$0xff] }
 0x3d4   : > { %4756 = vmatpush.msra.mxu3 %v4688_v47  ;;  %v4724_v47 = vld [vmem:[%s7697_s7 + $0x200] sm:$0xff] }
 0x3d5   : > { %4363 = vmatpush.msrb.mxu1 %v4300_v24 }
 0x3d6   : > { %4757 = vmatpush.msra.mxu3 %v4686_v32  ;;  %v4687_v32 = vld [vmem:[%s7697_s7 + $0xd8] sm:$0xff] }
 0x3d7   : > { %4364 = vmatpush.msrb.mxu1 %v4299_v27 }
 0x3d8   : > { %4758 = vmatpush.msra.mxu3 %v4684_v30  ;;  %v4723_v30 = vld [vmem:[%s7697_s7 + $0x1f8] sm:$0xff] }
 0x3d9   : > { %4365 = vmatpush.msrb.mxu1 %v4298_v38 }
 0x3da   : > { %4759 = vmatpush.msra.mxu3 %v4682_v63  ;;  %v4706_v63 = vld [vmem:[%s7697_s7 + $0x170] sm:$0xff] }
 0x3db   : > { %4366 = vmatpush.msrb.mxu1 %v4297_v14 }
 0x3dc   : > { %4760 = vmatpush.msra.mxu3 %v4680_v15  ;;  %v4384_v15 = vadd.s32 32, %v7018_v42 }
 0x3dd   : > { %4367 = vmatpush.msrb.mxu1 %v4296_v37 }
 0x3de   : > { %4761 = vmatpush.msra.mxu3 %v4678_v50 }
 0x3df   : > { %4368 = vmatpush.msrb.mxu1 %v4295_v28 }
 0x3e0   : > { %4762 = vmatpush.msra.mxu3 %v4676_v7  ;;  %v4892_v7 = vld [vmem:[%s7669_s9 + $0x78] sm:$0xff] }
 0x3e1   : > { %4369 = vmatpush.msrb.mxu1 %v4294_v25  ;;  %v4672_v25 = vld [vmem:[%s7697_s7 + $0x60] sm:$0xff] }
 0x3e2   : > { %4763 = vmatpush.msra.mxu3 %v4674_v43  ;;  %v4717_v43 = vld [vmem:[%s7697_s7 + $0x1c8] sm:$0xff] }
 0x3e3   : > { %4370 = vmatpush.msrb.mxu1 %v4293_v62  ;;  %v4722_v62 = vld [vmem:[%s7697_s7 + $0x1f0] sm:$0xff] }
 0x3e4   : > { %4764 = vmatpush.msra.mxu3 %v4672_v25  ;;  %v4698_v25 = vld [vmem:[%s7697_s7 + $0x130] sm:$0xff] }
 0x3e5   : > { %4371 = vmatpush.msrb.mxu1 %v4292_v34 }
 0x3e6   : > { %4765 = vmatpush.msra.mxu3 %v4670_v46  ;;  %v4711_v46 = vld [vmem:[%s7697_s7 + $0x198] sm:$0xff] }
 0x3e7   : > { %4372 = vmatpush.msrb.mxu1 %v4291_v33  ;;  %v4734_v33 = vld [vmem:[%s7697_s7 + $0x250] sm:$0xff] }
 0x3e8   : > { %4766 = vmatpush.msra.mxu3 %v4668_v4  ;;  %v4694_v4 = vld [vmem:[%s7697_s7 + $0x110] sm:$0xff] }
 0x3e9   : > { %4373 = vmatpush.msrb.mxu1 %v4290_v11  ;;  %v4732_v11 = vld [vmem:[%s7697_s7 + $0x240] sm:$0xff] }
 0x3ea   : > { %4767 = vmatpush.msra.mxu3 %v4666_v35  ;;  %v4707_v35 = vld [vmem:[%s7697_s7 + $0x178] sm:$0xff] }
 0x3eb   : > { %4374 = vmatpush.msrb.mxu1 %v4289_v6  ;;  %v4730_v6 = vld [vmem:[%s7697_s7 + $0x230] sm:$0xff] }
 0x3ec   : > { %5396 = vmatmul.msk.f32.vlgmr.msrb.gmra.mxu1 %vm4329_vm5, %v5391_v36  ;;  %4768 = vmatpush.msra.mxu3 %v4664_v55  ;;  %v4662_v36 = vld [vmem:[%s7697_s7 + $0x10] sm:$0xff] }
 0x3ed   : > { %4803 = vmatpush.msra.mxu1 %v4738_v23  ;;  %v4673_v23 = vld [vmem:[%s7697_s7 + $0x68] sm:$0xff] }
 0x3ee   : > { %4769 = vmatpush.msra.mxu3 %v4662_v36  ;;  %v4703_v36 = vld [vmem:[%s7697_s7 + $0x158] sm:$0xff] }
 0x3ef   : > { %4804 = vmatpush.msra.mxu1 %v4736_v9  ;;  %v4894_v9 = vld [vmem:[%s7669_s9 + $0x88] sm:$0xff] }
 0x3f1   : > { %4805 = vmatpush.msra.mxu1 %v4734_v33  ;;  %v4669_v33 = vld [vmem:[%s7697_s7 + $0x48] sm:$0xff] }
 0x3f3   : > { %4806 = vmatpush.msra.mxu1 %v4732_v11 }
 0x3f4   : > { %5397 = vmatmul.msk.f32.gmra.mxu1 %vm4329_vm5, %v5393_v41  ;;  %v4660_v41 = vld [vmem:[%s7697_s7] sm:$0xff]  ;;  %vm7231_vm5 = vmand %vm4546_vm15, %vm4547_vm1  ;;  %vm7362_vm15 = vcmp.lt.s32.totalorder %v4301_v5, 112 }
 0x3f5   : > { %4807 = vmatpush.msra.mxu1 %v4730_v6  ;;  %4770 = vmatpush.msra.mxu3 %v4660_v41  ;;  %v4739_v6 = vld [vmem:[%s7697_s7 + $0x278] sm:$0xff]  ;;  %v4737_v41 = vld [vmem:[%s7697_s7 + $0x268] sm:$0xff] }
 0x3f7   : > { %4808 = vmatpush.msra.mxu1 %v4728_v44  ;;  %v4665_v44 = vld [vmem:[%s7697_s7 + $0x28] sm:$0xff] }
 0x423   : > { %v4353_v26 = vpop.f32.mrf.mxu0 }
 0x449   : > { %v4356_v10 = vpop.f32.mrf.mxu0 }
 0x469   : > { %v4376_v12 = vpop.f32.mrf.mxu1 }
 0x46a   : > { %v4377_v61 = vadd.f32 %v4376_v12, %v4353_v26  ;;  %v4691_v12 = vld [vmem:[%s7697_s7 + $0xf8] sm:$0xff] }
 0x46b   : > { %4815 = vmatpush.msrb.mxu3 %v4691_v12  ;;  %v4667_v12 = vld [vmem:[%s7697_s7 + $0x38] sm:$0xff] }
 0x471   : > { %v4379_v59 = vpop.f32.mrf.mxu1 }
 0x472   : > { %v4380_v40 = vadd.f32 %v4379_v59, %v4356_v10  ;;  %v4712_v10 = vld [vmem:[%s7697_s7 + $0x1a0] sm:$0xff]  ;;  %v4726_v59 = vld [vmem:[%s7697_s7 + $0x210] sm:$0xff] }
 0x473   : > { %4809 = vmatpush.msra.mxu1 %v4726_v59  ;;  %v4735_v59 = vld [vmem:[%s7697_s7 + $0x258] sm:$0xff] }
 0x474   : > { %4458 = vmatpush.xpose.msrb.mxu0 %v4380_v40  ;;  %5440 = vmatpush.xpose.msra.mxu2 %v4380_v40  ;;  %v4383_v40 = vadd.s32 24, %v7018_v42 }
 0x475   : > { %4810 = vmatpush.msra.mxu1 %v4724_v47  ;;  %v4661_v47 = vld [vmem:[%s7697_s7 + $0x8] sm:$0xff] }
 0x476   : > { %vm4399_vm2 = vcmp.eq.s32.totalorder %v4383_v40, %v7026_v58  ;;  %v4663_v40 = vld [vmem:[%s7697_s7 + $0x18] sm:$0xff] }
 0x477   : > { %4835 = vmatpush.msrb.mxu1 %v4723_v30 }
 0x478   : > { %4459 = vmatpush.xpose.msrb.mxu0 %v4377_v61  ;;  %5441 = vmatpush.xpose.msra.mxu2 %v4377_v61  ;;  %v4689_v61 = vld [vmem:[%s7697_s7 + $0xe8] sm:$0xff] }
 0x479   : > { %4816 = vmatpush.msrb.mxu3 %v4689_v61  ;;  %v4699_v61 = vld [vmem:[%s7697_s7 + $0x138] sm:$0xff] }
 0x47b   : > { %5414 = vmatmul.msk.f32.vlgmr.msrb.gmra.mxu0 %vm4396_vm7, %v5617_v57  ;;  %4817 = vmatpush.msrb.mxu3 %v4687_v32  ;;  %vm7265_vm7 = vcmp.ge.s32.totalorder %v4301_v5, 64 }
 0x47c   : > { %4775 = vmatpush.msra.mxu0 %v4722_v62  ;;  %v4696_v62 = vld [vmem:[%s7697_s7 + $0x120] sm:$0xff] }
 0x47e   : > { %4776 = vmatpush.msra.mxu0 %v4720_v54  ;;  %v4709_v54 = vld [vmem:[%s7697_s7 + $0x188] sm:$0xff] }
 0x480   : > { %4777 = vmatpush.msra.mxu0 %v4718_v1  ;;  %v4692_v1 = vld [vmem:[%s7697_s7 + $0x100] sm:$0xff] }
 0x482   : > { %4778 = vmatpush.msra.mxu0 %v4716_v48  ;;  %v4705_v48 = vld [vmem:[%s7697_s7 + $0x168] sm:$0xff] }
 0x483   : > { %5415 = vmatmul.msk.f32.gmra.mxu0 %vm4397_vm8, %v5617_v57  ;;  %vm7270_vm8 = vcmp.lt.s32.totalorder %v4301_v5, 80 }
 0x484   : > { %4779 = vmatpush.msra.mxu0 %v4714_v2  ;;  %vm4566_vm12 = vmand %vm7265_vm7, %vm7270_vm8 }
 0x486   : > { %4780 = vmatpush.msra.mxu0 %v4712_v10  ;;  %v4701_v10 = vld [vmem:[%s7697_s7 + $0x148] sm:$0xff] }
 0x488   : > { %4781 = vmatpush.msra.mxu0 %v4710_v22  ;;  %v4733_v22 = vld [vmem:[%s7697_s7 + $0x248] sm:$0xff] }
 0x48b   : > { %5416 = vmatmul.msk.f32.gmra.mxu0 %vm4398_vm9, %v5617_v57  ;;  %vm7285_vm9 = vcmp.ge.s32.totalorder %v4301_v5, 80 }
 0x493   : > { %5417 = vmatmul.msk.f32.gmra.mxu0 %vm4399_vm2, %v5617_v57 }
 0x4f8   : > { %v4461_v24 = vpop.f32.mrf.mxu0 }
 0x4f9   : > { %4510 = vst.msk [vmem:[#allocation5] sm:$0xff] %vm4509_vm10, %v4461_v24  ;;  %v4708_v24 = vld [vmem:[%s7697_s7 + $0x180] sm:$0xff] }
 0x4fa   : > { %4782 = vmatpush.msra.mxu0 %v4708_v24  ;;  %v4697_v24 = vld [vmem:[%s7697_s7 + $0x128] sm:$0xff] }
 0x4fc   : > { %4783 = vmatpush.msra.mxu0 %v4706_v63  ;;  %v4727_v63 = vld [vmem:[%s7697_s7 + $0x218] sm:$0xff] }
 0x500   : > { %v4532_v60 = vld [vmem:[#allocation5 + $0x1] sm:$0x1]  ;;  %v4464_v16 = vpop.f32.mrf.mxu0  ;;  %v4541_v29 = vld [vmem:[#allocation5 + $0x2] sm:$0x1]  ;;  %v4550_v27 = vld [vmem:[#allocation5 + $0x3] sm:$0x1] }
 0x501   : > { %4534 = vrot.lane.b32.xlu1 %v4532_v60, %s5619_s18  ;;  %4511 = vst.msk [vmem:[#allocation5 + $0x8] sm:$0xff] %vm4509_vm10, %v4464_v16  ;;  %4543 = vrot.lane.b32.xlu0 %v4541_v29, %s7675_s0  ;;  %v4526_v52 = vld [vmem:[#allocation5] sm:$0x1]  ;;  %v4559_v53 = vld [vmem:[#allocation5 + $0x4] sm:$0x1]  ;;  %s5623_s0 = smov 80  }
 0x502   : > { %4552 = vrot.lane.b32.xlu2 %v4550_v27, %s7677_s28  ;;  %4531 = vst.msk [vmem:[%s7100_s20] sm:$0x1] %vm7089_vm11, %v4526_v52  ;;  %v4568_v3 = vld [vmem:[#allocation5 + $0x5] sm:$0x1]  ;;  %v4577_v20 = vld [vmem:[#allocation5 + $0x6] sm:$0x1] }
 0x503   : > { %s7700_s28 = smov 32   ;;  %v4586_v13 = vld [vmem:[#allocation5 + $0x7] sm:$0x1]  ;;  %v4721_v16 = vld [vmem:[%s7697_s7 + $0x1e8] sm:$0xff]  ;;  %v4731_v60 = vld [vmem:[%s7697_s7 + $0x238] sm:$0xff] }
 0x504   : > { %4836 = vmatpush.msrb.mxu1 %v4721_v16  ;;  %v4695_v16 = vld [vmem:[%s7697_s7 + $0x118] sm:$0xff]  ;;  %v4693_v27 = vld [vmem:[%s7697_s7 + $0x108] sm:$0xff] }
 0x508   : > { %v4467_v38 = vpop.f32.mrf.mxu0  ;;  %v4597_v51 = vld [vmem:[#allocation5 + $0x9] sm:$0x1]  ;;  %v4595_v14 = vld [vmem:[#allocation5 + $0x8] sm:$0x1]  ;;  %v4603_v39 = vld [vmem:[#allocation5 + $0xa] sm:$0x1] }
 0x509   : > { %4561 = vrot.lane.b32.xlu1 %v4559_v53, %s5622_s21  ;;  %4570 = vrot.lane.b32.xlu0 %v4568_v3, %s5623_s0  ;;  %4512 = vst.msk [vmem:[#allocation5 + $0x10] sm:$0xff] %vm4509_vm10, %v4467_v38  ;;  %v4615_v19 = vld [vmem:[#allocation5 + $0xc] sm:$0x1]  ;;  %v4621_v49 = vld [vmem:[#allocation5 + $0xd] sm:$0x1]  ;;  %v4685_v53 = vld [vmem:[%s7697_s7 + $0xc8] sm:$0xff] }
 0x50a   : > { %4599 = vrot.lane.b32.xlu2 %v4597_v51, %s5619_s18  ;;  %4596 = vst.msk [vmem:[%s7100_s20 + $0x1] sm:$0x1] %vm7089_vm11, %v4595_v14  ;;  %v4609_v0 = vld [vmem:[#allocation5 + $0xb] sm:$0x1]  ;;  %v4627_v28 = vld [vmem:[#allocation5 + $0xe] sm:$0x1]  ;;  %4818 = vmatpush.msrb.mxu3 %v4685_v53 }
 0x50b   : > { %v4633_v45 = vld [vmem:[#allocation5 + $0xf] sm:$0x1]  ;;  %v4704_v51 = vld [vmem:[%s7697_s7 + $0x160] sm:$0xff]  ;;  %v4681_v14 = vld [vmem:[%s7697_s7 + $0xa8] sm:$0xff]  ;;  %vm7290_vm10 = vcmp.lt.s32.totalorder %v4301_v5, 96 }
 0x50c   : > { %v4683_v3 = vld [vmem:[%s7697_s7 + $0xb8] sm:$0xff]  ;;  %4784 = vmatpush.msra.mxu0 %v4704_v51  ;;  %vm4575_vm13 = vmand %vm7285_vm9, %vm7290_vm10 }
 0x50d   : > { %v4719_v38 = vld [vmem:[%s7697_s7 + $0x1d8] sm:$0xff]  ;;  %4819 = vmatpush.msrb.mxu3 %v4683_v3 }
 0x50e   : > { %4837 = vmatpush.msrb.mxu1 %v4719_v38 }
 0x50f   : > { %4820 = vmatpush.msrb.mxu3 %v4681_v14  ;;  %v4891_v14 = vld [vmem:[%s7669_s9 + $0x70] sm:$0xff] }
 0x510   : > { %v4639_v37 = vld [vmem:[#allocation5 + $0x10] sm:$0x1]  ;;  %v4641_v17 = vld [vmem:[#allocation5 + $0x11] sm:$0x1]  ;;  %v4647_v56 = vld [vmem:[#allocation5 + $0x12] sm:$0x1]  ;;  %4838 = vmatpush.msrb.mxu1 %v4717_v43 }
 0x511   : > { %4605 = vrot.lane.b32.xlu1 %v4603_v39, %s7700_s28  ;;  %4579 = vrot.lane.b32.xlu0 %v4577_v20, %s5624_s27  ;;  %4640 = vst.msk [vmem:[%s7100_s20 + $0x2] sm:$0x1] %vm7089_vm11, %v4639_v37  ;;  %v4653_v18 = vld [vmem:[#allocation5 + $0x13] sm:$0x1]  ;;  %vm4400_vm11 = vcmp.eq.s32.totalorder %v4384_v15, %v7026_v58  ;;  %v4679_v20 = vld [vmem:[%s7697_s7 + $0x98] sm:$0xff] }
 0x512   : > { %4617 = vrot.lane.b32.xlu2 %v4615_v19, %s5622_s21  ;;  %v4702_v37 = vld [vmem:[%s7697_s7 + $0x150] sm:$0xff]  ;;  %5418 = vmatmul.msk.f32.gmra.mxu0 %vm4400_vm11, %v5617_v57  ;;  %v4890_v43 = vld [vmem:[%s7669_s9 + $0x68] sm:$0xff]  ;;  %v4889_v39 = vld [vmem:[%s7669_s9 + $0x60] sm:$0xff] }
 0x513   : > { %4821 = vmatpush.msrb.mxu3 %v4679_v20  ;;  %4785 = vmatpush.msra.mxu0 %v4702_v37  ;;  %v4888_v19 = vld [vmem:[%s7669_s9 + $0x58] sm:$0xff]  ;;  %v4887_v20 = vld [vmem:[%s7669_s9 + $0x50] sm:$0xff]  ;;  %v4886_v37 = vld [vmem:[%s7669_s9 + $0x48] sm:$0xff] }
 0x519   : > { %4623 = vrot.lane.b32.xlu1 %v4621_v49, %s5623_s0  ;;  %4611 = vrot.lane.b32.xlu0 %v4609_v0, %s7701_s1  ;;  %v4700_v49 = vld [vmem:[%s7697_s7 + $0x140] sm:$0xff] }
 0x51a   : > { %4643 = vrot.lane.b32.xlu2 %v4641_v17, %s5619_s18  ;;  %v4715_v17 = vld [vmem:[%s7697_s7 + $0x1b8] sm:$0xff]  ;;  %4786 = vmatpush.msra.mxu0 %v4700_v49 }
 0x51b   : > { %4839 = vmatpush.msrb.mxu1 %v4715_v17  ;;  %v4885_v17 = vld [vmem:[%s7669_s9 + $0x40] sm:$0xff]  ;;  %v4884_v49 = vld [vmem:[%s7669_s9 + $0x38] sm:$0xff] }
 0x51c   : > { %4787 = vmatpush.msra.mxu0 %v4698_v25  ;;  %v4880_v25 = vld [vmem:[%s7669_s9 + $0x18] sm:$0xff] }
 0x51e   : > { %4788 = vmatpush.msra.mxu0 %v4696_v62  ;;  %v4896_v62 = vld [vmem:[%s7669_s9 + $0x98] sm:$0xff] }
 0x520   : > { %4789 = vmatpush.msra.mxu0 %v4694_v4  ;;  %v4387_v4 = vadd.s32 56, %v7018_v42 }
 0x521   : > { %4629 = vrot.lane.b32.xlu1 %v4627_v28, %s5624_s27  ;;  %4588 = vrot.lane.b32.xlu0 %v4586_v13, %s5625_s2  ;;  %v4713_v28 = vld [vmem:[%s7697_s7 + $0x1a8] sm:$0xff]  ;;  %s5000_s27 = scalar_lea.hbm %s7674_s14, %s5444_s26 }
 0x522   : > { %4649 = vrot.lane.b32.xlu2 %v4647_v56, %s7700_s28  ;;  %4840 = vmatpush.msrb.mxu1 %v4713_v28  ;;  %v4470_v28 = vpop.f32.mrf.mxu0  ;;  %vm4403_vm8 = vcmp.eq.s32.totalorder %v4387_v4, %v7026_v58 }
 0x523   : > { %4790 = vmatpush.msra.mxu0 %v4692_v1 }
 0x524   : > { %4841 = vmatpush.msrb.mxu1 %v4711_v46  ;;  %v4878_v46 = vld [vmem:[%s7669_s9 + $0x8] sm:$0xff] }
 0x525   : > { %4863 = vmatpush.msrb.mxu0 %v4739_v6 }
 0x526   : > { %4842 = vmatpush.msrb.mxu1 %v4709_v54  ;;  %v4893_v54 = vld [vmem:[%s7669_s9 + $0x80] sm:$0xff] }
 0x527   : > { %4864 = vmatpush.msrb.mxu0 %v4737_v41 }
 0x528   : > { %4843 = vmatpush.msrb.mxu1 %v4707_v35  ;;  %v4740_v35 = vld [vmem:[%s7668_s8] sm:$0x3] }
 0x529   : > { %4635 = vrot.lane.b32.xlu1 %v4633_v45, %s5625_s2  ;;  %v4675_v45 = vld [vmem:[%s7697_s7 + $0x78] sm:$0xff]  ;;  %4865 = vmatpush.msrb.mxu0 %v4735_v59  ;;  %s5004_s2 = sshll.u32 %s5000_s27, 4  ;;  %s5005_s2 = int_to_ptr.hbm [resolvable:$true] %s5004_s2 }
 0x52a   : > { %4655 = vrot.lane.b32.xlu2 %v4653_v18, %s7701_s1  ;;  %v4677_v18 = vld [vmem:[%s7697_s7 + $0x88] sm:$0xff]  ;;  %4844 = vmatpush.msrb.mxu1 %v4705_v48  ;;  %s5002_s1 = sshll.u32 %s7100_s20, 4  ;;  %s5534_s21 = sshra.s32 %s5005_s2, 4  ;;  %s5003_s1 = int_to_ptr.vmem [resolvable:$true] %s5002_s1  ;;  %s5535_s21 = int_to_ptr.hbm [resolvable:$true] %s5534_s21 }
 0x52b   : > { %4822 = vmatpush.msrb.mxu3 %v4677_v18  ;;  %4866 = vmatpush.msrb.mxu0 %v4733_v22  ;;  %s5536_s18 = scalar_lea.hbm %s5535_s21, 3  ;;  %p5541_p0 = scmp.lt.s32.totalorder %s5535_s21, %s7674_s14 }
 0x52c   : > { %4845 = vmatpush.msrb.mxu1 %v4703_v36  ;;  %v4749_v36 = vperm.slane %v4740_v35, 1  ;;  %p5537_p11 = scmp.ne.s32.totalorder %s5535_s21, %s5536_s18  ;;  %p5542_p1 = scmp.lt.s32.totalorder %s5540_s5, %s5536_s18 }
 0x52d   : > { %4823 = vmatpush.msrb.mxu3 %v4675_v45  ;;  %4867 = vmatpush.msrb.mxu0 %v4731_v60  ;;  %v4881_v45 = vld [vmem:[%s7669_s9 + $0x20] sm:$0xff]  ;;  %v4392_v60 = vadd.s32 96, %v7018_v42 }
 0x52e   : > { %4846 = vmatpush.msrb.mxu1 %v4701_v10  ;;  %p5538_p12 = pnand %p5537_p11, %p5739_p5  ;;  %p5543_p2 = por %p5542_p1, %p5541_p0 }
 0x52f   : > { %4824 = vmatpush.msrb.mxu3 %v4673_v23  ;;  %v4877_v23 = vld [vmem:[%s7669_s9] sm:$0xff] }
 0x530   : > { %4847 = vmatpush.msrb.mxu1 %v4699_v61  ;;  %p5539_p13 = pneg %p5538_p12 }
 0x532   : > { %4848 = vmatpush.msrb.mxu1 %v4697_v24  ;;  %v4391_v24 = vadd.s32 88, %v7018_v42  ;;  %p5544_p3 = pnand %p5543_p2, %p5539_p13 }
 0x534   : > { %4849 = vmatpush.msrb.mxu1 %v4695_v16  ;;  %v4393_v16 = vadd.s32 104, %v7018_v42 }
 0x536   : > { %4850 = vmatpush.msrb.mxu1 %v4693_v27  ;;  %v4395_v27 = vadd.s32 120, %v7018_v42 }
 0x55c   : > { %v7133_v21 = vpop.permute.xlu2 %4552 }
 0x564   : > { %v4600_v34 = vpop.permute.xlu2 %4599 }
 0x565   : > { %4602 = vst.msk [vmem:[%s7100_s20 + $0x1] sm:$0x1] %vm7146_vm14, %v4600_v34  ;;  %v4671_v34 = vld [vmem:[%s7697_s7 + $0x58] sm:$0xff] }
 0x566   : > { %4825 = vmatpush.msrb.mxu3 %v4671_v34  ;;  %v4386_v34 = vadd.s32 48, %v7018_v42 }
 0x568   : > { %4826 = vmatpush.msrb.mxu3 %v4669_v33  ;;  %vm4402_vm7 = vcmp.eq.s32.totalorder %v4386_v34, %v7026_v58  ;;  %v4748_v33 = vperm.slane %v4740_v35, 0 }
 0x569   : > { %5420 = vmatmul.msk.f32.vlgmr.msra.gmra.mxu2 %vm4402_vm7, %v5617_v57 }
 0x56a   : > { %4827 = vmatpush.msrb.mxu3 %v4667_v12 }
 0x56c   : > { %v7192_v26 = vpop.permute.xlu2 %4617  ;;  %4828 = vmatpush.msrb.mxu3 %v4665_v44 }
 0x56e   : > { %4829 = vmatpush.msrb.mxu3 %v4663_v40 }
 0x570   : > { %4830 = vmatpush.msrb.mxu3 %v4661_v47  ;;  %v4388_v47 = vadd.s32 64, %v7018_v42 }
 0x571   : > { %5421 = vmatmul.msk.f32.gmra.mxu2 %vm4403_vm8, %v5617_v57 }
 0x572   : > { %vm4404_vm9 = vcmp.eq.s32.totalorder %v4388_v47, %v7026_v58 }
 0x573   : > { %v4535_v29 = vpop.permute.xlu1 %4534  ;;  %v4544_v8 = vpop.permute.xlu0 %4543 }
 0x574   : > { %4540 = vst.msk [vmem:[%s7100_s20] sm:$0x1] %vm7146_vm14, %v4535_v29  ;;  %v4644_v52 = vpop.permute.xlu2 %4643  ;;  %v4729_v29 = vld [vmem:[%s7697_s7 + $0x228] sm:$0xff] }
 0x575   : > { %4549 = vst.msk [vmem:[%s7100_s20] sm:$0x1] %vm7231_vm5, %v4544_v8  ;;  %4868 = vmatpush.msrb.mxu0 %v4729_v29  ;;  %v4394_v29 = vadd.s32 112, %v7018_v42  ;;  %v4944_v8 = vld [vmem:[%s7671_s11 + $0x10] sm:$0xff] }
 0x576   : > { %4558 = vst.msk [vmem:[%s7100_s20] sm:$0x1] %vm7238_vm6, %v7133_v21  ;;  %v4385_v21 = vadd.s32 40, %v7018_v42 }
 0x577   : > { %4646 = vst.msk [vmem:[%s7100_s20 + $0x2] sm:$0x1] %vm7146_vm14, %v4644_v52  ;;  %vm7357_vm14 = vcmp.ge.s32.totalorder %v4301_v5, 96  ;;  %v4725_v52 = vld [vmem:[%s7697_s7 + $0x208] sm:$0xff]  ;;  %4869 = vmatpush.msrb.mxu0 %v4727_v63 }
 0x578   : > { %vm4401_vm1 = vcmp.eq.s32.totalorder %v4385_v21, %v7026_v58  ;;  %vm4584_vm2 = vmand %vm7357_vm14, %vm7362_vm15  ;;  %v4879_v21 = vld [vmem:[%s7669_s9 + $0x10] sm:$0xff]  ;;  %vm4409_vm14 = vcmp.eq.s32.totalorder %v4393_v16, %v7026_v58  ;;  %vm4410_vm15 = vcmp.eq.s32.totalorder %v4394_v29, %v7026_v58  ;;  %v4943_v63 = vld [vmem:[%s7671_s11 + $0x8] sm:$0xff] }
 0x579   : > { %5419 = vmatmul.msk.f32.gmra.mxu0 %vm4401_vm1, %v5617_v57  ;;  %5422 = vmatmul.msk.f32.gmra.mxu2 %vm4404_vm9, %v5617_v57  ;;  %vm4411_vm1 = vcmp.eq.s32.totalorder %v4395_v27, %v7026_v58 }
 0x57a   : > { %4870 = vmatpush.msrb.mxu0 %v4725_v52  ;;  %v4942_v52 = vld [vmem:[%s7671_s11] sm:$0xff] }
 0x57b   : > { %v4562_v0 = vpop.permute.xlu1 %4561  ;;  %v4571_v56 = vpop.permute.xlu0 %4570 }
 0x57c   : > { %4567 = vst.msk [vmem:[%s7100_s20] sm:$0x1] %vm4566_vm12, %v4562_v0  ;;  %v4650_v13 = vpop.permute.xlu2 %4649  ;;  %v4883_v0 = vld [vmem:[%s7669_s9 + $0x30] sm:$0xff] }
 0x57d   : > { %4576 = vst.msk [vmem:[%s7100_s20] sm:$0x1] %vm4575_vm13, %v4571_v56  ;;  %v4882_v56 = vld [vmem:[%s7669_s9 + $0x28] sm:$0xff] }
 0x57e   : > { %4652 = vst.msk [vmem:[%s7100_s20 + $0x2] sm:$0x1] %vm7231_vm5, %v4650_v13 }
 0x583   : > { %v4606_v55 = vpop.permute.xlu1 %4605  ;;  %v4580_v11 = vpop.permute.xlu0 %4579 }
 0x584   : > { %4608 = vst.msk [vmem:[%s7100_s20 + $0x1] sm:$0x1] %vm7231_vm5, %v4606_v55  ;;  %v4656_v2 = vpop.permute.xlu2 %4655  ;;  %vm4593_vm5 = vmand %vm7467_vm3, %vm7472_vm4 }
 0x585   : > { %4585 = vst.msk [vmem:[%s7100_s20] sm:$0x1] %vm4584_vm2, %v4580_v11 }
 0x586   : > { %4658 = vst.msk [vmem:[%s7100_s20 + $0x2] sm:$0x1] %vm7238_vm6, %v4656_v2 }
 0x58b   : > { %v4624_v32 = vpop.permute.xlu1 %4623  ;;  %v4612_v30 = vpop.permute.xlu0 %4611 }
 0x58c   : > { %4614 = vst.msk [vmem:[%s7100_s20 + $0x1] sm:$0x1] %vm7238_vm6, %v4612_v30  ;;  %vm4752_vm6 = vcmask 523264   ;;  %v4390_v30 = vadd.s32 80, %v7018_v42 }
 0x58d   : > { %4620 = vst.msk [vmem:[%s7100_s20 + $0x1] sm:$0x1] %vm4566_vm12, %v7192_v26  ;;  %vm4407_vm12 = vcmp.eq.s32.totalorder %v4391_v24, %v7026_v58  ;;  %v4945_v26 = vld [vmem:[%s7671_s11 + $0x18] sm:$0xff] }
 0x58e   : > { %4626 = vst.msk [vmem:[%s7100_s20 + $0x1] sm:$0x1] %vm4575_vm13, %v4624_v32  ;;  %v4389_v32 = vadd.s32 72, %v7018_v42  ;;  %vm4406_vm11 = vcmp.eq.s32.totalorder %v4390_v30, %v7026_v58  ;;  %vm4408_vm13 = vcmp.eq.s32.totalorder %v4392_v60, %v7026_v58 }
 0x58f   : > { %v4473_v13 = vpop.f32.mrf.mxu0 }
 0x590   : > { %vm4405_vm10 = vcmp.eq.s32.totalorder %v4389_v32, %v7026_v58 }
 0x591   : > { %5423 = vmatmul.msk.f32.gmra.mxu2 %vm4405_vm10, %v5617_v57 }
 0x593   : > { %v4630_v5 = vpop.permute.xlu1 %4629  ;;  %v4589_v53 = vpop.permute.xlu0 %4588 }
 0x594   : > { %4632 = vst.msk [vmem:[%s7100_s20 + $0x1] sm:$0x1] %vm4584_vm2, %v4630_v5 }
 0x595   : > { %4594 = vst.msk [vmem:[%s7100_s20] sm:$0x1] %vm4593_vm5, %v4589_v53  ;;  %v4897_v53 = vld [vmem:[%s7670_s10] sm:$0x1] }
 0x599   : > { %5424 = vmatmul.msk.f32.gmra.mxu2 %vm4406_vm11, %v5617_v57 }
 0x59b   : > { %v4636_v3 = vpop.permute.xlu1 %4635 }
 0x59c   : > { %4638 = vst.msk [vmem:[%s7100_s20 + $0x1] sm:$0x1] %vm4593_vm5, %v4636_v3 }
 0x5a1   : > { %5425 = vmatmul.msk.f32.gmra.mxu2 %vm4407_vm12, %v5617_v57 }
 0x5a3   : > { %v4659_v38 = vld [vmem:[%s7100_s20] sm:$0x7] }
 0x5a4   : > { %v4742_v51 = vperm.slane %v4659_v38, 0  ;;  %v4744_v15 = vperm.slane %v4659_v38, 2  ;;  %v4743_v50 = vperm.slane %v4659_v38, 1 }
 0x5a6   : > { %4771 = vmatmul.f32.vlgmr.msra.gmra.mxu3 %v4742_v51  ;;  %4791 = vmatmul.f32.vlgmr.msra.gmra.mxu0 %v4743_v50 }
 0x5a7   : > { %5430 = vmatmul.msk.f32.vlgmr.msra.gmra.mxu1 %vm4752_vm6, %v4744_v15  ;;  %4901 = vmatpush.msra.mxu3 %v4892_v7 }
 0x5a8   : > { %4933 = vmatpush.msra.mxu0 %v4896_v62  ;;  %4962 = vmatpush.msra.mxu1 %v4945_v26 }
 0x5a9   : > { %4902 = vmatpush.msra.mxu3 %v4891_v14  ;;  %5426 = vmatmul.msk.f32.gmra.mxu2 %vm4408_vm13, %v5617_v57 }
 0x5aa   : > { %4934 = vmatpush.msra.mxu0 %v4895_v31  ;;  %4963 = vmatpush.msra.mxu1 %v4944_v8 }
 0x5ab   : > { %4903 = vmatpush.msra.mxu3 %v4890_v43 }
 0x5ac   : > { %4935 = vmatpush.msra.mxu0 %v4894_v9  ;;  %4964 = vmatpush.msra.mxu1 %v4943_v63 }
 0x5ad   : > { %4904 = vmatpush.msra.mxu3 %v4889_v39 }
 0x5ae   : > { %4831 = vmatmul.f32.vlgmr.msrb.gmra.mxu3 %v4742_v51  ;;  %5431 = vmatmul.msk.f32.vlgmr.msrb.gmra.mxu0 %vm4752_vm6, %v4744_v15 }
 0x5af   : > { %4851 = vmatmul.f32.vlgmr.msrb.gmra.mxu1 %v4743_v50  ;;  %4905 = vmatpush.msra.mxu3 %v4888_v19 }
 0x5b0   : > { %4936 = vmatpush.msra.mxu0 %v4893_v54  ;;  %4965 = vmatpush.msra.mxu1 %v4942_v52 }
 0x5b1   : > { %4906 = vmatpush.msra.mxu3 %v4887_v20  ;;  %5427 = vmatmul.msk.f32.gmra.mxu2 %vm4409_vm14, %v5617_v57 }
 0x5b3   : > { %4907 = vmatpush.msra.mxu3 %v4886_v37 }
 0x5b5   : > { %4908 = vmatpush.msra.mxu3 %v4885_v17 }
 0x5b7   : > { %4909 = vmatpush.msra.mxu3 %v4884_v49 }
 0x5b9   : > { %4910 = vmatpush.msra.mxu3 %v4883_v0  ;;  %5428 = vmatmul.msk.f32.gmra.mxu2 %vm4410_vm15, %v5617_v57 }
 0x5bb   : > { %4911 = vmatpush.msra.mxu3 %v4882_v56 }
 0x5bd   : > { %4912 = vmatpush.msra.mxu3 %v4881_v45 }
 0x5bf   : > { %4913 = vmatpush.msra.mxu3 %v4880_v25 }
 0x5c1   : > { %4914 = vmatpush.msra.mxu3 %v4879_v21  ;;  %5429 = vmatmul.msk.f32.gmra.mxu2 %vm4411_vm1, %v5617_v57 }
 0x5c3   : > { %4915 = vmatpush.msra.mxu3 %v4878_v46 }
 0x5c5   : > { %4916 = vmatpush.msra.mxu3 %v4877_v23 }
 0x5ec   : > { %v4479_v5 = vpop.f32.mrf.mxu2 }
 0x5f4   : > { %v4482_v42 = vpop.f32.mrf.mxu2 }
 0x5f6   : > { %v4476_v18 = vpop.f32.mrf.mxu0 }
 0x623   : > { %v4792_v48 = vpop.f32.mrf.mxu0 }
 0x624   : > { %v4812_v55 = vpop.f32.mrf.mxu1 }
 0x629   : > { %v4772_v1 = vpop.f32.mrf.mxu3 }
 0x62a   : > { %v4773_v11 = vadd.f32 %v4772_v1, %v4748_v33 }
 0x62b   : > { %v4872_v40 = vpop.f32.mrf.mxu0 }
 0x62c   : > { %v4793_v6 = vadd.f32 %v4792_v48, %v4773_v11  ;;  %v4852_v10 = vpop.f32.mrf.mxu1 }
 0x62e   : > { %v4813_v2 = vadd.f32 %v4812_v55, %v4793_v6 }
 0x630   : > { %v4875_v41 = vmax.f32 %v4813_v2, 0.0 }
 0x631   : > { %v4832_v12 = vpop.f32.mrf.mxu3 }
 0x632   : > { %v4833_v44 = vadd.f32 %v4832_v12, %v4749_v36  ;;  %4917 = vmatmul.f32.vlgmr.msra.gmra.mxu3 %v4875_v41 }
 0x634   : > { %v4853_v59 = vadd.f32 %v4852_v10, %v4833_v44 }
 0x636   : > { %v4873_v61 = vadd.f32 %v4872_v40, %v4853_v59 }
 0x638   : > { %v4876_v22 = vmax.f32 %v4873_v61, 0.0 }
 0x63a   : > { %5432 = vmatmul.msk.f32.vlgmr.msra.gmra.mxu0 %vm1757_vm0, %v4876_v22 }
 0x6b5   : > { %v4918_v3 = vpop.f32.mrf.mxu3 }
 0x6b6   : > { %v4919_v38 = vadd.f32 %v4918_v3, %v4897_v53 }
 0x6b7   : > { %v4938_v51 = vpop.f32.mrf.mxu0 }
 0x6b8   : > { %v4939_v15 = vadd.f32 %v4938_v51, %v4919_v38 }
 0x6ba   : > { %v4941_v50 = vmax.f32 %v4939_v15, 0.0 }
 0x6bc   : > { %5433 = vmatmul.msk.f32.vlgmr.msra.gmra.mxu1 %vm1757_vm0, %v4941_v50 }
 0x6bd   : > { %5547 = shalt.err (!%p5544_p3)
}
 0x6be   : > { %5446 = dma.vmem_to_hbm [thread:$0]  (%p5739_p5), %s5003_s1, 48, %s5005_s2, %s4977_s3   ;;  %v4485_v58 = vpop.f32.mrf.mxu2  ;;  %v4946_v37 = vld [vmem:[%s7672_s12] sm:$0x1]  ;;  %vm4970_vm0 = vcmask 73728  }
 0x6bf   : > { %s4986_s5 = scalar_lea.hbm %s7673_s13, %s5722_s17  ;;  %s463_s26 = scalar_lea.vmem [#allocation6], %s7085_s25 }
 0x6c0   : > { %s4988_s22 = sshll.u32 %s463_s26, 4  ;;  %s4990_s28 = sshll.u32 %s4986_s5, 4  ;;  %s4989_s22 = int_to_ptr.vmem [resolvable:$true] %s4988_s22  ;;  %s4991_s28 = int_to_ptr.hbm [resolvable:$true] %s4990_s28 }
 0x6c1   : > { %s4973_s27 = scalar_lea.sflag [#allocation7], %s7085_s25  ;;  %s5562_s1 = sshra.s32 %s4991_s28, 4  ;;  %s5563_s1 = int_to_ptr.hbm [resolvable:$true] %s5562_s1 }
 0x6c2   : > { %s5564_s2 = scalar_lea.hbm %s5563_s1, 1  ;;  %s5568_s21 = scalar_lea.hbm %s7673_s13, 2 }
 0x6c3   : > { %p5565_p4 = scmp.ne.s32.totalorder %s5563_s1, %s5564_s2  ;;  %p5569_p9 = scmp.lt.s32.totalorder %s5563_s1, %s7673_s13 }
 0x6c4   : > { %p5570_p10 = scmp.lt.s32.totalorder %s5568_s21, %s5564_s2 }
 0x6c5   : > { %p5566_p7 = pnand %p5565_p4, %p5739_p5 }
 0x6c6   : > { %v4488_v57 = vpop.f32.mrf.mxu2  ;;  %p5571_p11 = por %p5570_p10, %p5569_p9 }
 0x6c7   : > { %p5567_p8 = pneg %p5566_p7 }
 0x6c9   : > { %p5572_p12 = pnand %p5571_p11, %p5567_p8 }
 0x6ce   : > { %v4491_v7 = vpop.f32.mrf.mxu2 }
 0x6d6   : > { %v4494_v14 = vpop.f32.mrf.mxu2 }
 0x6de   : > { %v4497_v43 = vpop.f32.mrf.mxu2 }
 0x6e6   : > { %v4500_v39 = vpop.f32.mrf.mxu2 }
 0x6ee   : > { %v4503_v19 = vpop.f32.mrf.mxu2 }
 0x6f6   : > { %v4506_v20 = vpop.f32.mrf.mxu2 }
 0x739   : > { %v4967_v17 = vpop.f32.mrf.mxu1 }
 0x73a   : > { %v4968_v49 = vadd.f32 %v4967_v17, %v4946_v37 }
 0x73c   : > { %4971 = vst.msk [vmem:[%s463_s26] sm:$0x1] %vm4970_vm0, %v4968_v49 }
 0x73d   : > { %5575 = shalt.err (!%p5572_p12)
}
 0x73e   : > { %5445 = dma.vmem_to_hbm [thread:$0]  (%p5739_p5), %s4989_s22, 16, %s4991_s28, %s4973_s27  }
 0x73f PF: > { %p5456_p13 = scmp.ge.s32.totalorder %s5614_s16, 2  ;;  %s5016_s25 = sand.u32 1, %s5602_s29  }
 0x740   : > { %s5017_s4 = scalar_lea.sflag [#allocation7], %s5016_s25 }
 0x741   : > { %p5450_p0 = pnand %p5456_p13, %p5743_p6 }
 0x743   : > { %p5451_p1 = pneg %p5450_p0 }
 0x745   : > { %5593 = dma.done.wait (%p5451_p1), %s5017_s4, 16  }
 0x746   : > { %5595 = vsyncadd (%p5451_p1), %s5017_s4, 4294967280  ;;  %s5026_s6 = scalar_lea.sflag [#allocation9], %s5016_s25 }
 0x747   : > { %5597 = dma.done.wait (%p5451_p1), %s5026_s6, 48  }
 0x748   : > { %5599 = vsyncadd (%p5451_p1), %s5026_s6, 4294967248  ;;  %s7724_s23 = sld [smem:[#allocation12_spill]]  ;;  %p28_p5 = scmp.ge.s32.totalorder %s5726_s19, 4  }
 0x749   : > { %s7725_s29 = smov %s5606_s30  ;;  %s7726_s30 = smov %s5610_s15 }
 0x74a   : > { %s7728_s16 = smov %s5726_s19  ;;  %30 = sbr.rel (!%p28_p5) target bundleno = 14 (0xe), region = 133 }
 0x74e   : > { %s7727_s15 = smov %s7724_s23 }
 0x74f   :  { %5032 = vsyncpa [#allocation7], 1 }
 0x750   :  { %5034 = vsyncpa [#allocation7 + $0x1], 1 }
 0x751   :  { %5035 = vsyncpa [#allocation9], 1 }
 0x752   :  { %5037 = vsyncpa [#allocation9 + $0x1], 1 }

</bundles_post_ra>
